<compile_context>
chip_gen: v5e
topology: v5e:2x2
jax: 0.10.0
libtpu: 0.0.40
codegen_flags: <defaults>
</compile_context>

<pallas_src>
import functools

import jax
import jax.numpy as jnp
from jax import lax
from jax.experimental import pallas as pl
from jax.experimental.pallas import tpu as pltpu


def _round_up(x, m):
    return (x + m - 1) // m * m


def _pick_divisor(size, candidates):
    for c in candidates:
        if size % c == 0:
            return c
    return size


# ---------------------------------------------------------------------------
# Pallas kernel 1: tiled matmul, bf16 inputs, f32 accumulate, optional fused
# per-channel sum / sum-of-squares partials (for BatchNorm) or activation.
# ---------------------------------------------------------------------------
def _rowgroup_sums(v):
    """(tm, tn) f32 -> (8, tn): sum of the tm//8 sublane groups.

    Pure aligned slices + VALU adds; avoids a cross-sublane XLU reduce and a
    masked 1-of-8-sublane store in the writeback epilogue.
    """
    out = v[0:8, :]
    for t in range(1, v.shape[0] // 8):
        out = out + v[t * 8:(t + 1) * 8, :]
    return out


def _make_matmul_kernel(act, with_stats):
    def kernel(a_ref, w_ref, *rest):
        if with_stats:
            o_ref, sum_ref, sq_ref, acc_ref = rest
        else:
            o_ref, acc_ref = rest
        k = pl.program_id(2)            # K-tile index (reduction, innermost)
        nk = pl.num_programs(2)

        @pl.when(k == 0)
        def _():
            acc_ref[...] = jnp.zeros_like(acc_ref)

        acc_ref[...] += jnp.dot(a_ref[...], w_ref[...],
                                preferred_element_type=jnp.float32)

        @pl.when(k == nk - 1)
        def _():
            acc = acc_ref[...]
            if act == "relu":
                o_ref[...] = jnp.maximum(acc, 0.0)
            elif act == "tanh":
                o_ref[...] = jnp.tanh(acc)
            else:
                o_ref[...] = acc
            if with_stats:
                # Per-(i, j) partials, written once per M-tile -> no accumulation
                # across grid axes other than k, so M and N stay "parallel".
                sum_ref[...] = _rowgroup_sums(acc)
                sq_ref[...] = _rowgroup_sums(acc * acc)

    return kernel


def pallas_matmul(a, w_pad, *, act="none", with_stats=False):
    """act(A @ W).  A: (M, Kp) bf16 (K already padded); W: (Kp, Np) bf16 prepacked.

    Returns the (Mp, Np)-padded f32 product; with_stats additionally returns
    per-column partial sums / sums-of-squares of shape (gm*8, Np) (reduce over
    axis 0 in JAX).  Padded rows/cols are zero and never affect the statistics.
    """
    M, Kp = a.shape
    Kw, Np = w_pad.shape
    assert Kp == Kw, (Kp, Kw)
    assert a.dtype == jnp.bfloat16 and w_pad.dtype == jnp.bfloat16

    # Tile selection: biggest that comfortably fits scoped VMEM on all gens
    # (worst case ~3 MiB double-buffered; v7x scoped limit kept at 32 MiB so the
    # second TensorCore has headroom).
    Mp = _round_up(max(M, 1), 16)
    if Mp <= 512:
        tm = Mp
    elif Mp % 512 == 0:
        tm = 512
    elif Mp % 256 == 0:
        tm = 256
    else:
        Mp = _round_up(Mp, 256)
        tm = 256
    tk = Kp if Kp <= 512 else _pick_divisor(Kp, (512, 384, 256, 128))
    tn = Np if Np <= 256 else _pick_divisor(Np, (256, 128))

    if Mp != M:
        a = jnp.pad(a, ((0, Mp - M), (0, 0)))      # tiny bf16 row pad only

    gm, gn, gk = Mp // tm, Np // tn, Kp // tk

    out_shape = [jax.ShapeDtypeStruct((Mp, Np), jnp.float32)]
    out_specs = [pl.BlockSpec((tm, tn), lambda j, i, k: (i, j))]
    if with_stats:
        out_shape += [jax.ShapeDtypeStruct((gm * 8, Np), jnp.float32)] * 2
        out_specs += [pl.BlockSpec((8, tn), lambda j, i, k: (i, j))] * 2

    stats_bytes = 2 * gm * 8 * Np * 4 if with_stats else 0
    cost = pl.CostEstimate(
        flops=2 * Mp * Kp * Np,
        transcendentals=Mp * Np if act == "tanh" else 0,
        # A is re-streamed gn times, the W column slab gm times (j-outer grid).
        bytes_accessed=gn * Mp * Kp * 2 + gm * Kp * Np * 2 + Mp * Np * 4 + stats_bytes)

    res = pl.pallas_call(
        _make_matmul_kernel(act, with_stats),
        out_shape=tuple(out_shape),
        grid=(gn, gm, gk),
        in_specs=[
            pl.BlockSpec((tm, tk), lambda j, i, k: (i, k)),
            pl.BlockSpec((tk, tn), lambda j, i, k: (k, j)),
        ],
        out_specs=tuple(out_specs),
        scratch_shapes=[pltpu.VMEM((tm, tn), jnp.float32)],
        compiler_params=pltpu.CompilerParams(
            dimension_semantics=("parallel", "parallel", "arbitrary"),
            vmem_limit_bytes=32 * 1024 * 1024),
        cost_estimate=cost,
    )(a, w_pad)

    if with_stats:
        return res[0], res[1], res[2]
    return res[0]


# ---------------------------------------------------------------------------
# Pallas kernel 2: tiled per-channel affine (BN scale/shift) + activation.
# Consumes the matmul's padded f32 slab directly; writes bf16.
# ---------------------------------------------------------------------------
def _make_affine_act_kernel(act):
    def kernel(x_ref, s_ref, b_ref, o_ref):
        y = x_ref[...] * s_ref[...] + b_ref[...]
        if act == "leaky_relu":
            y = jnp.where(y >= 0.0, y, 0.2 * y)
        elif act == "relu":
            y = jnp.maximum(y, 0.0)
        elif act == "tanh":
            y = jnp.tanh(y)
        o_ref[...] = y.astype(o_ref.dtype)
    return kernel


def scale_shift_act(x, scale, shift, act):
    """Per-channel x*scale + shift then activation on an already-padded slab.

    x: (Mp, Np) f32 straight from pallas_matmul (Mp % 16 == 0, Np % 128 == 0,
    padded rows/cols zero).  scale/shift: (C,) with C <= Np.  Output is bf16
    (halves HBM write+read of every activation tensor; the MXU saw bf16 anyway).
    """
    Mp, Np = x.shape
    C = scale.shape[0]
    assert Mp % 16 == 0 and Np % 128 == 0 and C <= Np
    tm = _pick_divisor(Mp, (512, 256, 128, 64, 32, 16))
    tn = _pick_divisor(Np, (512, 256, 128))

    s_p = jnp.pad(scale.astype(jnp.float32).reshape(1, C), ((0, 0), (0, Np - C)))
    b_p = jnp.pad(shift.astype(jnp.float32).reshape(1, C), ((0, 0), (0, Np - C)))

    return pl.pallas_call(
        _make_affine_act_kernel(act),
        out_shape=jax.ShapeDtypeStruct((Mp, Np), jnp.bfloat16),
        grid=(Mp // tm, Np // tn),
        in_specs=[
            pl.BlockSpec((tm, tn), lambda i, j: (i, j)),
            pl.BlockSpec((1, tn), lambda i, j: (0, j)),
            pl.BlockSpec((1, tn), lambda i, j: (0, j)),
        ],
        out_specs=pl.BlockSpec((tm, tn), lambda i, j: (i, j)),
        compiler_params=pltpu.CompilerParams(
            dimension_semantics=("parallel", "parallel"),
            vmem_limit_bytes=32 * 1024 * 1024),
    )(x, s_p, b_p)


# ---------------------------------------------------------------------------
# Conv lowering glue (pure data movement stays in XLA).
# ---------------------------------------------------------------------------
def im2col_bf16(x, kh, kw, stride, pad, k_pad):
    """x: (N,H,W,C) -> bf16 patches (N*Ho*Wo, k_pad), K ordered (kh, kw, Cin).

    Builds bf16 directly and folds the K zero-padding into the same concat, so
    no separate cast/pad pass over the patch matrix is needed.
    """
    N, H, W, C = x.shape
    xb = x.astype(jnp.bfloat16)
    if pad:
        xb = jnp.pad(xb, ((0, 0), (pad, pad), (pad, pad), (0, 0)))
    Ho = (H + 2 * pad - kh) // stride + 1
    Wo = (W + 2 * pad - kw) // stride + 1
    cols = []
    for i in range(kh):
        for j in range(kw):
            cols.append(xb[:, i:i + stride * Ho:stride, j:j + stride * Wo:stride, :])
    K = kh * kw * C
    if k_pad > K:
        cols.append(jnp.zeros((N, Ho, Wo, k_pad - K), jnp.bfloat16))
    patches = jnp.concatenate(cols, axis=-1)
    return patches.reshape(N * Ho * Wo, k_pad), (N, Ho, Wo)


def _bn_scale_shift(total_sum, total_sq, count, gamma, beta):
    mean = total_sum / count
    var = jnp.maximum(total_sq / count - mean * mean, 0.0)   # biased, train-mode BN
    scale = gamma * lax.rsqrt(var + 1e-5)
    shift = beta - mean * scale
    return scale, shift


def down_block(x, p):
    """Conv2d(k=4,s=2,p=1,no bias) -> BatchNorm(batch stats) -> LeakyReLU(0.2)."""
    cout = p["cout"]
    cols, (N, Ho, Wo) = im2col_bf16(x, 4, 4, 2, 1, p["w"].shape[0])
    M = N * Ho * Wo
    y, s1, s2 = pallas_matmul(cols, p["w"], with_stats=True)
    scale, shift = _bn_scale_shift(jnp.sum(s1, axis=0)[:cout],
                                   jnp.sum(s2, axis=0)[:cout],
                                   M, p["gamma"], p["beta"])
    y = scale_shift_act(y, scale, shift, "leaky_relu")        # (Mp, Np) bf16
    return y[:M, :cout].reshape(N, Ho, Wo, cout)


def up_block(x, p):
    """ConvTranspose2d(k=4,s=2,p=1,no bias) -> BatchNorm -> ReLU.

    All four sub-pixel parities share one 3x3/s1 patch of the 1-padded input;
    the parity 2x2 kernels are zero-embedded into a single (9*Cin, 4*Cout)
    weight, so one matmul produces the whole block.  BN/ReLU run on the
    un-interleaved slab; the parity interleave happens once, on bf16.
    """
    N, H, W, _ = x.shape
    cout = p["cout"]
    cols, _ = im2col_bf16(x, 3, 3, 1, 1, p["w"].shape[0])
    M = N * H * W
    y, s1, s2 = pallas_matmul(cols, p["w"], with_stats=True)
    s1v = jnp.sum(s1, axis=0)[:4 * cout].reshape(4, cout).sum(axis=0)
    s2v = jnp.sum(s2, axis=0)[:4 * cout].reshape(4, cout).sum(axis=0)
    scale, shift = _bn_scale_shift(s1v, s2v, 4 * M, p["gamma"], p["beta"])
    y = scale_shift_act(y, jnp.tile(scale, 4), jnp.tile(shift, 4), "relu")
    y = y[:M, :4 * cout].reshape(N, H, W, 2, 2, cout)          # (.., r, s, C) bf16
    y = jnp.transpose(y, (0, 1, 3, 2, 4, 5)).reshape(N, 2 * H, 2 * W, cout)
    return y


def final_block(x, p):
    """Conv2d(k=3,s=1,p=1,no bias) -> Tanh, fused into the matmul epilogue."""
    cout = p["cout"]
    cols, (N, Ho, Wo) = im2col_bf16(x, 3, 3, 1, 1, p["w"].shape[0])
    M = N * Ho * Wo
    y = pallas_matmul(cols, p["w"], act="tanh")
    return y[:M, :cout].reshape(N, Ho, Wo, cout)


def forward(prep, x_nchw):
    x = jnp.transpose(x_nchw, (0, 2, 3, 1))                    # NCHW -> NHWC
    skips = []
    for blk in prep["down"]:
        x = down_block(x, blk)
        skips.append(x)
    skips = skips[::-1]
    for i, blk in enumerate(prep["up"]):
        x = jnp.concatenate([x, skips[i]], axis=-1)
        x = up_block(x, blk)
    x = final_block(x, prep["final"])
    return jnp.transpose(x, (0, 3, 1, 2)).astype(jnp.float32)  # NHWC -> NCHW


# ---------------------------------------------------------------------------
# Parameters: torch-layout init + one-time prepacking (pad to (Kp,Np), bf16).
# ---------------------------------------------------------------------------
def init_params(key, latent_dim, channels_out, base_channels, num_upsamples):
    keys = jax.random.split(key, 2 * num_upsamples + 1)
    ki = 0
    params = {"down": [], "up": []}
    in_ch = latent_dim
    for i in range(num_upsamples):
        out_ch = base_channels * 2 ** i
        w = jax.random.normal(keys[ki], (out_ch, in_ch, 4, 4), jnp.float32) * 0.05
        ki += 1
        params["down"].append({"w": w,
                               "gamma": jnp.ones((out_ch,), jnp.float32),
                               "beta": jnp.zeros((out_ch,), jnp.float32)})
        in_ch = out_ch
    in_ch *= 2
    for i in range(num_upsamples - 1, -1, -1):
        out_ch = base_channels * 2 ** i
        w = jax.random.normal(keys[ki], (in_ch, out_ch // 2, 4, 4), jnp.float32) * 0.05
        ki += 1
        params["up"].append({"w": w,
                             "gamma": jnp.ones((out_ch // 2,), jnp.float32),
                             "beta": jnp.zeros((out_ch // 2,), jnp.float32)})
        in_ch = out_ch
    wf = jax.random.normal(keys[ki], (channels_out, base_channels // 2, 3, 3),
                           jnp.float32) * 0.05
    params["final"] = {"w": wf}
    return params


def _prep_mat(m):
    K, N = m.shape
    Kp, Np = _round_up(K, 128), _round_up(N, 128)
    return jnp.pad(m, ((0, Kp - K), (0, Np - N))).astype(jnp.bfloat16)


def _conv_w_matrix(w):     # torch Conv2d weight (Cout,Cin,kh,kw) -> (kh*kw*Cin, Cout)
    cout, cin, kh, kw = w.shape
    return jnp.transpose(w, (2, 3, 1, 0)).reshape(kh * kw * cin, cout)


def _convT_merged_matrix(w):
    """torch ConvTranspose2d weight (Cin,Cout,4,4) -> (9*Cin, 4*Cout).

    Output parity (r,s) of the k=4/s=2/p=1 transpose conv is a 2x2 conv of the
    1-padded input with taps w[..., 3+r-2i, 3+s-2j] at patch offsets
    (i, j) in {r, r+1} x {s, s+1}.  Each parity kernel is zero-embedded into the
    shared 3x3 patch; parities are stacked along columns (block p = 2r + s).
    """
    cin, cout = w.shape[0], w.shape[1]
    mat = jnp.zeros((3, 3, cin, 2, 2, cout), jnp.float32)
    for r in (0, 1):
        for s in (0, 1):
            for i in (r, r + 1):
                for j in (s, s + 1):
                    mat = mat.at[i, j, :, r, s, :].set(
                        w[:, :, 3 + r - 2 * i, 3 + s - 2 * j])
    return mat.reshape(9 * cin, 4 * cout)


def prepare_params(params):
    prep = {"down": [], "up": []}
    for p in params["down"]:
        prep["down"].append({"w": _prep_mat(_conv_w_matrix(p["w"])),
                             "gamma": p["gamma"], "beta": p["beta"],
                             "cout": int(p["w"].shape[0])})
    for p in params["up"]:
        prep["up"].append({"w": _prep_mat(_convT_merged_matrix(p["w"])),
                           "gamma": p["gamma"], "beta": p["beta"],
                           "cout": int(p["w"].shape[1])})
    prep["final"] = {"w": _prep_mat(_conv_w_matrix(params["final"]["w"])),
                     "cout": int(params["final"]["w"].shape[0])}
    return prep


# ---------------------------------------------------------------------------
# Pure-JAX reference (same bf16 matmul inputs) for a correctness cross-check.
# ---------------------------------------------------------------------------
def reference_forward(params, x_nchw):
    f32, bf16 = jnp.float32, jnp.bfloat16
    dn = ("NHWC", "HWIO", "NHWC")

    def bn(y, gamma, beta):
        mean = jnp.mean(y, axis=(0, 1, 2))
        var = jnp.mean(jnp.square(y - mean), axis=(0, 1, 2))
        return (y - mean) * (gamma * lax.rsqrt(var + 1e-5)) + beta

    x = jnp.transpose(x_nchw, (0, 2, 3, 1)).astype(f32)
    skips = []
    for p in params["down"]:
        k = jnp.transpose(p["w"], (2, 3, 1, 0)).astype(bf16)
        y = lax.conv_general_dilated(x.astype(bf16), k, (2, 2), [(1, 1), (1, 1)],
                                     dimension_numbers=dn, preferred_element_type=f32)
        y = bn(y, p["gamma"], p["beta"])
        x = jnp.where(y >= 0, y, 0.2 * y)
        skips.append(x)
    skips = skips[::-1]
    for i, p in enumerate(params["up"]):
        x = jnp.concatenate([x, skips[i]], axis=-1)
        k = jnp.flip(jnp.transpose(p["w"], (2, 3, 0, 1)), axis=(0, 1)).astype(bf16)
        y = lax.conv_general_dilated(x.astype(bf16), k, (1, 1), [(2, 2), (2, 2)],
                                     lhs_dilation=(2, 2), dimension_numbers=dn,
                                     preferred_element_type=f32)
        y = bn(y, p["gamma"], p["beta"])
        x = jnp.maximum(y, 0.0)
    k = jnp.transpose(params["final"]["w"], (2, 3, 1, 0)).astype(bf16)
    y = lax.conv_general_dilated(x.astype(bf16), k, (1, 1), [(1, 1), (1, 1)],
                                 dimension_numbers=dn, preferred_element_type=f32)
    return jnp.transpose(jnp.tanh(y), (0, 3, 1, 2))


if __name__ == "__main__":
    key = jax.random.PRNGKey(0)
    pkey, xkey = jax.random.split(key)

    latent_dim, channels_out, base_channels, num_upsamples = 4, 3, 8, 4
    batch, spatial = 2, 16

    params = init_params(pkey, latent_dim, channels_out, base_channels, num_upsamples)
    prep = prepare_params(params)
    x = jax.random.normal(xkey, (batch, latent_dim, spatial, spatial), jnp.float32)

    fwd = jax.jit(functools.partial(forward, prep))
    y = fwd(x)
    jax.block_until_ready(y)

    assert y.shape == (batch, channels_out, spatial, spatial)
    assert bool(jnp.all(jnp.isfinite(y)))
    assert bool(jnp.all(jnp.abs(y) <= 1.0))       # tanh output range

    y_ref = jax.jit(functools.partial(reference_forward, params))(x)
    err = float(jnp.max(jnp.abs(y - y_ref)))
    assert err < 0.08, f"mismatch vs pure-JAX reference: {err}"

    print("KERNEL_OK")
</pallas_src>

<mosaic_0001>
module attributes {stable_mosaic.version = 11 : i64} {
  func.func @kernel(%arg0: i32, %arg1: i32, %arg2: i32, %arg3: memref<128x128xbf16, #tpu.memory_space<vmem>>, %arg4: memref<128x128xbf16, #tpu.memory_space<vmem>>, %arg5: memref<128x128xf32, #tpu.memory_space<vmem>>, %arg6: memref<8x128xf32, #tpu.memory_space<vmem>>, %arg7: memref<8x128xf32, #tpu.memory_space<vmem>>, %arg8: memref<128x128xf32, #tpu.memory_space<vmem>>) attributes {dimension_semantics = [#tpu.dimension_semantics<parallel>, #tpu.dimension_semantics<parallel>, #tpu.dimension_semantics<arbitrary>], iteration_bounds = array<i64: 1, 1, 1>, scalar_prefetch = 0 : i64, scratch_operands = 1 : i64, tpu.core_type = #tpu.core_type<tc>, window_params = [{transform_indices = @transform_0, window_bounds = array<i64: 128, 128>}, {transform_indices = @transform_1, window_bounds = array<i64: 128, 128>}, {transform_indices = @transform_2, window_bounds = array<i64: 128, 128>}, {transform_indices = @transform_3, window_bounds = array<i64: 8, 128>}, {transform_indices = @transform_4, window_bounds = array<i64: 8, 128>}]} {
    %c0_i32 = arith.constant 0 : i32
    %0 = arith.cmpi eq, %arg2, %c0_i32 : i32
    %1 = arith.extui %0 : i1 to i32
    %c0_i32_0 = arith.constant 0 : i32
    %2 = arith.cmpi ne, %1, %c0_i32_0 : i32
    scf.if %2 {
      %cst_10 = arith.constant 0.000000e+00 : f32
      %12 = vector.broadcast %cst_10 : f32 to vector<128x128xf32>
      %c0_11 = arith.constant 0 : index
      %c0_12 = arith.constant 0 : index
      %13 = vector.load %arg8[%c0_11, %c0_12] : memref<128x128xf32, #tpu.memory_space<vmem>>, vector<128x128xf32>
      tpu.vector_store %arg8[%c0_11, %c0_12], %12 {strides = array<i32>} : memref<128x128xf32, #tpu.memory_space<vmem>>, vector<128x128xf32>,
    } else {
    }
    %c0 = arith.constant 0 : index
    %c0_1 = arith.constant 0 : index
    %3 = vector.load %arg8[%c0, %c0_1] : memref<128x128xf32, #tpu.memory_space<vmem>>, vector<128x128xf32>
    %c0_2 = arith.constant 0 : index
    %c0_3 = arith.constant 0 : index
    %4 = vector.load %arg3[%c0_2, %c0_3] : memref<128x128xbf16, #tpu.memory_space<vmem>>, vector<128x128xbf16>
    %c0_4 = arith.constant 0 : index
    %c0_5 = arith.constant 0 : index
    %5 = vector.load %arg4[%c0_4, %c0_5] : memref<128x128xbf16, #tpu.memory_space<vmem>>, vector<128x128xbf16>
    %cst = arith.constant dense<0.000000e+00> : vector<128x128xf32>
    %6 = tpu.matmul %4, %5, %cst {dimension_numbers = #tpu.dot_dimension_numbers<[1], [0], [0], [1], [0, 0, 1, 1], [], []>} : vector<128x128xbf16>, vector<128x128xbf16>, vector<128x128xf32> -> vector<128x128xf32>
    %7 = arith.addf %3, %6 : vector<128x128xf32>
    %c0_6 = arith.constant 0 : index
    %c0_7 = arith.constant 0 : index
    %8 = vector.load %arg8[%c0_6, %c0_7] : memref<128x128xf32, #tpu.memory_space<vmem>>, vector<128x128xf32>
    tpu.vector_store %arg8[%c0_6, %c0_7], %7 {strides = array<i32>} : memref<128x128xf32, #tpu.memory_space<vmem>>, vector<128x128xf32>,
    %c0_i32_8 = arith.constant 0 : i32
    %9 = arith.cmpi eq, %arg2, %c0_i32_8 : i32
    %10 = arith.extui %9 : i1 to i32
    %c0_i32_9 = arith.constant 0 : i32
    %11 = arith.cmpi ne, %10, %c0_i32_9 : i32
    scf.if %11 {
      %c0_10 = arith.constant 0 : index
      %c0_11 = arith.constant 0 : index
      %12 = vector.load %arg8[%c0_10, %c0_11] : memref<128x128xf32, #tpu.memory_space<vmem>>, vector<128x128xf32>
      %c0_12 = arith.constant 0 : index
      %c0_13 = arith.constant 0 : index
      %13 = vector.load %arg5[%c0_12, %c0_13] : memref<128x128xf32, #tpu.memory_space<vmem>>, vector<128x128xf32>
      tpu.vector_store %arg5[%c0_12, %c0_13], %12 {strides = array<i32>} : memref<128x128xf32, #tpu.memory_space<vmem>>, vector<128x128xf32>,
      %14 = vector.extract_strided_slice %12 {offsets = [0, 0], sizes = [8, 128], strides = [1, 1]} : vector<128x128xf32> to vector<8x128xf32>
      %15 = vector.extract_strided_slice %12 {offsets = [8, 0], sizes = [8, 128], strides = [1, 1]} : vector<128x128xf32> to vector<8x128xf32>
      %16 = arith.addf %14, %15 : vector<8x128xf32>
      %17 = vector.extract_strided_slice %12 {offsets = [16, 0], sizes = [8, 128], strides = [1, 1]} : vector<128x128xf32> to vector<8x128xf32>
      %18 = arith.addf %16, %17 : vector<8x128xf32>
      %19 = vector.extract_strided_slice %12 {offsets = [24, 0], sizes = [8, 128], strides = [1, 1]} : vector<128x128xf32> to vector<8x128xf32>
      %20 = arith.addf %18, %19 : vector<8x128xf32>
      %21 = vector.extract_strided_slice %12 {offsets = [32, 0], sizes = [8, 128], strides = [1, 1]} : vector<128x128xf32> to vector<8x128xf32>
      %22 = arith.addf %20, %21 : vector<8x128xf32>
      %23 = vector.extract_strided_slice %12 {offsets = [40, 0], sizes = [8, 128], strides = [1, 1]} : vector<128x128xf32> to vector<8x128xf32>
      %24 = arith.addf %22, %23 : vector<8x128xf32>
      %25 = vector.extract_strided_slice %12 {offsets = [48, 0], sizes = [8, 128], strides = [1, 1]} : vector<128x128xf32> to vector<8x128xf32>
      %26 = arith.addf %24, %25 : vector<8x128xf32>
      %27 = vector.extract_strided_slice %12 {offsets = [56, 0], sizes = [8, 128], strides = [1, 1]} : vector<128x128xf32> to vector<8x128xf32>
      %28 = arith.addf %26, %27 : vector<8x128xf32>
      %29 = vector.extract_strided_slice %12 {offsets = [64, 0], sizes = [8, 128], strides = [1, 1]} : vector<128x128xf32> to vector<8x128xf32>
      %30 = arith.addf %28, %29 : vector<8x128xf32>
      %31 = vector.extract_strided_slice %12 {offsets = [72, 0], sizes = [8, 128], strides = [1, 1]} : vector<128x128xf32> to vector<8x128xf32>
      %32 = arith.addf %30, %31 : vector<8x128xf32>
      %33 = vector.extract_strided_slice %12 {offsets = [80, 0], sizes = [8, 128], strides = [1, 1]} : vector<128x128xf32> to vector<8x128xf32>
      %34 = arith.addf %32, %33 : vector<8x128xf32>
      %35 = vector.extract_strided_slice %12 {offsets = [88, 0], sizes = [8, 128], strides = [1, 1]} : vector<128x128xf32> to vector<8x128xf32>
      %36 = arith.addf %34, %35 : vector<8x128xf32>
      %37 = vector.extract_strided_slice %12 {offsets = [96, 0], sizes = [8, 128], strides = [1, 1]} : vector<128x128xf32> to vector<8x128xf32>
      %38 = arith.addf %36, %37 : vector<8x128xf32>
      %39 = vector.extract_strided_slice %12 {offsets = [104, 0], sizes = [8, 128], strides = [1, 1]} : vector<128x128xf32> to vector<8x128xf32>
      %40 = arith.addf %38, %39 : vector<8x128xf32>
      %41 = vector.extract_strided_slice %12 {offsets = [112, 0], sizes = [8, 128], strides = [1, 1]} : vector<128x128xf32> to vector<8x128xf32>
      %42 = arith.addf %40, %41 : vector<8x128xf32>
      %43 = vector.extract_strided_slice %12 {offsets = [120, 0], sizes = [8, 128], strides = [1, 1]} : vector<128x128xf32> to vector<8x128xf32>
      %44 = arith.addf %42, %43 : vector<8x128xf32>
      %c0_14 = arith.constant 0 : index
      %c0_15 = arith.constant 0 : index
      %45 = vector.load %arg6[%c0_14, %c0_15] : memref<8x128xf32, #tpu.memory_space<vmem>>, vector<8x128xf32>
      tpu.vector_store %arg6[%c0_14, %c0_15], %44 {strides = array<i32>} : memref<8x128xf32, #tpu.memory_space<vmem>>, vector<8x128xf32>,
      %46 = arith.mulf %12, %12 : vector<128x128xf32>
      %47 = vector.extract_strided_slice %46 {offsets = [0, 0], sizes = [8, 128], strides = [1, 1]} : vector<128x128xf32> to vector<8x128xf32>
      %48 = vector.extract_strided_slice %46 {offsets = [8, 0], sizes = [8, 128], strides = [1, 1]} : vector<128x128xf32> to vector<8x128xf32>
      %49 = arith.addf %47, %48 : vector<8x128xf32>
      %50 = vector.extract_strided_slice %46 {offsets = [16, 0], sizes = [8, 128], strides = [1, 1]} : vector<128x128xf32> to vector<8x128xf32>
      %51 = arith.addf %49, %50 : vector<8x128xf32>
      %52 = vector.extract_strided_slice %46 {offsets = [24, 0], sizes = [8, 128], strides = [1, 1]} : vector<128x128xf32> to vector<8x128xf32>
      %53 = arith.addf %51, %52 : vector<8x128xf32>
      %54 = vector.extract_strided_slice %46 {offsets = [32, 0], sizes = [8, 128], strides = [1, 1]} : vector<128x128xf32> to vector<8x128xf32>
      %55 = arith.addf %53, %54 : vector<8x128xf32>
      %56 = vector.extract_strided_slice %46 {offsets = [40, 0], sizes = [8, 128], strides = [1, 1]} : vector<128x128xf32> to vector<8x128xf32>
      %57 = arith.addf %55, %56 : vector<8x128xf32>
      %58 = vector.extract_strided_slice %46 {offsets = [48, 0], sizes = [8, 128], strides = [1, 1]} : vector<128x128xf32> to vector<8x128xf32>
      %59 = arith.addf %57, %58 : vector<8x128xf32>
      %60 = vector.extract_strided_slice %46 {offsets = [56, 0], sizes = [8, 128], strides = [1, 1]} : vector<128x128xf32> to vector<8x128xf32>
      %61 = arith.addf %59, %60 : vector<8x128xf32>
      %62 = vector.extract_strided_slice %46 {offsets = [64, 0], sizes = [8, 128], strides = [1, 1]} : vector<128x128xf32> to vector<8x128xf32>
      %63 = arith.addf %61, %62 : vector<8x128xf32>
      %64 = vector.extract_strided_slice %46 {offsets = [72, 0], sizes = [8, 128], strides = [1, 1]} : vector<128x128xf32> to vector<8x128xf32>
      %65 = arith.addf %63, %64 : vector<8x128xf32>
      %66 = vector.extract_strided_slice %46 {offsets = [80, 0], sizes = [8, 128], strides = [1, 1]} : vector<128x128xf32> to vector<8x128xf32>
      %67 = arith.addf %65, %66 : vector<8x128xf32>
      %68 = vector.extract_strided_slice %46 {offsets = [88, 0], sizes = [8, 128], strides = [1, 1]} : vector<128x128xf32> to vector<8x128xf32>
      %69 = arith.addf %67, %68 : vector<8x128xf32>
      %70 = vector.extract_strided_slice %46 {offsets = [96, 0], sizes = [8, 128], strides = [1, 1]} : vector<128x128xf32> to vector<8x128xf32>
      %71 = arith.addf %69, %70 : vector<8x128xf32>
      %72 = vector.extract_strided_slice %46 {offsets = [104, 0], sizes = [8, 128], strides = [1, 1]} : vector<128x128xf32> to vector<8x128xf32>
      %73 = arith.addf %71, %72 : vector<8x128xf32>
      %74 = vector.extract_strided_slice %46 {offsets = [112, 0], sizes = [8, 128], strides = [1, 1]} : vector<128x128xf32> to vector<8x128xf32>
      %75 = arith.addf %73, %74 : vector<8x128xf32>
      %76 = vector.extract_strided_slice %46 {offsets = [120, 0], sizes = [8, 128], strides = [1, 1]} : vector<128x128xf32> to vector<8x128xf32>
      %77 = arith.addf %75, %76 : vector<8x128xf32>
      %c0_16 = arith.constant 0 : index
      %c0_17 = arith.constant 0 : index
      %78 = vector.load %arg7[%c0_16, %c0_17] : memref<8x128xf32, #tpu.memory_space<vmem>>, vector<8x128xf32>
      tpu.vector_store %arg7[%c0_16, %c0_17], %77 {strides = array<i32>} : memref<8x128xf32, #tpu.memory_space<vmem>>, vector<8x128xf32>,
    } else {
    }
    return
  }
  func.func @transform_0(%arg0: i32, %arg1: i32, %arg2: i32) -> (i32, i32) {
    %c0_i32 = arith.constant 0 : i32
    return %arg1, %arg2 : i32, i32
  }
  func.func @transform_1(%arg0: i32, %arg1: i32, %arg2: i32) -> (i32, i32) {
    %c0_i32 = arith.constant 0 : i32
    return %arg2, %arg0 : i32, i32
  }
  func.func @transform_2(%arg0: i32, %arg1: i32, %arg2: i32) -> (i32, i32) {
    %c0_i32 = arith.constant 0 : i32
    return %arg1, %arg0 : i32, i32
  }
  func.func @transform_3(%arg0: i32, %arg1: i32, %arg2: i32) -> (i32, i32) {
    %c0_i32 = arith.constant 0 : i32
    return %arg1, %arg0 : i32, i32
  }
  func.func @transform_4(%arg0: i32, %arg1: i32, %arg2: i32) -> (i32, i32) {
    %c0_i32 = arith.constant 0 : i32
    return %arg1, %arg0 : i32, i32
  }
}

module attributes {stable_mosaic.version = 11 : i64} {
  func.func @kernel(%arg0: i32, %arg1: i32, %arg2: memref<128x128xf32, #tpu.memory_space<vmem>>, %arg3: memref<1x128xf32, #tpu.memory_space<vmem>>, %arg4: memref<1x128xf32, #tpu.memory_space<vmem>>, %arg5: memref<128x128xbf16, #tpu.memory_space<vmem>>) attributes {dimension_semantics = [#tpu.dimension_semantics<parallel>, #tpu.dimension_semantics<parallel>], iteration_bounds = array<i64: 1, 1>, scalar_prefetch = 0 : i64, scratch_operands = 0 : i64, tpu.core_type = #tpu.core_type<tc>, window_params = [{transform_indices = @transform_0, window_bounds = array<i64: 128, 128>}, {transform_indices = @transform_1, window_bounds = array<i64: 1, 128>}, {transform_indices = @transform_2, window_bounds = array<i64: 1, 128>}, {transform_indices = @transform_3, window_bounds = array<i64: 128, 128>}]} {
    %c0 = arith.constant 0 : index
    %c0_0 = arith.constant 0 : index
    %0 = vector.load %arg2[%c0, %c0_0] : memref<128x128xf32, #tpu.memory_space<vmem>>, vector<128x128xf32>
    %c0_1 = arith.constant 0 : index
    %c0_2 = arith.constant 0 : index
    %1 = vector.load %arg3[%c0_1, %c0_2] : memref<1x128xf32, #tpu.memory_space<vmem>>, vector<1x128xf32>
    %2 = vector.broadcast %1 : vector<1x128xf32> to vector<128x128xf32>
    %3 = arith.mulf %0, %2 : vector<128x128xf32>
    %c0_3 = arith.constant 0 : index
    %c0_4 = arith.constant 0 : index
    %4 = vector.load %arg4[%c0_3, %c0_4] : memref<1x128xf32, #tpu.memory_space<vmem>>, vector<1x128xf32>
    %5 = vector.broadcast %4 : vector<1x128xf32> to vector<128x128xf32>
    %6 = arith.addf %3, %5 : vector<128x128xf32>
    %cst = arith.constant 0.000000e+00 : f32
    %7 = vector.broadcast %cst : f32 to vector<128x128xf32>
    %8 = arith.cmpf oge, %6, %7 : vector<128x128xf32>
    %cst_5 = arith.constant 2.000000e-01 : f32
    %9 = vector.broadcast %cst_5 : f32 to vector<128x128xf32>
    %10 = arith.mulf %9, %6 : vector<128x128xf32>
    %11 = arith.select %8, %6, %10 : vector<128x128xi1>, vector<128x128xf32>
    %12 = arith.truncf %11 : vector<128x128xf32> to vector<128x128xbf16>
    %c0_6 = arith.constant 0 : index
    %c0_7 = arith.constant 0 : index
    %13 = vector.load %arg5[%c0_6, %c0_7] : memref<128x128xbf16, #tpu.memory_space<vmem>>, vector<128x128xbf16>
    tpu.vector_store %arg5[%c0_6, %c0_7], %12 {strides = array<i32>} : memref<128x128xbf16, #tpu.memory_space<vmem>>, vector<128x128xbf16>,
    return
  }
  func.func @transform_0(%arg0: i32, %arg1: i32) -> (i32, i32) {
    %c0_i32 = arith.constant 0 : i32
    return %arg0, %arg1 : i32, i32
  }
  func.func @transform_1(%arg0: i32, %arg1: i32) -> (i32, i32) {
    %c0_i32 = arith.constant 0 : i32
    %c0_i32_0 = arith.constant 0 : i32
    return %c0_i32, %arg1 : i32, i32
  }
  func.func @transform_2(%arg0: i32, %arg1: i32) -> (i32, i32) {
    %c0_i32 = arith.constant 0 : i32
    %c0_i32_0 = arith.constant 0 : i32
    return %c0_i32, %arg1 : i32, i32
  }
  func.func @transform_3(%arg0: i32, %arg1: i32) -> (i32, i32) {
    %c0_i32 = arith.constant 0 : i32
    return %arg0, %arg1 : i32, i32
  }
}

module attributes {stable_mosaic.version = 11 : i64} {
  func.func @kernel(%arg0: i32, %arg1: i32, %arg2: i32, %arg3: memref<32x128xbf16, #tpu.memory_space<vmem>>, %arg4: memref<128x128xbf16, #tpu.memory_space<vmem>>, %arg5: memref<32x128xf32, #tpu.memory_space<vmem>>, %arg6: memref<8x128xf32, #tpu.memory_space<vmem>>, %arg7: memref<8x128xf32, #tpu.memory_space<vmem>>, %arg8: memref<32x128xf32, #tpu.memory_space<vmem>>) attributes {dimension_semantics = [#tpu.dimension_semantics<parallel>, #tpu.dimension_semantics<parallel>, #tpu.dimension_semantics<arbitrary>], iteration_bounds = array<i64: 1, 1, 1>, scalar_prefetch = 0 : i64, scratch_operands = 1 : i64, tpu.core_type = #tpu.core_type<tc>, window_params = [{transform_indices = @transform_0, window_bounds = array<i64: 32, 128>}, {transform_indices = @transform_1, window_bounds = array<i64: 128, 128>}, {transform_indices = @transform_2, window_bounds = array<i64: 32, 128>}, {transform_indices = @transform_3, window_bounds = array<i64: 8, 128>}, {transform_indices = @transform_4, window_bounds = array<i64: 8, 128>}]} {
    %c0_i32 = arith.constant 0 : i32
    %0 = arith.cmpi eq, %arg2, %c0_i32 : i32
    %1 = arith.extui %0 : i1 to i32
    %c0_i32_0 = arith.constant 0 : i32
    %2 = arith.cmpi ne, %1, %c0_i32_0 : i32
    scf.if %2 {
      %cst_10 = arith.constant 0.000000e+00 : f32
      %12 = vector.broadcast %cst_10 : f32 to vector<32x128xf32>
      %c0_11 = arith.constant 0 : index
      %c0_12 = arith.constant 0 : index
      %13 = vector.load %arg8[%c0_11, %c0_12] : memref<32x128xf32, #tpu.memory_space<vmem>>, vector<32x128xf32>
      tpu.vector_store %arg8[%c0_11, %c0_12], %12 {strides = array<i32>} : memref<32x128xf32, #tpu.memory_space<vmem>>, vector<32x128xf32>,
    } else {
    }
    %c0 = arith.constant 0 : index
    %c0_1 = arith.constant 0 : index
    %3 = vector.load %arg8[%c0, %c0_1] : memref<32x128xf32, #tpu.memory_space<vmem>>, vector<32x128xf32>
    %c0_2 = arith.constant 0 : index
    %c0_3 = arith.constant 0 : index
    %4 = vector.load %arg3[%c0_2, %c0_3] : memref<32x128xbf16, #tpu.memory_space<vmem>>, vector<32x128xbf16>
    %c0_4 = arith.constant 0 : index
    %c0_5 = arith.constant 0 : index
    %5 = vector.load %arg4[%c0_4, %c0_5] : memref<128x128xbf16, #tpu.memory_space<vmem>>, vector<128x128xbf16>
    %cst = arith.constant dense<0.000000e+00> : vector<32x128xf32>
    %6 = tpu.matmul %4, %5, %cst {dimension_numbers = #tpu.dot_dimension_numbers<[1], [0], [0], [1], [0, 0, 1, 1], [], []>} : vector<32x128xbf16>, vector<128x128xbf16>, vector<32x128xf32> -> vector<32x128xf32>
    %7 = arith.addf %3, %6 : vector<32x128xf32>
    %c0_6 = arith.constant 0 : index
    %c0_7 = arith.constant 0 : index
    %8 = vector.load %arg8[%c0_6, %c0_7] : memref<32x128xf32, #tpu.memory_space<vmem>>, vector<32x128xf32>
    tpu.vector_store %arg8[%c0_6, %c0_7], %7 {strides = array<i32>} : memref<32x128xf32, #tpu.memory_space<vmem>>, vector<32x128xf32>,
    %c0_i32_8 = arith.constant 0 : i32
    %9 = arith.cmpi eq, %arg2, %c0_i32_8 : i32
    %10 = arith.extui %9 : i1 to i32
    %c0_i32_9 = arith.constant 0 : i32
    %11 = arith.cmpi ne, %10, %c0_i32_9 : i32
    scf.if %11 {
      %c0_10 = arith.constant 0 : index
      %c0_11 = arith.constant 0 : index
      %12 = vector.load %arg8[%c0_10, %c0_11] : memref<32x128xf32, #tpu.memory_space<vmem>>, vector<32x128xf32>
      %c0_12 = arith.constant 0 : index
      %c0_13 = arith.constant 0 : index
      %13 = vector.load %arg5[%c0_12, %c0_13] : memref<32x128xf32, #tpu.memory_space<vmem>>, vector<32x128xf32>
      tpu.vector_store %arg5[%c0_12, %c0_13], %12 {strides = array<i32>} : memref<32x128xf32, #tpu.memory_space<vmem>>, vector<32x128xf32>,
      %14 = vector.extract_strided_slice %12 {offsets = [0, 0], sizes = [8, 128], strides = [1, 1]} : vector<32x128xf32> to vector<8x128xf32>
      %15 = vector.extract_strided_slice %12 {offsets = [8, 0], sizes = [8, 128], strides = [1, 1]} : vector<32x128xf32> to vector<8x128xf32>
      %16 = arith.addf %14, %15 : vector<8x128xf32>
      %17 = vector.extract_strided_slice %12 {offsets = [16, 0], sizes = [8, 128], strides = [1, 1]} : vector<32x128xf32> to vector<8x128xf32>
      %18 = arith.addf %16, %17 : vector<8x128xf32>
      %19 = vector.extract_strided_slice %12 {offsets = [24, 0], sizes = [8, 128], strides = [1, 1]} : vector<32x128xf32> to vector<8x128xf32>
      %20 = arith.addf %18, %19 : vector<8x128xf32>
      %c0_14 = arith.constant 0 : index
      %c0_15 = arith.constant 0 : index
      %21 = vector.load %arg6[%c0_14, %c0_15] : memref<8x128xf32, #tpu.memory_space<vmem>>, vector<8x128xf32>
      tpu.vector_store %arg6[%c0_14, %c0_15], %20 {strides = array<i32>} : memref<8x128xf32, #tpu.memory_space<vmem>>, vector<8x128xf32>,
      %22 = arith.mulf %12, %12 : vector<32x128xf32>
      %23 = vector.extract_strided_slice %22 {offsets = [0, 0], sizes = [8, 128], strides = [1, 1]} : vector<32x128xf32> to vector<8x128xf32>
      %24 = vector.extract_strided_slice %22 {offsets = [8, 0], sizes = [8, 128], strides = [1, 1]} : vector<32x128xf32> to vector<8x128xf32>
      %25 = arith.addf %23, %24 : vector<8x128xf32>
      %26 = vector.extract_strided_slice %22 {offsets = [16, 0], sizes = [8, 128], strides = [1, 1]} : vector<32x128xf32> to vector<8x128xf32>
      %27 = arith.addf %25, %26 : vector<8x128xf32>
      %28 = vector.extract_strided_slice %22 {offsets = [24, 0], sizes = [8, 128], strides = [1, 1]} : vector<32x128xf32> to vector<8x128xf32>
      %29 = arith.addf %27, %28 : vector<8x128xf32>
      %c0_16 = arith.constant 0 : index
      %c0_17 = arith.constant 0 : index
      %30 = vector.load %arg7[%c0_16, %c0_17] : memref<8x128xf32, #tpu.memory_space<vmem>>, vector<8x128xf32>
      tpu.vector_store %arg7[%c0_16, %c0_17], %29 {strides = array<i32>} : memref<8x128xf32, #tpu.memory_space<vmem>>, vector<8x128xf32>,
    } else {
    }
    return
  }
  func.func @transform_0(%arg0: i32, %arg1: i32, %arg2: i32) -> (i32, i32) {
    %c0_i32 = arith.constant 0 : i32
    return %arg1, %arg2 : i32, i32
  }
  func.func @transform_1(%arg0: i32, %arg1: i32, %arg2: i32) -> (i32, i32) {
    %c0_i32 = arith.constant 0 : i32
    return %arg2, %arg0 : i32, i32
  }
  func.func @transform_2(%arg0: i32, %arg1: i32, %arg2: i32) -> (i32, i32) {
    %c0_i32 = arith.constant 0 : i32
    return %arg1, %arg0 : i32, i32
  }
  func.func @transform_3(%arg0: i32, %arg1: i32, %arg2: i32) -> (i32, i32) {
    %c0_i32 = arith.constant 0 : i32
    return %arg1, %arg0 : i32, i32
  }
  func.func @transform_4(%arg0: i32, %arg1: i32, %arg2: i32) -> (i32, i32) {
    %c0_i32 = arith.constant 0 : i32
    return %arg1, %arg0 : i32, i32
  }
}

module attributes {stable_mosaic.version = 11 : i64} {
  func.func @kernel(%arg0: i32, %arg1: i32, %arg2: memref<32x128xf32, #tpu.memory_space<vmem>>, %arg3: memref<1x128xf32, #tpu.memory_space<vmem>>, %arg4: memref<1x128xf32, #tpu.memory_space<vmem>>, %arg5: memref<32x128xbf16, #tpu.memory_space<vmem>>) attributes {dimension_semantics = [#tpu.dimension_semantics<parallel>, #tpu.dimension_semantics<parallel>], iteration_bounds = array<i64: 1, 1>, scalar_prefetch = 0 : i64, scratch_operands = 0 : i64, tpu.core_type = #tpu.core_type<tc>, window_params = [{transform_indices = @transform_0, window_bounds = array<i64: 32, 128>}, {transform_indices = @transform_1, window_bounds = array<i64: 1, 128>}, {transform_indices = @transform_2, window_bounds = array<i64: 1, 128>}, {transform_indices = @transform_3, window_bounds = array<i64: 32, 128>}]} {
    %c0 = arith.constant 0 : index
    %c0_0 = arith.constant 0 : index
    %0 = vector.load %arg2[%c0, %c0_0] : memref<32x128xf32, #tpu.memory_space<vmem>>, vector<32x128xf32>
    %c0_1 = arith.constant 0 : index
    %c0_2 = arith.constant 0 : index
    %1 = vector.load %arg3[%c0_1, %c0_2] : memref<1x128xf32, #tpu.memory_space<vmem>>, vector<1x128xf32>
    %2 = vector.broadcast %1 : vector<1x128xf32> to vector<32x128xf32>
    %3 = arith.mulf %0, %2 : vector<32x128xf32>
    %c0_3 = arith.constant 0 : index
    %c0_4 = arith.constant 0 : index
    %4 = vector.load %arg4[%c0_3, %c0_4] : memref<1x128xf32, #tpu.memory_space<vmem>>, vector<1x128xf32>
    %5 = vector.broadcast %4 : vector<1x128xf32> to vector<32x128xf32>
    %6 = arith.addf %3, %5 : vector<32x128xf32>
    %cst = arith.constant 0.000000e+00 : f32
    %7 = vector.broadcast %cst : f32 to vector<32x128xf32>
    %8 = arith.cmpf oge, %6, %7 : vector<32x128xf32>
    %cst_5 = arith.constant 2.000000e-01 : f32
    %9 = vector.broadcast %cst_5 : f32 to vector<32x128xf32>
    %10 = arith.mulf %9, %6 : vector<32x128xf32>
    %11 = arith.select %8, %6, %10 : vector<32x128xi1>, vector<32x128xf32>
    %12 = arith.truncf %11 : vector<32x128xf32> to vector<32x128xbf16>
    %c0_6 = arith.constant 0 : index
    %c0_7 = arith.constant 0 : index
    %13 = vector.load %arg5[%c0_6, %c0_7] : memref<32x128xbf16, #tpu.memory_space<vmem>>, vector<32x128xbf16>
    tpu.vector_store %arg5[%c0_6, %c0_7], %12 {strides = array<i32>} : memref<32x128xbf16, #tpu.memory_space<vmem>>, vector<32x128xbf16>,
    return
  }
  func.func @transform_0(%arg0: i32, %arg1: i32) -> (i32, i32) {
    %c0_i32 = arith.constant 0 : i32
    return %arg0, %arg1 : i32, i32
  }
  func.func @transform_1(%arg0: i32, %arg1: i32) -> (i32, i32) {
    %c0_i32 = arith.constant 0 : i32
    %c0_i32_0 = arith.constant 0 : i32
    return %c0_i32, %arg1 : i32, i32
  }
  func.func @transform_2(%arg0: i32, %arg1: i32) -> (i32, i32) {
    %c0_i32 = arith.constant 0 : i32
    %c0_i32_0 = arith.constant 0 : i32
    return %c0_i32, %arg1 : i32, i32
  }
  func.func @transform_3(%arg0: i32, %arg1: i32) -> (i32, i32) {
    %c0_i32 = arith.constant 0 : i32
    return %arg0, %arg1 : i32, i32
  }
}

module attributes {stable_mosaic.version = 11 : i64} {
  func.func @kernel(%arg0: i32, %arg1: i32, %arg2: i32, %arg3: memref<16x256xbf16, #tpu.memory_space<vmem>>, %arg4: memref<256x128xbf16, #tpu.memory_space<vmem>>, %arg5: memref<16x128xf32, #tpu.memory_space<vmem>>, %arg6: memref<8x128xf32, #tpu.memory_space<vmem>>, %arg7: memref<8x128xf32, #tpu.memory_space<vmem>>, %arg8: memref<16x128xf32, #tpu.memory_space<vmem>>) attributes {dimension_semantics = [#tpu.dimension_semantics<parallel>, #tpu.dimension_semantics<parallel>, #tpu.dimension_semantics<arbitrary>], iteration_bounds = array<i64: 1, 1, 1>, scalar_prefetch = 0 : i64, scratch_operands = 1 : i64, tpu.core_type = #tpu.core_type<tc>, window_params = [{transform_indices = @transform_0, window_bounds = array<i64: 16, 256>}, {transform_indices = @transform_1, window_bounds = array<i64: 256, 128>}, {transform_indices = @transform_2, window_bounds = array<i64: 16, 128>}, {transform_indices = @transform_3, window_bounds = array<i64: 8, 128>}, {transform_indices = @transform_4, window_bounds = array<i64: 8, 128>}]} {
    %c0_i32 = arith.constant 0 : i32
    %0 = arith.cmpi eq, %arg2, %c0_i32 : i32
    %1 = arith.extui %0 : i1 to i32
    %c0_i32_0 = arith.constant 0 : i32
    %2 = arith.cmpi ne, %1, %c0_i32_0 : i32
    scf.if %2 {
      %cst_10 = arith.constant 0.000000e+00 : f32
      %12 = vector.broadcast %cst_10 : f32 to vector<16x128xf32>
      %c0_11 = arith.constant 0 : index
      %c0_12 = arith.constant 0 : index
      %13 = vector.load %arg8[%c0_11, %c0_12] : memref<16x128xf32, #tpu.memory_space<vmem>>, vector<16x128xf32>
      tpu.vector_store %arg8[%c0_11, %c0_12], %12 {strides = array<i32>} : memref<16x128xf32, #tpu.memory_space<vmem>>, vector<16x128xf32>,
    } else {
    }
    %c0 = arith.constant 0 : index
    %c0_1 = arith.constant 0 : index
    %3 = vector.load %arg8[%c0, %c0_1] : memref<16x128xf32, #tpu.memory_space<vmem>>, vector<16x128xf32>
    %c0_2 = arith.constant 0 : index
    %c0_3 = arith.constant 0 : index
    %4 = vector.load %arg3[%c0_2, %c0_3] : memref<16x256xbf16, #tpu.memory_space<vmem>>, vector<16x256xbf16>
    %c0_4 = arith.constant 0 : index
    %c0_5 = arith.constant 0 : index
    %5 = vector.load %arg4[%c0_4, %c0_5] : memref<256x128xbf16, #tpu.memory_space<vmem>>, vector<256x128xbf16>
    %cst = arith.constant dense<0.000000e+00> : vector<16x128xf32>
    %6 = tpu.matmul %4, %5, %cst {dimension_numbers = #tpu.dot_dimension_numbers<[1], [0], [0], [1], [0, 0, 1, 1], [], []>} : vector<16x256xbf16>, vector<256x128xbf16>, vector<16x128xf32> -> vector<16x128xf32>
    %7 = arith.addf %3, %6 : vector<16x128xf32>
    %c0_6 = arith.constant 0 : index
    %c0_7 = arith.constant 0 : index
    %8 = vector.load %arg8[%c0_6, %c0_7] : memref<16x128xf32, #tpu.memory_space<vmem>>, vector<16x128xf32>
    tpu.vector_store %arg8[%c0_6, %c0_7], %7 {strides = array<i32>} : memref<16x128xf32, #tpu.memory_space<vmem>>, vector<16x128xf32>,
    %c0_i32_8 = arith.constant 0 : i32
    %9 = arith.cmpi eq, %arg2, %c0_i32_8 : i32
    %10 = arith.extui %9 : i1 to i32
    %c0_i32_9 = arith.constant 0 : i32
    %11 = arith.cmpi ne, %10, %c0_i32_9 : i32
    scf.if %11 {
      %c0_10 = arith.constant 0 : index
      %c0_11 = arith.constant 0 : index
      %12 = vector.load %arg8[%c0_10, %c0_11] : memref<16x128xf32, #tpu.memory_space<vmem>>, vector<16x128xf32>
      %c0_12 = arith.constant 0 : index
      %c0_13 = arith.constant 0 : index
      %13 = vector.load %arg5[%c0_12, %c0_13] : memref<16x128xf32, #tpu.memory_space<vmem>>, vector<16x128xf32>
      tpu.vector_store %arg5[%c0_12, %c0_13], %12 {strides = array<i32>} : memref<16x128xf32, #tpu.memory_space<vmem>>, vector<16x128xf32>,
      %14 = vector.extract_strided_slice %12 {offsets = [0, 0], sizes = [8, 128], strides = [1, 1]} : vector<16x128xf32> to vector<8x128xf32>
      %15 = vector.extract_strided_slice %12 {offsets = [8, 0], sizes = [8, 128], strides = [1, 1]} : vector<16x128xf32> to vector<8x128xf32>
      %16 = arith.addf %14, %15 : vector<8x128xf32>
      %c0_14 = arith.constant 0 : index
      %c0_15 = arith.constant 0 : index
      %17 = vector.load %arg6[%c0_14, %c0_15] : memref<8x128xf32, #tpu.memory_space<vmem>>, vector<8x128xf32>
      tpu.vector_store %arg6[%c0_14, %c0_15], %16 {strides = array<i32>} : memref<8x128xf32, #tpu.memory_space<vmem>>, vector<8x128xf32>,
      %18 = arith.mulf %12, %12 : vector<16x128xf32>
      %19 = vector.extract_strided_slice %18 {offsets = [0, 0], sizes = [8, 128], strides = [1, 1]} : vector<16x128xf32> to vector<8x128xf32>
      %20 = vector.extract_strided_slice %18 {offsets = [8, 0], sizes = [8, 128], strides = [1, 1]} : vector<16x128xf32> to vector<8x128xf32>
      %21 = arith.addf %19, %20 : vector<8x128xf32>
      %c0_16 = arith.constant 0 : index
      %c0_17 = arith.constant 0 : index
      %22 = vector.load %arg7[%c0_16, %c0_17] : memref<8x128xf32, #tpu.memory_space<vmem>>, vector<8x128xf32>
      tpu.vector_store %arg7[%c0_16, %c0_17], %21 {strides = array<i32>} : memref<8x128xf32, #tpu.memory_space<vmem>>, vector<8x128xf32>,
    } else {
    }
    return
  }
  func.func @transform_0(%arg0: i32, %arg1: i32, %arg2: i32) -> (i32, i32) {
    %c0_i32 = arith.constant 0 : i32
    return %arg1, %arg2 : i32, i32
  }
  func.func @transform_1(%arg0: i32, %arg1: i32, %arg2: i32) -> (i32, i32) {
    %c0_i32 = arith.constant 0 : i32
    return %arg2, %arg0 : i32, i32
  }
  func.func @transform_2(%arg0: i32, %arg1: i32, %arg2: i32) -> (i32, i32) {
    %c0_i32 = arith.constant 0 : i32
    return %arg1, %arg0 : i32, i32
  }
  func.func @transform_3(%arg0: i32, %arg1: i32, %arg2: i32) -> (i32, i32) {
    %c0_i32 = arith.constant 0 : i32
    return %arg1, %arg0 : i32, i32
  }
  func.func @transform_4(%arg0: i32, %arg1: i32, %arg2: i32) -> (i32, i32) {
    %c0_i32 = arith.constant 0 : i32
    return %arg1, %arg0 : i32, i32
  }
}

module attributes {stable_mosaic.version = 11 : i64} {
  func.func @kernel(%arg0: i32, %arg1: i32, %arg2: memref<16x128xf32, #tpu.memory_space<vmem>>, %arg3: memref<1x128xf32, #tpu.memory_space<vmem>>, %arg4: memref<1x128xf32, #tpu.memory_space<vmem>>, %arg5: memref<16x128xbf16, #tpu.memory_space<vmem>>) attributes {dimension_semantics = [#tpu.dimension_semantics<parallel>, #tpu.dimension_semantics<parallel>], iteration_bounds = array<i64: 1, 1>, scalar_prefetch = 0 : i64, scratch_operands = 0 : i64, tpu.core_type = #tpu.core_type<tc>, window_params = [{transform_indices = @transform_0, window_bounds = array<i64: 16, 128>}, {transform_indices = @transform_1, window_bounds = array<i64: 1, 128>}, {transform_indices = @transform_2, window_bounds = array<i64: 1, 128>}, {transform_indices = @transform_3, window_bounds = array<i64: 16, 128>}]} {
    %c0 = arith.constant 0 : index
    %c0_0 = arith.constant 0 : index
    %0 = vector.load %arg2[%c0, %c0_0] : memref<16x128xf32, #tpu.memory_space<vmem>>, vector<16x128xf32>
    %c0_1 = arith.constant 0 : index
    %c0_2 = arith.constant 0 : index
    %1 = vector.load %arg3[%c0_1, %c0_2] : memref<1x128xf32, #tpu.memory_space<vmem>>, vector<1x128xf32>
    %2 = vector.broadcast %1 : vector<1x128xf32> to vector<16x128xf32>
    %3 = arith.mulf %0, %2 : vector<16x128xf32>
    %c0_3 = arith.constant 0 : index
    %c0_4 = arith.constant 0 : index
    %4 = vector.load %arg4[%c0_3, %c0_4] : memref<1x128xf32, #tpu.memory_space<vmem>>, vector<1x128xf32>
    %5 = vector.broadcast %4 : vector<1x128xf32> to vector<16x128xf32>
    %6 = arith.addf %3, %5 : vector<16x128xf32>
    %cst = arith.constant 0.000000e+00 : f32
    %7 = vector.broadcast %cst : f32 to vector<16x128xf32>
    %8 = arith.cmpf oge, %6, %7 : vector<16x128xf32>
    %cst_5 = arith.constant 2.000000e-01 : f32
    %9 = vector.broadcast %cst_5 : f32 to vector<16x128xf32>
    %10 = arith.mulf %9, %6 : vector<16x128xf32>
    %11 = arith.select %8, %6, %10 : vector<16x128xi1>, vector<16x128xf32>
    %12 = arith.truncf %11 : vector<16x128xf32> to vector<16x128xbf16>
    %c0_6 = arith.constant 0 : index
    %c0_7 = arith.constant 0 : index
    %13 = vector.load %arg5[%c0_6, %c0_7] : memref<16x128xbf16, #tpu.memory_space<vmem>>, vector<16x128xbf16>
    tpu.vector_store %arg5[%c0_6, %c0_7], %12 {strides = array<i32>} : memref<16x128xbf16, #tpu.memory_space<vmem>>, vector<16x128xbf16>,
    return
  }
  func.func @transform_0(%arg0: i32, %arg1: i32) -> (i32, i32) {
    %c0_i32 = arith.constant 0 : i32
    return %arg0, %arg1 : i32, i32
  }
  func.func @transform_1(%arg0: i32, %arg1: i32) -> (i32, i32) {
    %c0_i32 = arith.constant 0 : i32
    %c0_i32_0 = arith.constant 0 : i32
    return %c0_i32, %arg1 : i32, i32
  }
  func.func @transform_2(%arg0: i32, %arg1: i32) -> (i32, i32) {
    %c0_i32 = arith.constant 0 : i32
    %c0_i32_0 = arith.constant 0 : i32
    return %c0_i32, %arg1 : i32, i32
  }
  func.func @transform_3(%arg0: i32, %arg1: i32) -> (i32, i32) {
    %c0_i32 = arith.constant 0 : i32
    return %arg0, %arg1 : i32, i32
  }
}

module attributes {stable_mosaic.version = 11 : i64} {
  func.func @kernel(%arg0: i32, %arg1: i32, %arg2: i32, %arg3: memref<16x512xbf16, #tpu.memory_space<vmem>>, %arg4: memref<512x128xbf16, #tpu.memory_space<vmem>>, %arg5: memref<16x128xf32, #tpu.memory_space<vmem>>, %arg6: memref<8x128xf32, #tpu.memory_space<vmem>>, %arg7: memref<8x128xf32, #tpu.memory_space<vmem>>, %arg8: memref<16x128xf32, #tpu.memory_space<vmem>>) attributes {dimension_semantics = [#tpu.dimension_semantics<parallel>, #tpu.dimension_semantics<parallel>, #tpu.dimension_semantics<arbitrary>], iteration_bounds = array<i64: 1, 1, 1>, scalar_prefetch = 0 : i64, scratch_operands = 1 : i64, tpu.core_type = #tpu.core_type<tc>, window_params = [{transform_indices = @transform_0, window_bounds = array<i64: 16, 512>}, {transform_indices = @transform_1, window_bounds = array<i64: 512, 128>}, {transform_indices = @transform_2, window_bounds = array<i64: 16, 128>}, {transform_indices = @transform_3, window_bounds = array<i64: 8, 128>}, {transform_indices = @transform_4, window_bounds = array<i64: 8, 128>}]} {
    %c0_i32 = arith.constant 0 : i32
    %0 = arith.cmpi eq, %arg2, %c0_i32 : i32
    %1 = arith.extui %0 : i1 to i32
    %c0_i32_0 = arith.constant 0 : i32
    %2 = arith.cmpi ne, %1, %c0_i32_0 : i32
    scf.if %2 {
      %cst_10 = arith.constant 0.000000e+00 : f32
      %12 = vector.broadcast %cst_10 : f32 to vector<16x128xf32>
      %c0_11 = arith.constant 0 : index
      %c0_12 = arith.constant 0 : index
      %13 = vector.load %arg8[%c0_11, %c0_12] : memref<16x128xf32, #tpu.memory_space<vmem>>, vector<16x128xf32>
      tpu.vector_store %arg8[%c0_11, %c0_12], %12 {strides = array<i32>} : memref<16x128xf32, #tpu.memory_space<vmem>>, vector<16x128xf32>,
    } else {
    }
    %c0 = arith.constant 0 : index
    %c0_1 = arith.constant 0 : index
    %3 = vector.load %arg8[%c0, %c0_1] : memref<16x128xf32, #tpu.memory_space<vmem>>, vector<16x128xf32>
    %c0_2 = arith.constant 0 : index
    %c0_3 = arith.constant 0 : index
    %4 = vector.load %arg3[%c0_2, %c0_3] : memref<16x512xbf16, #tpu.memory_space<vmem>>, vector<16x512xbf16>
    %c0_4 = arith.constant 0 : index
    %c0_5 = arith.constant 0 : index
    %5 = vector.load %arg4[%c0_4, %c0_5] : memref<512x128xbf16, #tpu.memory_space<vmem>>, vector<512x128xbf16>
    %cst = arith.constant dense<0.000000e+00> : vector<16x128xf32>
    %6 = tpu.matmul %4, %5, %cst {dimension_numbers = #tpu.dot_dimension_numbers<[1], [0], [0], [1], [0, 0, 1, 1], [], []>} : vector<16x512xbf16>, vector<512x128xbf16>, vector<16x128xf32> -> vector<16x128xf32>
    %7 = arith.addf %3, %6 : vector<16x128xf32>
    %c0_6 = arith.constant 0 : index
    %c0_7 = arith.constant 0 : index
    %8 = vector.load %arg8[%c0_6, %c0_7] : memref<16x128xf32, #tpu.memory_space<vmem>>, vector<16x128xf32>
    tpu.vector_store %arg8[%c0_6, %c0_7], %7 {strides = array<i32>} : memref<16x128xf32, #tpu.memory_space<vmem>>, vector<16x128xf32>,
    %c0_i32_8 = arith.constant 0 : i32
    %9 = arith.cmpi eq, %arg2, %c0_i32_8 : i32
    %10 = arith.extui %9 : i1 to i32
    %c0_i32_9 = arith.constant 0 : i32
    %11 = arith.cmpi ne, %10, %c0_i32_9 : i32
    scf.if %11 {
      %c0_10 = arith.constant 0 : index
      %c0_11 = arith.constant 0 : index
      %12 = vector.load %arg8[%c0_10, %c0_11] : memref<16x128xf32, #tpu.memory_space<vmem>>, vector<16x128xf32>
      %c0_12 = arith.constant 0 : index
      %c0_13 = arith.constant 0 : index
      %13 = vector.load %arg5[%c0_12, %c0_13] : memref<16x128xf32, #tpu.memory_space<vmem>>, vector<16x128xf32>
      tpu.vector_store %arg5[%c0_12, %c0_13], %12 {strides = array<i32>} : memref<16x128xf32, #tpu.memory_space<vmem>>, vector<16x128xf32>,
      %14 = vector.extract_strided_slice %12 {offsets = [0, 0], sizes = [8, 128], strides = [1, 1]} : vector<16x128xf32> to vector<8x128xf32>
      %15 = vector.extract_strided_slice %12 {offsets = [8, 0], sizes = [8, 128], strides = [1, 1]} : vector<16x128xf32> to vector<8x128xf32>
      %16 = arith.addf %14, %15 : vector<8x128xf32>
      %c0_14 = arith.constant 0 : index
      %c0_15 = arith.constant 0 : index
      %17 = vector.load %arg6[%c0_14, %c0_15] : memref<8x128xf32, #tpu.memory_space<vmem>>, vector<8x128xf32>
      tpu.vector_store %arg6[%c0_14, %c0_15], %16 {strides = array<i32>} : memref<8x128xf32, #tpu.memory_space<vmem>>, vector<8x128xf32>,
      %18 = arith.mulf %12, %12 : vector<16x128xf32>
      %19 = vector.extract_strided_slice %18 {offsets = [0, 0], sizes = [8, 128], strides = [1, 1]} : vector<16x128xf32> to vector<8x128xf32>
      %20 = vector.extract_strided_slice %18 {offsets = [8, 0], sizes = [8, 128], strides = [1, 1]} : vector<16x128xf32> to vector<8x128xf32>
      %21 = arith.addf %19, %20 : vector<8x128xf32>
      %c0_16 = arith.constant 0 : index
      %c0_17 = arith.constant 0 : index
      %22 = vector.load %arg7[%c0_16, %c0_17] : memref<8x128xf32, #tpu.memory_space<vmem>>, vector<8x128xf32>
      tpu.vector_store %arg7[%c0_16, %c0_17], %21 {strides = array<i32>} : memref<8x128xf32, #tpu.memory_space<vmem>>, vector<8x128xf32>,
    } else {
    }
    return
  }
  func.func @transform_0(%arg0: i32, %arg1: i32, %arg2: i32) -> (i32, i32) {
    %c0_i32 = arith.constant 0 : i32
    return %arg1, %arg2 : i32, i32
  }
  func.func @transform_1(%arg0: i32, %arg1: i32, %arg2: i32) -> (i32, i32) {
    %c0_i32 = arith.constant 0 : i32
    return %arg2, %arg0 : i32, i32
  }
  func.func @transform_2(%arg0: i32, %arg1: i32, %arg2: i32) -> (i32, i32) {
    %c0_i32 = arith.constant 0 : i32
    return %arg1, %arg0 : i32, i32
  }
  func.func @transform_3(%arg0: i32, %arg1: i32, %arg2: i32) -> (i32, i32) {
    %c0_i32 = arith.constant 0 : i32
    return %arg1, %arg0 : i32, i32
  }
  func.func @transform_4(%arg0: i32, %arg1: i32, %arg2: i32) -> (i32, i32) {
    %c0_i32 = arith.constant 0 : i32
    return %arg1, %arg0 : i32, i32
  }
}

module attributes {stable_mosaic.version = 11 : i64} {
  func.func @kernel(%arg0: i32, %arg1: i32, %arg2: i32, %arg3: memref<16x384xbf16, #tpu.memory_space<vmem>>, %arg4: memref<384x128xbf16, #tpu.memory_space<vmem>>, %arg5: memref<16x128xf32, #tpu.memory_space<vmem>>, %arg6: memref<8x128xf32, #tpu.memory_space<vmem>>, %arg7: memref<8x128xf32, #tpu.memory_space<vmem>>, %arg8: memref<16x128xf32, #tpu.memory_space<vmem>>) attributes {dimension_semantics = [#tpu.dimension_semantics<parallel>, #tpu.dimension_semantics<parallel>, #tpu.dimension_semantics<arbitrary>], iteration_bounds = array<i64: 1, 1, 3>, scalar_prefetch = 0 : i64, scratch_operands = 1 : i64, tpu.core_type = #tpu.core_type<tc>, window_params = [{transform_indices = @transform_0, window_bounds = array<i64: 16, 384>}, {transform_indices = @transform_1, window_bounds = array<i64: 384, 128>}, {transform_indices = @transform_2, window_bounds = array<i64: 16, 128>}, {transform_indices = @transform_3, window_bounds = array<i64: 8, 128>}, {transform_indices = @transform_4, window_bounds = array<i64: 8, 128>}]} {
    %c0_i32 = arith.constant 0 : i32
    %0 = arith.cmpi eq, %arg2, %c0_i32 : i32
    %1 = arith.extui %0 : i1 to i32
    %c0_i32_0 = arith.constant 0 : i32
    %2 = arith.cmpi ne, %1, %c0_i32_0 : i32
    scf.if %2 {
      %cst_9 = arith.constant 0.000000e+00 : f32
      %12 = vector.broadcast %cst_9 : f32 to vector<16x128xf32>
      %c0_10 = arith.constant 0 : index
      %c0_11 = arith.constant 0 : index
      %13 = vector.load %arg8[%c0_10, %c0_11] : memref<16x128xf32, #tpu.memory_space<vmem>>, vector<16x128xf32>
      tpu.vector_store %arg8[%c0_10, %c0_11], %12 {strides = array<i32>} : memref<16x128xf32, #tpu.memory_space<vmem>>, vector<16x128xf32>,
    } else {
    }
    %c0 = arith.constant 0 : index
    %c0_1 = arith.constant 0 : index
    %3 = vector.load %arg8[%c0, %c0_1] : memref<16x128xf32, #tpu.memory_space<vmem>>, vector<16x128xf32>
    %c0_2 = arith.constant 0 : index
    %c0_3 = arith.constant 0 : index
    %4 = vector.load %arg3[%c0_2, %c0_3] : memref<16x384xbf16, #tpu.memory_space<vmem>>, vector<16x384xbf16>
    %c0_4 = arith.constant 0 : index
    %c0_5 = arith.constant 0 : index
    %5 = vector.load %arg4[%c0_4, %c0_5] : memref<384x128xbf16, #tpu.memory_space<vmem>>, vector<384x128xbf16>
    %cst = arith.constant dense<0.000000e+00> : vector<16x128xf32>
    %6 = tpu.matmul %4, %5, %cst {dimension_numbers = #tpu.dot_dimension_numbers<[1], [0], [0], [1], [0, 0, 1, 1], [], []>} : vector<16x384xbf16>, vector<384x128xbf16>, vector<16x128xf32> -> vector<16x128xf32>
    %7 = arith.addf %3, %6 : vector<16x128xf32>
    %c0_6 = arith.constant 0 : index
    %c0_7 = arith.constant 0 : index
    %8 = vector.load %arg8[%c0_6, %c0_7] : memref<16x128xf32, #tpu.memory_space<vmem>>, vector<16x128xf32>
    tpu.vector_store %arg8[%c0_6, %c0_7], %7 {strides = array<i32>} : memref<16x128xf32, #tpu.memory_space<vmem>>, vector<16x128xf32>,
    %c2_i32 = arith.constant 2 : i32
    %9 = arith.cmpi eq, %arg2, %c2_i32 : i32
    %10 = arith.extui %9 : i1 to i32
    %c0_i32_8 = arith.constant 0 : i32
    %11 = arith.cmpi ne, %10, %c0_i32_8 : i32
    scf.if %11 {
      %c0_9 = arith.constant 0 : index
      %c0_10 = arith.constant 0 : index
      %12 = vector.load %arg8[%c0_9, %c0_10] : memref<16x128xf32, #tpu.memory_space<vmem>>, vector<16x128xf32>
      %c0_11 = arith.constant 0 : index
      %c0_12 = arith.constant 0 : index
      %13 = vector.load %arg5[%c0_11, %c0_12] : memref<16x128xf32, #tpu.memory_space<vmem>>, vector<16x128xf32>
      tpu.vector_store %arg5[%c0_11, %c0_12], %12 {strides = array<i32>} : memref<16x128xf32, #tpu.memory_space<vmem>>, vector<16x128xf32>,
      %14 = vector.extract_strided_slice %12 {offsets = [0, 0], sizes = [8, 128], strides = [1, 1]} : vector<16x128xf32> to vector<8x128xf32>
      %15 = vector.extract_strided_slice %12 {offsets = [8, 0], sizes = [8, 128], strides = [1, 1]} : vector<16x128xf32> to vector<8x128xf32>
      %16 = arith.addf %14, %15 : vector<8x128xf32>
      %c0_13 = arith.constant 0 : index
      %c0_14 = arith.constant 0 : index
      %17 = vector.load %arg6[%c0_13, %c0_14] : memref<8x128xf32, #tpu.memory_space<vmem>>, vector<8x128xf32>
      tpu.vector_store %arg6[%c0_13, %c0_14], %16 {strides = array<i32>} : memref<8x128xf32, #tpu.memory_space<vmem>>, vector<8x128xf32>,
      %18 = arith.mulf %12, %12 : vector<16x128xf32>
      %19 = vector.extract_strided_slice %18 {offsets = [0, 0], sizes = [8, 128], strides = [1, 1]} : vector<16x128xf32> to vector<8x128xf32>
      %20 = vector.extract_strided_slice %18 {offsets = [8, 0], sizes = [8, 128], strides = [1, 1]} : vector<16x128xf32> to vector<8x128xf32>
      %21 = arith.addf %19, %20 : vector<8x128xf32>
      %c0_15 = arith.constant 0 : index
      %c0_16 = arith.constant 0 : index
      %22 = vector.load %arg7[%c0_15, %c0_16] : memref<8x128xf32, #tpu.memory_space<vmem>>, vector<8x128xf32>
      tpu.vector_store %arg7[%c0_15, %c0_16], %21 {strides = array<i32>} : memref<8x128xf32, #tpu.memory_space<vmem>>, vector<8x128xf32>,
    } else {
    }
    return
  }
  func.func @transform_0(%arg0: i32, %arg1: i32, %arg2: i32) -> (i32, i32) {
    %c0_i32 = arith.constant 0 : i32
    return %arg1, %arg2 : i32, i32
  }
  func.func @transform_1(%arg0: i32, %arg1: i32, %arg2: i32) -> (i32, i32) {
    %c0_i32 = arith.constant 0 : i32
    return %arg2, %arg0 : i32, i32
  }
  func.func @transform_2(%arg0: i32, %arg1: i32, %arg2: i32) -> (i32, i32) {
    %c0_i32 = arith.constant 0 : i32
    return %arg1, %arg0 : i32, i32
  }
  func.func @transform_3(%arg0: i32, %arg1: i32, %arg2: i32) -> (i32, i32) {
    %c0_i32 = arith.constant 0 : i32
    return %arg1, %arg0 : i32, i32
  }
  func.func @transform_4(%arg0: i32, %arg1: i32, %arg2: i32) -> (i32, i32) {
    %c0_i32 = arith.constant 0 : i32
    return %arg1, %arg0 : i32, i32
  }
}

module attributes {stable_mosaic.version = 11 : i64} {
  func.func @kernel(%arg0: i32, %arg1: i32, %arg2: memref<16x128xf32, #tpu.memory_space<vmem>>, %arg3: memref<1x128xf32, #tpu.memory_space<vmem>>, %arg4: memref<1x128xf32, #tpu.memory_space<vmem>>, %arg5: memref<16x128xbf16, #tpu.memory_space<vmem>>) attributes {dimension_semantics = [#tpu.dimension_semantics<parallel>, #tpu.dimension_semantics<parallel>], iteration_bounds = array<i64: 1, 1>, scalar_prefetch = 0 : i64, scratch_operands = 0 : i64, tpu.core_type = #tpu.core_type<tc>, window_params = [{transform_indices = @transform_0, window_bounds = array<i64: 16, 128>}, {transform_indices = @transform_1, window_bounds = array<i64: 1, 128>}, {transform_indices = @transform_2, window_bounds = array<i64: 1, 128>}, {transform_indices = @transform_3, window_bounds = array<i64: 16, 128>}]} {
    %c0 = arith.constant 0 : index
    %c0_0 = arith.constant 0 : index
    %0 = vector.load %arg2[%c0, %c0_0] : memref<16x128xf32, #tpu.memory_space<vmem>>, vector<16x128xf32>
    %c0_1 = arith.constant 0 : index
    %c0_2 = arith.constant 0 : index
    %1 = vector.load %arg3[%c0_1, %c0_2] : memref<1x128xf32, #tpu.memory_space<vmem>>, vector<1x128xf32>
    %2 = vector.broadcast %1 : vector<1x128xf32> to vector<16x128xf32>
    %3 = arith.mulf %0, %2 : vector<16x128xf32>
    %c0_3 = arith.constant 0 : index
    %c0_4 = arith.constant 0 : index
    %4 = vector.load %arg4[%c0_3, %c0_4] : memref<1x128xf32, #tpu.memory_space<vmem>>, vector<1x128xf32>
    %5 = vector.broadcast %4 : vector<1x128xf32> to vector<16x128xf32>
    %6 = arith.addf %3, %5 : vector<16x128xf32>
    %cst = arith.constant 0.000000e+00 : f32
    %7 = vector.broadcast %cst : f32 to vector<16x128xf32>
    %8 = arith.maximumf %6, %7 : vector<16x128xf32>
    %9 = arith.truncf %8 : vector<16x128xf32> to vector<16x128xbf16>
    %c0_5 = arith.constant 0 : index
    %c0_6 = arith.constant 0 : index
    %10 = vector.load %arg5[%c0_5, %c0_6] : memref<16x128xbf16, #tpu.memory_space<vmem>>, vector<16x128xbf16>
    tpu.vector_store %arg5[%c0_5, %c0_6], %9 {strides = array<i32>} : memref<16x128xbf16, #tpu.memory_space<vmem>>, vector<16x128xbf16>,
    return
  }
  func.func @transform_0(%arg0: i32, %arg1: i32) -> (i32, i32) {
    %c0_i32 = arith.constant 0 : i32
    return %arg0, %arg1 : i32, i32
  }
  func.func @transform_1(%arg0: i32, %arg1: i32) -> (i32, i32) {
    %c0_i32 = arith.constant 0 : i32
    %c0_i32_0 = arith.constant 0 : i32
    return %c0_i32, %arg1 : i32, i32
  }
  func.func @transform_2(%arg0: i32, %arg1: i32) -> (i32, i32) {
    %c0_i32 = arith.constant 0 : i32
    %c0_i32_0 = arith.constant 0 : i32
    return %c0_i32, %arg1 : i32, i32
  }
  func.func @transform_3(%arg0: i32, %arg1: i32) -> (i32, i32) {
    %c0_i32 = arith.constant 0 : i32
    return %arg0, %arg1 : i32, i32
  }
}

module attributes {stable_mosaic.version = 11 : i64} {
  func.func @kernel(%arg0: i32, %arg1: i32, %arg2: i32, %arg3: memref<16x128xbf16, #tpu.memory_space<vmem>>, %arg4: memref<128x128xbf16, #tpu.memory_space<vmem>>, %arg5: memref<16x128xf32, #tpu.memory_space<vmem>>, %arg6: memref<8x128xf32, #tpu.memory_space<vmem>>, %arg7: memref<8x128xf32, #tpu.memory_space<vmem>>, %arg8: memref<16x128xf32, #tpu.memory_space<vmem>>) attributes {dimension_semantics = [#tpu.dimension_semantics<parallel>, #tpu.dimension_semantics<parallel>, #tpu.dimension_semantics<arbitrary>], iteration_bounds = array<i64: 1, 1, 5>, scalar_prefetch = 0 : i64, scratch_operands = 1 : i64, tpu.core_type = #tpu.core_type<tc>, window_params = [{transform_indices = @transform_0, window_bounds = array<i64: 16, 128>}, {transform_indices = @transform_1, window_bounds = array<i64: 128, 128>}, {transform_indices = @transform_2, window_bounds = array<i64: 16, 128>}, {transform_indices = @transform_3, window_bounds = array<i64: 8, 128>}, {transform_indices = @transform_4, window_bounds = array<i64: 8, 128>}]} {
    %c0_i32 = arith.constant 0 : i32
    %0 = arith.cmpi eq, %arg2, %c0_i32 : i32
    %1 = arith.extui %0 : i1 to i32
    %c0_i32_0 = arith.constant 0 : i32
    %2 = arith.cmpi ne, %1, %c0_i32_0 : i32
    scf.if %2 {
      %cst_9 = arith.constant 0.000000e+00 : f32
      %12 = vector.broadcast %cst_9 : f32 to vector<16x128xf32>
      %c0_10 = arith.constant 0 : index
      %c0_11 = arith.constant 0 : index
      %13 = vector.load %arg8[%c0_10, %c0_11] : memref<16x128xf32, #tpu.memory_space<vmem>>, vector<16x128xf32>
      tpu.vector_store %arg8[%c0_10, %c0_11], %12 {strides = array<i32>} : memref<16x128xf32, #tpu.memory_space<vmem>>, vector<16x128xf32>,
    } else {
    }
    %c0 = arith.constant 0 : index
    %c0_1 = arith.constant 0 : index
    %3 = vector.load %arg8[%c0, %c0_1] : memref<16x128xf32, #tpu.memory_space<vmem>>, vector<16x128xf32>
    %c0_2 = arith.constant 0 : index
    %c0_3 = arith.constant 0 : index
    %4 = vector.load %arg3[%c0_2, %c0_3] : memref<16x128xbf16, #tpu.memory_space<vmem>>, vector<16x128xbf16>
    %c0_4 = arith.constant 0 : index
    %c0_5 = arith.constant 0 : index
    %5 = vector.load %arg4[%c0_4, %c0_5] : memref<128x128xbf16, #tpu.memory_space<vmem>>, vector<128x128xbf16>
    %cst = arith.constant dense<0.000000e+00> : vector<16x128xf32>
    %6 = tpu.matmul %4, %5, %cst {dimension_numbers = #tpu.dot_dimension_numbers<[1], [0], [0], [1], [0, 0, 1, 1], [], []>} : vector<16x128xbf16>, vector<128x128xbf16>, vector<16x128xf32> -> vector<16x128xf32>
    %7 = arith.addf %3, %6 : vector<16x128xf32>
    %c0_6 = arith.constant 0 : index
    %c0_7 = arith.constant 0 : index
    %8 = vector.load %arg8[%c0_6, %c0_7] : memref<16x128xf32, #tpu.memory_space<vmem>>, vector<16x128xf32>
    tpu.vector_store %arg8[%c0_6, %c0_7], %7 {strides = array<i32>} : memref<16x128xf32, #tpu.memory_space<vmem>>, vector<16x128xf32>,
    %c4_i32 = arith.constant 4 : i32
    %9 = arith.cmpi eq, %arg2, %c4_i32 : i32
    %10 = arith.extui %9 : i1 to i32
    %c0_i32_8 = arith.constant 0 : i32
    %11 = arith.cmpi ne, %10, %c0_i32_8 : i32
    scf.if %11 {
      %c0_9 = arith.constant 0 : index
      %c0_10 = arith.constant 0 : index
      %12 = vector.load %arg8[%c0_9, %c0_10] : memref<16x128xf32, #tpu.memory_space<vmem>>, vector<16x128xf32>
      %c0_11 = arith.constant 0 : index
      %c0_12 = arith.constant 0 : index
      %13 = vector.load %arg5[%c0_11, %c0_12] : memref<16x128xf32, #tpu.memory_space<vmem>>, vector<16x128xf32>
      tpu.vector_store %arg5[%c0_11, %c0_12], %12 {strides = array<i32>} : memref<16x128xf32, #tpu.memory_space<vmem>>, vector<16x128xf32>,
      %14 = vector.extract_strided_slice %12 {offsets = [0, 0], sizes = [8, 128], strides = [1, 1]} : vector<16x128xf32> to vector<8x128xf32>
      %15 = vector.extract_strided_slice %12 {offsets = [8, 0], sizes = [8, 128], strides = [1, 1]} : vector<16x128xf32> to vector<8x128xf32>
      %16 = arith.addf %14, %15 : vector<8x128xf32>
      %c0_13 = arith.constant 0 : index
      %c0_14 = arith.constant 0 : index
      %17 = vector.load %arg6[%c0_13, %c0_14] : memref<8x128xf32, #tpu.memory_space<vmem>>, vector<8x128xf32>
      tpu.vector_store %arg6[%c0_13, %c0_14], %16 {strides = array<i32>} : memref<8x128xf32, #tpu.memory_space<vmem>>, vector<8x128xf32>,
      %18 = arith.mulf %12, %12 : vector<16x128xf32>
      %19 = vector.extract_strided_slice %18 {offsets = [0, 0], sizes = [8, 128], strides = [1, 1]} : vector<16x128xf32> to vector<8x128xf32>
      %20 = vector.extract_strided_slice %18 {offsets = [8, 0], sizes = [8, 128], strides = [1, 1]} : vector<16x128xf32> to vector<8x128xf32>
      %21 = arith.addf %19, %20 : vector<8x128xf32>
      %c0_15 = arith.constant 0 : index
      %c0_16 = arith.constant 0 : index
      %22 = vector.load %arg7[%c0_15, %c0_16] : memref<8x128xf32, #tpu.memory_space<vmem>>, vector<8x128xf32>
      tpu.vector_store %arg7[%c0_15, %c0_16], %21 {strides = array<i32>} : memref<8x128xf32, #tpu.memory_space<vmem>>, vector<8x128xf32>,
    } else {
    }
    return
  }
  func.func @transform_0(%arg0: i32, %arg1: i32, %arg2: i32) -> (i32, i32) {
    %c0_i32 = arith.constant 0 : i32
    return %arg1, %arg2 : i32, i32
  }
  func.func @transform_1(%arg0: i32, %arg1: i32, %arg2: i32) -> (i32, i32) {
    %c0_i32 = arith.constant 0 : i32
    return %arg2, %arg0 : i32, i32
  }
  func.func @transform_2(%arg0: i32, %arg1: i32, %arg2: i32) -> (i32, i32) {
    %c0_i32 = arith.constant 0 : i32
    return %arg1, %arg0 : i32, i32
  }
  func.func @transform_3(%arg0: i32, %arg1: i32, %arg2: i32) -> (i32, i32) {
    %c0_i32 = arith.constant 0 : i32
    return %arg1, %arg0 : i32, i32
  }
  func.func @transform_4(%arg0: i32, %arg1: i32, %arg2: i32) -> (i32, i32) {
    %c0_i32 = arith.constant 0 : i32
    return %arg1, %arg0 : i32, i32
  }
}

module attributes {stable_mosaic.version = 11 : i64} {
  func.func @kernel(%arg0: i32, %arg1: i32, %arg2: i32, %arg3: memref<32x384xbf16, #tpu.memory_space<vmem>>, %arg4: memref<384x128xbf16, #tpu.memory_space<vmem>>, %arg5: memref<32x128xf32, #tpu.memory_space<vmem>>, %arg6: memref<8x128xf32, #tpu.memory_space<vmem>>, %arg7: memref<8x128xf32, #tpu.memory_space<vmem>>, %arg8: memref<32x128xf32, #tpu.memory_space<vmem>>) attributes {dimension_semantics = [#tpu.dimension_semantics<parallel>, #tpu.dimension_semantics<parallel>, #tpu.dimension_semantics<arbitrary>], iteration_bounds = array<i64: 1, 1, 1>, scalar_prefetch = 0 : i64, scratch_operands = 1 : i64, tpu.core_type = #tpu.core_type<tc>, window_params = [{transform_indices = @transform_0, window_bounds = array<i64: 32, 384>}, {transform_indices = @transform_1, window_bounds = array<i64: 384, 128>}, {transform_indices = @transform_2, window_bounds = array<i64: 32, 128>}, {transform_indices = @transform_3, window_bounds = array<i64: 8, 128>}, {transform_indices = @transform_4, window_bounds = array<i64: 8, 128>}]} {
    %c0_i32 = arith.constant 0 : i32
    %0 = arith.cmpi eq, %arg2, %c0_i32 : i32
    %1 = arith.extui %0 : i1 to i32
    %c0_i32_0 = arith.constant 0 : i32
    %2 = arith.cmpi ne, %1, %c0_i32_0 : i32
    scf.if %2 {
      %cst_10 = arith.constant 0.000000e+00 : f32
      %12 = vector.broadcast %cst_10 : f32 to vector<32x128xf32>
      %c0_11 = arith.constant 0 : index
      %c0_12 = arith.constant 0 : index
      %13 = vector.load %arg8[%c0_11, %c0_12] : memref<32x128xf32, #tpu.memory_space<vmem>>, vector<32x128xf32>
      tpu.vector_store %arg8[%c0_11, %c0_12], %12 {strides = array<i32>} : memref<32x128xf32, #tpu.memory_space<vmem>>, vector<32x128xf32>,
    } else {
    }
    %c0 = arith.constant 0 : index
    %c0_1 = arith.constant 0 : index
    %3 = vector.load %arg8[%c0, %c0_1] : memref<32x128xf32, #tpu.memory_space<vmem>>, vector<32x128xf32>
    %c0_2 = arith.constant 0 : index
    %c0_3 = arith.constant 0 : index
    %4 = vector.load %arg3[%c0_2, %c0_3] : memref<32x384xbf16, #tpu.memory_space<vmem>>, vector<32x384xbf16>
    %c0_4 = arith.constant 0 : index
    %c0_5 = arith.constant 0 : index
    %5 = vector.load %arg4[%c0_4, %c0_5] : memref<384x128xbf16, #tpu.memory_space<vmem>>, vector<384x128xbf16>
    %cst = arith.constant dense<0.000000e+00> : vector<32x128xf32>
    %6 = tpu.matmul %4, %5, %cst {dimension_numbers = #tpu.dot_dimension_numbers<[1], [0], [0], [1], [0, 0, 1, 1], [], []>} : vector<32x384xbf16>, vector<384x128xbf16>, vector<32x128xf32> -> vector<32x128xf32>
    %7 = arith.addf %3, %6 : vector<32x128xf32>
    %c0_6 = arith.constant 0 : index
    %c0_7 = arith.constant 0 : index
    %8 = vector.load %arg8[%c0_6, %c0_7] : memref<32x128xf32, #tpu.memory_space<vmem>>, vector<32x128xf32>
    tpu.vector_store %arg8[%c0_6, %c0_7], %7 {strides = array<i32>} : memref<32x128xf32, #tpu.memory_space<vmem>>, vector<32x128xf32>,
    %c0_i32_8 = arith.constant 0 : i32
    %9 = arith.cmpi eq, %arg2, %c0_i32_8 : i32
    %10 = arith.extui %9 : i1 to i32
    %c0_i32_9 = arith.constant 0 : i32
    %11 = arith.cmpi ne, %10, %c0_i32_9 : i32
    scf.if %11 {
      %c0_10 = arith.constant 0 : index
      %c0_11 = arith.constant 0 : index
      %12 = vector.load %arg8[%c0_10, %c0_11] : memref<32x128xf32, #tpu.memory_space<vmem>>, vector<32x128xf32>
      %c0_12 = arith.constant 0 : index
      %c0_13 = arith.constant 0 : index
      %13 = vector.load %arg5[%c0_12, %c0_13] : memref<32x128xf32, #tpu.memory_space<vmem>>, vector<32x128xf32>
      tpu.vector_store %arg5[%c0_12, %c0_13], %12 {strides = array<i32>} : memref<32x128xf32, #tpu.memory_space<vmem>>, vector<32x128xf32>,
      %14 = vector.extract_strided_slice %12 {offsets = [0, 0], sizes = [8, 128], strides = [1, 1]} : vector<32x128xf32> to vector<8x128xf32>
      %15 = vector.extract_strided_slice %12 {offsets = [8, 0], sizes = [8, 128], strides = [1, 1]} : vector<32x128xf32> to vector<8x128xf32>
      %16 = arith.addf %14, %15 : vector<8x128xf32>
      %17 = vector.extract_strided_slice %12 {offsets = [16, 0], sizes = [8, 128], strides = [1, 1]} : vector<32x128xf32> to vector<8x128xf32>
      %18 = arith.addf %16, %17 : vector<8x128xf32>
      %19 = vector.extract_strided_slice %12 {offsets = [24, 0], sizes = [8, 128], strides = [1, 1]} : vector<32x128xf32> to vector<8x128xf32>
      %20 = arith.addf %18, %19 : vector<8x128xf32>
      %c0_14 = arith.constant 0 : index
      %c0_15 = arith.constant 0 : index
      %21 = vector.load %arg6[%c0_14, %c0_15] : memref<8x128xf32, #tpu.memory_space<vmem>>, vector<8x128xf32>
      tpu.vector_store %arg6[%c0_14, %c0_15], %20 {strides = array<i32>} : memref<8x128xf32, #tpu.memory_space<vmem>>, vector<8x128xf32>,
      %22 = arith.mulf %12, %12 : vector<32x128xf32>
      %23 = vector.extract_strided_slice %22 {offsets = [0, 0], sizes = [8, 128], strides = [1, 1]} : vector<32x128xf32> to vector<8x128xf32>
      %24 = vector.extract_strided_slice %22 {offsets = [8, 0], sizes = [8, 128], strides = [1, 1]} : vector<32x128xf32> to vector<8x128xf32>
      %25 = arith.addf %23, %24 : vector<8x128xf32>
      %26 = vector.extract_strided_slice %22 {offsets = [16, 0], sizes = [8, 128], strides = [1, 1]} : vector<32x128xf32> to vector<8x128xf32>
      %27 = arith.addf %25, %26 : vector<8x128xf32>
      %28 = vector.extract_strided_slice %22 {offsets = [24, 0], sizes = [8, 128], strides = [1, 1]} : vector<32x128xf32> to vector<8x128xf32>
      %29 = arith.addf %27, %28 : vector<8x128xf32>
      %c0_16 = arith.constant 0 : index
      %c0_17 = arith.constant 0 : index
      %30 = vector.load %arg7[%c0_16, %c0_17] : memref<8x128xf32, #tpu.memory_space<vmem>>, vector<8x128xf32>
      tpu.vector_store %arg7[%c0_16, %c0_17], %29 {strides = array<i32>} : memref<8x128xf32, #tpu.memory_space<vmem>>, vector<8x128xf32>,
    } else {
    }
    return
  }
  func.func @transform_0(%arg0: i32, %arg1: i32, %arg2: i32) -> (i32, i32) {
    %c0_i32 = arith.constant 0 : i32
    return %arg1, %arg2 : i32, i32
  }
  func.func @transform_1(%arg0: i32, %arg1: i32, %arg2: i32) -> (i32, i32) {
    %c0_i32 = arith.constant 0 : i32
    return %arg2, %arg0 : i32, i32
  }
  func.func @transform_2(%arg0: i32, %arg1: i32, %arg2: i32) -> (i32, i32) {
    %c0_i32 = arith.constant 0 : i32
    return %arg1, %arg0 : i32, i32
  }
  func.func @transform_3(%arg0: i32, %arg1: i32, %arg2: i32) -> (i32, i32) {
    %c0_i32 = arith.constant 0 : i32
    return %arg1, %arg0 : i32, i32
  }
  func.func @transform_4(%arg0: i32, %arg1: i32, %arg2: i32) -> (i32, i32) {
    %c0_i32 = arith.constant 0 : i32
    return %arg1, %arg0 : i32, i32
  }
}

module attributes {stable_mosaic.version = 11 : i64} {
  func.func @kernel(%arg0: i32, %arg1: i32, %arg2: memref<32x128xf32, #tpu.memory_space<vmem>>, %arg3: memref<1x128xf32, #tpu.memory_space<vmem>>, %arg4: memref<1x128xf32, #tpu.memory_space<vmem>>, %arg5: memref<32x128xbf16, #tpu.memory_space<vmem>>) attributes {dimension_semantics = [#tpu.dimension_semantics<parallel>, #tpu.dimension_semantics<parallel>], iteration_bounds = array<i64: 1, 1>, scalar_prefetch = 0 : i64, scratch_operands = 0 : i64, tpu.core_type = #tpu.core_type<tc>, window_params = [{transform_indices = @transform_0, window_bounds = array<i64: 32, 128>}, {transform_indices = @transform_1, window_bounds = array<i64: 1, 128>}, {transform_indices = @transform_2, window_bounds = array<i64: 1, 128>}, {transform_indices = @transform_3, window_bounds = array<i64: 32, 128>}]} {
    %c0 = arith.constant 0 : index
    %c0_0 = arith.constant 0 : index
    %0 = vector.load %arg2[%c0, %c0_0] : memref<32x128xf32, #tpu.memory_space<vmem>>, vector<32x128xf32>
    %c0_1 = arith.constant 0 : index
    %c0_2 = arith.constant 0 : index
    %1 = vector.load %arg3[%c0_1, %c0_2] : memref<1x128xf32, #tpu.memory_space<vmem>>, vector<1x128xf32>
    %2 = vector.broadcast %1 : vector<1x128xf32> to vector<32x128xf32>
    %3 = arith.mulf %0, %2 : vector<32x128xf32>
    %c0_3 = arith.constant 0 : index
    %c0_4 = arith.constant 0 : index
    %4 = vector.load %arg4[%c0_3, %c0_4] : memref<1x128xf32, #tpu.memory_space<vmem>>, vector<1x128xf32>
    %5 = vector.broadcast %4 : vector<1x128xf32> to vector<32x128xf32>
    %6 = arith.addf %3, %5 : vector<32x128xf32>
    %cst = arith.constant 0.000000e+00 : f32
    %7 = vector.broadcast %cst : f32 to vector<32x128xf32>
    %8 = arith.maximumf %6, %7 : vector<32x128xf32>
    %9 = arith.truncf %8 : vector<32x128xf32> to vector<32x128xbf16>
    %c0_5 = arith.constant 0 : index
    %c0_6 = arith.constant 0 : index
    %10 = vector.load %arg5[%c0_5, %c0_6] : memref<32x128xbf16, #tpu.memory_space<vmem>>, vector<32x128xbf16>
    tpu.vector_store %arg5[%c0_5, %c0_6], %9 {strides = array<i32>} : memref<32x128xbf16, #tpu.memory_space<vmem>>, vector<32x128xbf16>,
    return
  }
  func.func @transform_0(%arg0: i32, %arg1: i32) -> (i32, i32) {
    %c0_i32 = arith.constant 0 : i32
    return %arg0, %arg1 : i32, i32
  }
  func.func @transform_1(%arg0: i32, %arg1: i32) -> (i32, i32) {
    %c0_i32 = arith.constant 0 : i32
    %c0_i32_0 = arith.constant 0 : i32
    return %c0_i32, %arg1 : i32, i32
  }
  func.func @transform_2(%arg0: i32, %arg1: i32) -> (i32, i32) {
    %c0_i32 = arith.constant 0 : i32
    %c0_i32_0 = arith.constant 0 : i32
    return %c0_i32, %arg1 : i32, i32
  }
  func.func @transform_3(%arg0: i32, %arg1: i32) -> (i32, i32) {
    %c0_i32 = arith.constant 0 : i32
    return %arg0, %arg1 : i32, i32
  }
}

module attributes {stable_mosaic.version = 11 : i64} {
  func.func @kernel(%arg0: i32, %arg1: i32, %arg2: i32, %arg3: memref<128x256xbf16, #tpu.memory_space<vmem>>, %arg4: memref<256x128xbf16, #tpu.memory_space<vmem>>, %arg5: memref<128x128xf32, #tpu.memory_space<vmem>>, %arg6: memref<8x128xf32, #tpu.memory_space<vmem>>, %arg7: memref<8x128xf32, #tpu.memory_space<vmem>>, %arg8: memref<128x128xf32, #tpu.memory_space<vmem>>) attributes {dimension_semantics = [#tpu.dimension_semantics<parallel>, #tpu.dimension_semantics<parallel>, #tpu.dimension_semantics<arbitrary>], iteration_bounds = array<i64: 1, 1, 1>, scalar_prefetch = 0 : i64, scratch_operands = 1 : i64, tpu.core_type = #tpu.core_type<tc>, window_params = [{transform_indices = @transform_0, window_bounds = array<i64: 128, 256>}, {transform_indices = @transform_1, window_bounds = array<i64: 256, 128>}, {transform_indices = @transform_2, window_bounds = array<i64: 128, 128>}, {transform_indices = @transform_3, window_bounds = array<i64: 8, 128>}, {transform_indices = @transform_4, window_bounds = array<i64: 8, 128>}]} {
    %c0_i32 = arith.constant 0 : i32
    %0 = arith.cmpi eq, %arg2, %c0_i32 : i32
    %1 = arith.extui %0 : i1 to i32
    %c0_i32_0 = arith.constant 0 : i32
    %2 = arith.cmpi ne, %1, %c0_i32_0 : i32
    scf.if %2 {
      %cst_10 = arith.constant 0.000000e+00 : f32
      %12 = vector.broadcast %cst_10 : f32 to vector<128x128xf32>
      %c0_11 = arith.constant 0 : index
      %c0_12 = arith.constant 0 : index
      %13 = vector.load %arg8[%c0_11, %c0_12] : memref<128x128xf32, #tpu.memory_space<vmem>>, vector<128x128xf32>
      tpu.vector_store %arg8[%c0_11, %c0_12], %12 {strides = array<i32>} : memref<128x128xf32, #tpu.memory_space<vmem>>, vector<128x128xf32>,
    } else {
    }
    %c0 = arith.constant 0 : index
    %c0_1 = arith.constant 0 : index
    %3 = vector.load %arg8[%c0, %c0_1] : memref<128x128xf32, #tpu.memory_space<vmem>>, vector<128x128xf32>
    %c0_2 = arith.constant 0 : index
    %c0_3 = arith.constant 0 : index
    %4 = vector.load %arg3[%c0_2, %c0_3] : memref<128x256xbf16, #tpu.memory_space<vmem>>, vector<128x256xbf16>
    %c0_4 = arith.constant 0 : index
    %c0_5 = arith.constant 0 : index
    %5 = vector.load %arg4[%c0_4, %c0_5] : memref<256x128xbf16, #tpu.memory_space<vmem>>, vector<256x128xbf16>
    %cst = arith.constant dense<0.000000e+00> : vector<128x128xf32>
    %6 = tpu.matmul %4, %5, %cst {dimension_numbers = #tpu.dot_dimension_numbers<[1], [0], [0], [1], [0, 0, 1, 1], [], []>} : vector<128x256xbf16>, vector<256x128xbf16>, vector<128x128xf32> -> vector<128x128xf32>
    %7 = arith.addf %3, %6 : vector<128x128xf32>
    %c0_6 = arith.constant 0 : index
    %c0_7 = arith.constant 0 : index
    %8 = vector.load %arg8[%c0_6, %c0_7] : memref<128x128xf32, #tpu.memory_space<vmem>>, vector<128x128xf32>
    tpu.vector_store %arg8[%c0_6, %c0_7], %7 {strides = array<i32>} : memref<128x128xf32, #tpu.memory_space<vmem>>, vector<128x128xf32>,
    %c0_i32_8 = arith.constant 0 : i32
    %9 = arith.cmpi eq, %arg2, %c0_i32_8 : i32
    %10 = arith.extui %9 : i1 to i32
    %c0_i32_9 = arith.constant 0 : i32
    %11 = arith.cmpi ne, %10, %c0_i32_9 : i32
    scf.if %11 {
      %c0_10 = arith.constant 0 : index
      %c0_11 = arith.constant 0 : index
      %12 = vector.load %arg8[%c0_10, %c0_11] : memref<128x128xf32, #tpu.memory_space<vmem>>, vector<128x128xf32>
      %c0_12 = arith.constant 0 : index
      %c0_13 = arith.constant 0 : index
      %13 = vector.load %arg5[%c0_12, %c0_13] : memref<128x128xf32, #tpu.memory_space<vmem>>, vector<128x128xf32>
      tpu.vector_store %arg5[%c0_12, %c0_13], %12 {strides = array<i32>} : memref<128x128xf32, #tpu.memory_space<vmem>>, vector<128x128xf32>,
      %14 = vector.extract_strided_slice %12 {offsets = [0, 0], sizes = [8, 128], strides = [1, 1]} : vector<128x128xf32> to vector<8x128xf32>
      %15 = vector.extract_strided_slice %12 {offsets = [8, 0], sizes = [8, 128], strides = [1, 1]} : vector<128x128xf32> to vector<8x128xf32>
      %16 = arith.addf %14, %15 : vector<8x128xf32>
      %17 = vector.extract_strided_slice %12 {offsets = [16, 0], sizes = [8, 128], strides = [1, 1]} : vector<128x128xf32> to vector<8x128xf32>
      %18 = arith.addf %16, %17 : vector<8x128xf32>
      %19 = vector.extract_strided_slice %12 {offsets = [24, 0], sizes = [8, 128], strides = [1, 1]} : vector<128x128xf32> to vector<8x128xf32>
      %20 = arith.addf %18, %19 : vector<8x128xf32>
      %21 = vector.extract_strided_slice %12 {offsets = [32, 0], sizes = [8, 128], strides = [1, 1]} : vector<128x128xf32> to vector<8x128xf32>
      %22 = arith.addf %20, %21 : vector<8x128xf32>
      %23 = vector.extract_strided_slice %12 {offsets = [40, 0], sizes = [8, 128], strides = [1, 1]} : vector<128x128xf32> to vector<8x128xf32>
      %24 = arith.addf %22, %23 : vector<8x128xf32>
      %25 = vector.extract_strided_slice %12 {offsets = [48, 0], sizes = [8, 128], strides = [1, 1]} : vector<128x128xf32> to vector<8x128xf32>
      %26 = arith.addf %24, %25 : vector<8x128xf32>
      %27 = vector.extract_strided_slice %12 {offsets = [56, 0], sizes = [8, 128], strides = [1, 1]} : vector<128x128xf32> to vector<8x128xf32>
      %28 = arith.addf %26, %27 : vector<8x128xf32>
      %29 = vector.extract_strided_slice %12 {offsets = [64, 0], sizes = [8, 128], strides = [1, 1]} : vector<128x128xf32> to vector<8x128xf32>
      %30 = arith.addf %28, %29 : vector<8x128xf32>
      %31 = vector.extract_strided_slice %12 {offsets = [72, 0], sizes = [8, 128], strides = [1, 1]} : vector<128x128xf32> to vector<8x128xf32>
      %32 = arith.addf %30, %31 : vector<8x128xf32>
      %33 = vector.extract_strided_slice %12 {offsets = [80, 0], sizes = [8, 128], strides = [1, 1]} : vector<128x128xf32> to vector<8x128xf32>
      %34 = arith.addf %32, %33 : vector<8x128xf32>
      %35 = vector.extract_strided_slice %12 {offsets = [88, 0], sizes = [8, 128], strides = [1, 1]} : vector<128x128xf32> to vector<8x128xf32>
      %36 = arith.addf %34, %35 : vector<8x128xf32>
      %37 = vector.extract_strided_slice %12 {offsets = [96, 0], sizes = [8, 128], strides = [1, 1]} : vector<128x128xf32> to vector<8x128xf32>
      %38 = arith.addf %36, %37 : vector<8x128xf32>
      %39 = vector.extract_strided_slice %12 {offsets = [104, 0], sizes = [8, 128], strides = [1, 1]} : vector<128x128xf32> to vector<8x128xf32>
      %40 = arith.addf %38, %39 : vector<8x128xf32>
      %41 = vector.extract_strided_slice %12 {offsets = [112, 0], sizes = [8, 128], strides = [1, 1]} : vector<128x128xf32> to vector<8x128xf32>
      %42 = arith.addf %40, %41 : vector<8x128xf32>
      %43 = vector.extract_strided_slice %12 {offsets = [120, 0], sizes = [8, 128], strides = [1, 1]} : vector<128x128xf32> to vector<8x128xf32>
      %44 = arith.addf %42, %43 : vector<8x128xf32>
      %c0_14 = arith.constant 0 : index
      %c0_15 = arith.constant 0 : index
      %45 = vector.load %arg6[%c0_14, %c0_15] : memref<8x128xf32, #tpu.memory_space<vmem>>, vector<8x128xf32>
      tpu.vector_store %arg6[%c0_14, %c0_15], %44 {strides = array<i32>} : memref<8x128xf32, #tpu.memory_space<vmem>>, vector<8x128xf32>,
      %46 = arith.mulf %12, %12 : vector<128x128xf32>
      %47 = vector.extract_strided_slice %46 {offsets = [0, 0], sizes = [8, 128], strides = [1, 1]} : vector<128x128xf32> to vector<8x128xf32>
      %48 = vector.extract_strided_slice %46 {offsets = [8, 0], sizes = [8, 128], strides = [1, 1]} : vector<128x128xf32> to vector<8x128xf32>
      %49 = arith.addf %47, %48 : vector<8x128xf32>
      %50 = vector.extract_strided_slice %46 {offsets = [16, 0], sizes = [8, 128], strides = [1, 1]} : vector<128x128xf32> to vector<8x128xf32>
      %51 = arith.addf %49, %50 : vector<8x128xf32>
      %52 = vector.extract_strided_slice %46 {offsets = [24, 0], sizes = [8, 128], strides = [1, 1]} : vector<128x128xf32> to vector<8x128xf32>
      %53 = arith.addf %51, %52 : vector<8x128xf32>
      %54 = vector.extract_strided_slice %46 {offsets = [32, 0], sizes = [8, 128], strides = [1, 1]} : vector<128x128xf32> to vector<8x128xf32>
      %55 = arith.addf %53, %54 : vector<8x128xf32>
      %56 = vector.extract_strided_slice %46 {offsets = [40, 0], sizes = [8, 128], strides = [1, 1]} : vector<128x128xf32> to vector<8x128xf32>
      %57 = arith.addf %55, %56 : vector<8x128xf32>
      %58 = vector.extract_strided_slice %46 {offsets = [48, 0], sizes = [8, 128], strides = [1, 1]} : vector<128x128xf32> to vector<8x128xf32>
      %59 = arith.addf %57, %58 : vector<8x128xf32>
      %60 = vector.extract_strided_slice %46 {offsets = [56, 0], sizes = [8, 128], strides = [1, 1]} : vector<128x128xf32> to vector<8x128xf32>
      %61 = arith.addf %59, %60 : vector<8x128xf32>
      %62 = vector.extract_strided_slice %46 {offsets = [64, 0], sizes = [8, 128], strides = [1, 1]} : vector<128x128xf32> to vector<8x128xf32>
      %63 = arith.addf %61, %62 : vector<8x128xf32>
      %64 = vector.extract_strided_slice %46 {offsets = [72, 0], sizes = [8, 128], strides = [1, 1]} : vector<128x128xf32> to vector<8x128xf32>
      %65 = arith.addf %63, %64 : vector<8x128xf32>
      %66 = vector.extract_strided_slice %46 {offsets = [80, 0], sizes = [8, 128], strides = [1, 1]} : vector<128x128xf32> to vector<8x128xf32>
      %67 = arith.addf %65, %66 : vector<8x128xf32>
      %68 = vector.extract_strided_slice %46 {offsets = [88, 0], sizes = [8, 128], strides = [1, 1]} : vector<128x128xf32> to vector<8x128xf32>
      %69 = arith.addf %67, %68 : vector<8x128xf32>
      %70 = vector.extract_strided_slice %46 {offsets = [96, 0], sizes = [8, 128], strides = [1, 1]} : vector<128x128xf32> to vector<8x128xf32>
      %71 = arith.addf %69, %70 : vector<8x128xf32>
      %72 = vector.extract_strided_slice %46 {offsets = [104, 0], sizes = [8, 128], strides = [1, 1]} : vector<128x128xf32> to vector<8x128xf32>
      %73 = arith.addf %71, %72 : vector<8x128xf32>
      %74 = vector.extract_strided_slice %46 {offsets = [112, 0], sizes = [8, 128], strides = [1, 1]} : vector<128x128xf32> to vector<8x128xf32>
      %75 = arith.addf %73, %74 : vector<8x128xf32>
      %76 = vector.extract_strided_slice %46 {offsets = [120, 0], sizes = [8, 128], strides = [1, 1]} : vector<128x128xf32> to vector<8x128xf32>
      %77 = arith.addf %75, %76 : vector<8x128xf32>
      %c0_16 = arith.constant 0 : index
      %c0_17 = arith.constant 0 : index
      %78 = vector.load %arg7[%c0_16, %c0_17] : memref<8x128xf32, #tpu.memory_space<vmem>>, vector<8x128xf32>
      tpu.vector_store %arg7[%c0_16, %c0_17], %77 {strides = array<i32>} : memref<8x128xf32, #tpu.memory_space<vmem>>, vector<8x128xf32>,
    } else {
    }
    return
  }
  func.func @transform_0(%arg0: i32, %arg1: i32, %arg2: i32) -> (i32, i32) {
    %c0_i32 = arith.constant 0 : i32
    return %arg1, %arg2 : i32, i32
  }
  func.func @transform_1(%arg0: i32, %arg1: i32, %arg2: i32) -> (i32, i32) {
    %c0_i32 = arith.constant 0 : i32
    return %arg2, %arg0 : i32, i32
  }
  func.func @transform_2(%arg0: i32, %arg1: i32, %arg2: i32) -> (i32, i32) {
    %c0_i32 = arith.constant 0 : i32
    return %arg1, %arg0 : i32, i32
  }
  func.func @transform_3(%arg0: i32, %arg1: i32, %arg2: i32) -> (i32, i32) {
    %c0_i32 = arith.constant 0 : i32
    return %arg1, %arg0 : i32, i32
  }
  func.func @transform_4(%arg0: i32, %arg1: i32, %arg2: i32) -> (i32, i32) {
    %c0_i32 = arith.constant 0 : i32
    return %arg1, %arg0 : i32, i32
  }
}

module attributes {stable_mosaic.version = 11 : i64} {
  func.func @kernel(%arg0: i32, %arg1: i32, %arg2: memref<128x128xf32, #tpu.memory_space<vmem>>, %arg3: memref<1x128xf32, #tpu.memory_space<vmem>>, %arg4: memref<1x128xf32, #tpu.memory_space<vmem>>, %arg5: memref<128x128xbf16, #tpu.memory_space<vmem>>) attributes {dimension_semantics = [#tpu.dimension_semantics<parallel>, #tpu.dimension_semantics<parallel>], iteration_bounds = array<i64: 1, 1>, scalar_prefetch = 0 : i64, scratch_operands = 0 : i64, tpu.core_type = #tpu.core_type<tc>, window_params = [{transform_indices = @transform_0, window_bounds = array<i64: 128, 128>}, {transform_indices = @transform_1, window_bounds = array<i64: 1, 128>}, {transform_indices = @transform_2, window_bounds = array<i64: 1, 128>}, {transform_indices = @transform_3, window_bounds = array<i64: 128, 128>}]} {
    %c0 = arith.constant 0 : index
    %c0_0 = arith.constant 0 : index
    %0 = vector.load %arg2[%c0, %c0_0] : memref<128x128xf32, #tpu.memory_space<vmem>>, vector<128x128xf32>
    %c0_1 = arith.constant 0 : index
    %c0_2 = arith.constant 0 : index
    %1 = vector.load %arg3[%c0_1, %c0_2] : memref<1x128xf32, #tpu.memory_space<vmem>>, vector<1x128xf32>
    %2 = vector.broadcast %1 : vector<1x128xf32> to vector<128x128xf32>
    %3 = arith.mulf %0, %2 : vector<128x128xf32>
    %c0_3 = arith.constant 0 : index
    %c0_4 = arith.constant 0 : index
    %4 = vector.load %arg4[%c0_3, %c0_4] : memref<1x128xf32, #tpu.memory_space<vmem>>, vector<1x128xf32>
    %5 = vector.broadcast %4 : vector<1x128xf32> to vector<128x128xf32>
    %6 = arith.addf %3, %5 : vector<128x128xf32>
    %cst = arith.constant 0.000000e+00 : f32
    %7 = vector.broadcast %cst : f32 to vector<128x128xf32>
    %8 = arith.maximumf %6, %7 : vector<128x128xf32>
    %9 = arith.truncf %8 : vector<128x128xf32> to vector<128x128xbf16>
    %c0_5 = arith.constant 0 : index
    %c0_6 = arith.constant 0 : index
    %10 = vector.load %arg5[%c0_5, %c0_6] : memref<128x128xbf16, #tpu.memory_space<vmem>>, vector<128x128xbf16>
    tpu.vector_store %arg5[%c0_5, %c0_6], %9 {strides = array<i32>} : memref<128x128xbf16, #tpu.memory_space<vmem>>, vector<128x128xbf16>,
    return
  }
  func.func @transform_0(%arg0: i32, %arg1: i32) -> (i32, i32) {
    %c0_i32 = arith.constant 0 : i32
    return %arg0, %arg1 : i32, i32
  }
  func.func @transform_1(%arg0: i32, %arg1: i32) -> (i32, i32) {
    %c0_i32 = arith.constant 0 : i32
    %c0_i32_0 = arith.constant 0 : i32
    return %c0_i32, %arg1 : i32, i32
  }
  func.func @transform_2(%arg0: i32, %arg1: i32) -> (i32, i32) {
    %c0_i32 = arith.constant 0 : i32
    %c0_i32_0 = arith.constant 0 : i32
    return %c0_i32, %arg1 : i32, i32
  }
  func.func @transform_3(%arg0: i32, %arg1: i32) -> (i32, i32) {
    %c0_i32 = arith.constant 0 : i32
    return %arg0, %arg1 : i32, i32
  }
}

module attributes {stable_mosaic.version = 11 : i64} {
  func.func @kernel(%arg0: i32, %arg1: i32, %arg2: i32, %arg3: memref<512x128xbf16, #tpu.memory_space<vmem>>, %arg4: memref<128x128xbf16, #tpu.memory_space<vmem>>, %arg5: memref<512x128xf32, #tpu.memory_space<vmem>>, %arg6: memref<512x128xf32, #tpu.memory_space<vmem>>) attributes {dimension_semantics = [#tpu.dimension_semantics<parallel>, #tpu.dimension_semantics<parallel>, #tpu.dimension_semantics<arbitrary>], iteration_bounds = array<i64: 1, 1, 1>, scalar_prefetch = 0 : i64, scratch_operands = 1 : i64, tpu.core_type = #tpu.core_type<tc>, window_params = [{transform_indices = @transform_0, window_bounds = array<i64: 512, 128>}, {transform_indices = @transform_1, window_bounds = array<i64: 128, 128>}, {transform_indices = @transform_2, window_bounds = array<i64: 512, 128>}]} {
    %c0_i32 = arith.constant 0 : i32
    %0 = arith.cmpi eq, %arg2, %c0_i32 : i32
    %1 = arith.extui %0 : i1 to i32
    %c0_i32_0 = arith.constant 0 : i32
    %2 = arith.cmpi ne, %1, %c0_i32_0 : i32
    scf.if %2 {
      %cst_10 = arith.constant 0.000000e+00 : f32
      %12 = vector.broadcast %cst_10 : f32 to vector<512x128xf32>
      %c0_11 = arith.constant 0 : index
      %c0_12 = arith.constant 0 : index
      %13 = vector.load %arg6[%c0_11, %c0_12] : memref<512x128xf32, #tpu.memory_space<vmem>>, vector<512x128xf32>
      tpu.vector_store %arg6[%c0_11, %c0_12], %12 {strides = array<i32>} : memref<512x128xf32, #tpu.memory_space<vmem>>, vector<512x128xf32>,
    } else {
    }
    %c0 = arith.constant 0 : index
    %c0_1 = arith.constant 0 : index
    %3 = vector.load %arg6[%c0, %c0_1] : memref<512x128xf32, #tpu.memory_space<vmem>>, vector<512x128xf32>
    %c0_2 = arith.constant 0 : index
    %c0_3 = arith.constant 0 : index
    %4 = vector.load %arg3[%c0_2, %c0_3] : memref<512x128xbf16, #tpu.memory_space<vmem>>, vector<512x128xbf16>
    %c0_4 = arith.constant 0 : index
    %c0_5 = arith.constant 0 : index
    %5 = vector.load %arg4[%c0_4, %c0_5] : memref<128x128xbf16, #tpu.memory_space<vmem>>, vector<128x128xbf16>
    %cst = arith.constant dense<0.000000e+00> : vector<512x128xf32>
    %6 = tpu.matmul %4, %5, %cst {dimension_numbers = #tpu.dot_dimension_numbers<[1], [0], [0], [1], [0, 0, 1, 1], [], []>} : vector<512x128xbf16>, vector<128x128xbf16>, vector<512x128xf32> -> vector<512x128xf32>
    %7 = arith.addf %3, %6 : vector<512x128xf32>
    %c0_6 = arith.constant 0 : index
    %c0_7 = arith.constant 0 : index
    %8 = vector.load %arg6[%c0_6, %c0_7] : memref<512x128xf32, #tpu.memory_space<vmem>>, vector<512x128xf32>
    tpu.vector_store %arg6[%c0_6, %c0_7], %7 {strides = array<i32>} : memref<512x128xf32, #tpu.memory_space<vmem>>, vector<512x128xf32>,
    %c0_i32_8 = arith.constant 0 : i32
    %9 = arith.cmpi eq, %arg2, %c0_i32_8 : i32
    %10 = arith.extui %9 : i1 to i32
    %c0_i32_9 = arith.constant 0 : i32
    %11 = arith.cmpi ne, %10, %c0_i32_9 : i32
    scf.if %11 {
      %c0_10 = arith.constant 0 : index
      %c0_11 = arith.constant 0 : index
      %12 = vector.load %arg6[%c0_10, %c0_11] : memref<512x128xf32, #tpu.memory_space<vmem>>, vector<512x128xf32>
      %13 = math.tanh %12 : vector<512x128xf32>
      %c0_12 = arith.constant 0 : index
      %c0_13 = arith.constant 0 : index
      %14 = vector.load %arg5[%c0_12, %c0_13] : memref<512x128xf32, #tpu.memory_space<vmem>>, vector<512x128xf32>
      tpu.vector_store %arg5[%c0_12, %c0_13], %13 {strides = array<i32>} : memref<512x128xf32, #tpu.memory_space<vmem>>, vector<512x128xf32>,
    } else {
    }
    return
  }
  func.func @transform_0(%arg0: i32, %arg1: i32, %arg2: i32) -> (i32, i32) {
    %c0_i32 = arith.constant 0 : i32
    return %arg1, %arg2 : i32, i32
  }
  func.func @transform_1(%arg0: i32, %arg1: i32, %arg2: i32) -> (i32, i32) {
    %c0_i32 = arith.constant 0 : i32
    return %arg2, %arg0 : i32, i32
  }
  func.func @transform_2(%arg0: i32, %arg1: i32, %arg2: i32) -> (i32, i32) {
    %c0_i32 = arith.constant 0 : i32
    return %arg1, %arg0 : i32, i32
  }
}

</mosaic_0001>

<bundles_post_ra>
// kernel: forward.18
= control target key start
LH: loop header
LB: loop body
LE: loop exit
PB: predicated region body
PF: predicated region fallthrough
CT: control target
= control target key end

     0   :  { %s338_s0 = inlined_call_operand.vmem [shape: f32[128,128], index: 0, kind: input, shape index: {}]   ;;  %s339_s1 = inlined_call_operand.vmem [shape: f32[1,128], index: 1, kind: input, shape index: {}]   ;;  %s340_s2 = inlined_call_operand.vmem [shape: f32[1,128], index: 2, kind: input, shape index: {}]   ;;  %s341_s3 = inlined_call_operand.vmem [shape: bf16[128,128], index: 3, kind: output, shape index: {}]  }
   0x1   :  { %v14_v0 = vld [vmem:[%s338_s0] sm:$0xff]  ;;  %v15_v1 = vld [vmem:[%s338_s0 + $0x8] sm:$0xff]  ;;  %v16_v4 = vld [vmem:[%s338_s0 + $0x10] sm:$0xff] }
   0x2   :  { %v232_v2 = vld [vmem:[%s339_s1] ss:$0 sm:$0xff]  ;;  %v17_v5 = vld [vmem:[%s338_s0 + $0x18] sm:$0xff]  ;;  %v19_v11 = vld [vmem:[%s338_s0 + $0x28] sm:$0xff] }
   0x3   :  { %v237_v3 = vld [vmem:[%s340_s2] ss:$0 sm:$0xff]  ;;  %v34_v7 = vmul.f32 %v232_v2, %v14_v0  ;;  %v35_v8 = vmul.f32 %v232_v2, %v15_v1  ;;  %v36_v9 = vmul.f32 %v232_v2, %v16_v4  ;;  %v37_v10 = vmul.f32 %v232_v2, %v17_v5  ;;  %v20_v12 = vld [vmem:[%s338_s0 + $0x30] sm:$0xff]  ;;  %v21_v13 = vld [vmem:[%s338_s0 + $0x38] sm:$0xff] }
   0x4   :  { %v18_v6 = vld [vmem:[%s338_s0 + $0x20] sm:$0xff]  ;;  %v39_v15 = vmul.f32 %v232_v2, %v19_v11  ;;  %v40_v16 = vmul.f32 %v232_v2, %v20_v12  ;;  %v41_v17 = vmul.f32 %v232_v2, %v21_v13  ;;  %v23_v37 = vld [vmem:[%s338_s0 + $0x48] sm:$0xff]  ;;  %v24_v38 = vld [vmem:[%s338_s0 + $0x50] sm:$0xff] }
   0x5   :  { %v38_v14 = vmul.f32 %v232_v2, %v18_v6  ;;  %v54_v18 = vadd.f32 %v237_v3, %v34_v7  ;;  %v55_v19 = vadd.f32 %v237_v3, %v35_v8  ;;  %v56_v20 = vadd.f32 %v237_v3, %v36_v9  ;;  %v22_v32 = vld [vmem:[%s338_s0 + $0x40] sm:$0xff]  ;;  %v25_v39 = vld [vmem:[%s338_s0 + $0x58] sm:$0xff]  ;;  %v27_v51 = vld [vmem:[%s338_s0 + $0x68] sm:$0xff] }
   0x6   :  { %v57_v21 = vadd.f32 %v237_v3, %v37_v10  ;;  %v59_v23 = vadd.f32 %v237_v3, %v39_v15  ;;  %v60_v24 = vadd.f32 %v237_v3, %v40_v16  ;;  %v61_v25 = vadd.f32 %v237_v3, %v41_v17  ;;  %v26_v50 = vld [vmem:[%s338_s0 + $0x60] sm:$0xff]  ;;  %v28_v63 = vld [vmem:[%s338_s0 + $0x70] sm:$0xff]  ;;  %v29_v0 = vld [vmem:[%s338_s0 + $0x78] sm:$0xff] }
   0x7   :  { %v58_v22 = vadd.f32 %v237_v3, %v38_v14  ;;  %vm70_vm0 = vcmp.ge.f32.partialorder %v54_v18, 0.0  ;;  %vm71_vm1 = vcmp.ge.f32.partialorder %v55_v19, 0.0  ;;  %v86_v26 = vmul.f32 0.2, %v54_v18 }
   0x8   :  { %v87_v27 = vmul.f32 0.2, %v55_v19  ;;  %vm72_vm2 = vcmp.ge.f32.partialorder %v56_v20, 0.0  ;;  %vm73_vm3 = vcmp.ge.f32.partialorder %v57_v21, 0.0  ;;  %v88_v28 = vmul.f32 0.2, %v56_v20 }
   0x9   :  { %v89_v29 = vmul.f32 0.2, %v57_v21  ;;  %v102_v30 = vsel %vm70_vm0, %v54_v18, %v86_v26  ;;  %vm74_vm4 = vcmp.ge.f32.partialorder %v58_v22, 0.0  ;;  %vm75_vm5 = vcmp.ge.f32.partialorder %v59_v23, 0.0 }
   0xa   :  { %v103_v31 = vsel %vm71_vm1, %v55_v19, %v87_v27  ;;  %v104_v34 = vsel %vm72_vm2, %v56_v20, %v88_v28  ;;  %v90_v36 = vmul.f32 0.2, %v58_v22  ;;  %v91_v41 = vmul.f32 0.2, %v59_v23 }
   0xb   :  { %v157_v33 = vpack.c.bf16 %v103_v31, %v102_v30  ;;  %v105_v35 = vsel %vm73_vm3, %v57_v21, %v89_v29  ;;  %vm76_vm6 = vcmp.ge.f32.partialorder %v60_v24, 0.0  ;;  %vm77_vm7 = vcmp.ge.f32.partialorder %v61_v25, 0.0 }
   0xc   :  { %v162_v40 = vpack.c.bf16 %v105_v35, %v104_v34  ;;  %v106_v42 = vsel %vm74_vm4, %v58_v22, %v90_v36  ;;  %v92_v43 = vmul.f32 0.2, %v60_v24  ;;  %v93_v44 = vmul.f32 0.2, %v61_v25 }
   0xd   :  { %158 = vst [vmem:[%s341_s3] sm:$0xff] %v157_v33   ;;  %v42_v45 = vmul.f32 %v232_v2, %v22_v32  ;;  %v107_v46 = vsel %vm75_vm5, %v59_v23, %v91_v41  ;;  %v43_v47 = vmul.f32 %v232_v2, %v23_v37  ;;  %v44_v48 = vmul.f32 %v232_v2, %v24_v38 }
   0xe   :  { %194 = vst [vmem:[%s341_s3 + $0x8] sm:$0xff] %v162_v40   ;;  %v45_v49 = vmul.f32 %v232_v2, %v25_v39  ;;  %v167_v52 = vpack.c.bf16 %v107_v46, %v106_v42  ;;  %v108_v53 = vsel %vm76_vm6, %v60_v24, %v92_v43  ;;  %v109_v54 = vsel %vm77_vm7, %v61_v25, %v93_v44 }
   0xf   :  { %v62_v55 = vadd.f32 %v237_v3, %v42_v45  ;;  %v172_v56 = vpack.c.bf16 %v109_v54, %v108_v53  ;;  %v63_v57 = vadd.f32 %v237_v3, %v43_v47  ;;  %v64_v58 = vadd.f32 %v237_v3, %v44_v48 }
  0x10   :  { %v65_v59 = vadd.f32 %v237_v3, %v45_v49  ;;  %195 = vst [vmem:[%s341_s3 + $0x10] sm:$0xff] %v167_v52   ;;  %v46_v61 = vmul.f32 %v232_v2, %v26_v50  ;;  %v47_v62 = vmul.f32 %v232_v2, %v27_v51  ;;  %v48_v10 = vmul.f32 %v232_v2, %v28_v63 }
  0x11   :  { %vm78_vm8 = vcmp.ge.f32.partialorder %v62_v55, 0.0  ;;  %v94_v60 = vmul.f32 0.2, %v62_v55  ;;  %196 = vst [vmem:[%s341_s3 + $0x18] sm:$0xff] %v172_v56   ;;  %vm79_vm9 = vcmp.ge.f32.partialorder %v63_v57, 0.0  ;;  %vm80_vm10 = vcmp.ge.f32.partialorder %v64_v58, 0.0 }
  0x12   :  { %v95_v1 = vmul.f32 0.2, %v63_v57  ;;  %vm81_vm11 = vcmp.ge.f32.partialorder %v65_v59, 0.0  ;;  %v96_v5 = vmul.f32 0.2, %v64_v58  ;;  %v66_v7 = vadd.f32 %v237_v3, %v46_v61 }
  0x13   :  { %v110_v4 = vsel %vm78_vm8, %v62_v55, %v94_v60  ;;  %v97_v6 = vmul.f32 0.2, %v65_v59  ;;  %v67_v9 = vadd.f32 %v237_v3, %v47_v62  ;;  %v49_v11 = vmul.f32 %v232_v2, %v29_v0 }
  0x14   :  { %v111_v8 = vsel %vm79_vm9, %v63_v57, %v95_v1  ;;  %v112_v13 = vsel %vm80_vm10, %v64_v58, %v96_v5  ;;  %vm82_vm12 = vcmp.ge.f32.partialorder %v66_v7, 0.0  ;;  %v98_v16 = vmul.f32 0.2, %v66_v7 }
  0x15   :  { %v177_v12 = vpack.c.bf16 %v111_v8, %v110_v4  ;;  %v113_v14 = vsel %vm81_vm11, %v65_v59, %v97_v6  ;;  %vm83_vm13 = vcmp.ge.f32.partialorder %v67_v9, 0.0  ;;  %v99_v17 = vmul.f32 0.2, %v67_v9 }
  0x16   :  { %v182_v15 = vpack.c.bf16 %v113_v14, %v112_v13  ;;  %v68_v18 = vadd.f32 %v237_v3, %v48_v10  ;;  %v69_v19 = vadd.f32 %v237_v3, %v49_v11  ;;  %v114_v2 = vsel %vm82_vm12, %v66_v7, %v98_v16 }
  0x17   :  { %197 = vst [vmem:[%s341_s3 + $0x20] sm:$0xff] %v177_v12   ;;  %v115_v20 = vsel %vm83_vm13, %v67_v9, %v99_v17 }
  0x18   :  { %198 = vst [vmem:[%s341_s3 + $0x28] sm:$0xff] %v182_v15   ;;  %v187_v21 = vpack.c.bf16 %v115_v20, %v114_v2  ;;  %vm84_vm14 = vcmp.ge.f32.partialorder %v68_v18, 0.0  ;;  %vm85_vm15 = vcmp.ge.f32.partialorder %v69_v19, 0.0  ;;  %v100_v22 = vmul.f32 0.2, %v68_v18 }
  0x19   :  { %v101_v23 = vmul.f32 0.2, %v69_v19 }
  0x1a   :  { %199 = vst [vmem:[%s341_s3 + $0x30] sm:$0xff] %v187_v21   ;;  %v116_v24 = vsel %vm84_vm14, %v68_v18, %v100_v22 }
  0x1b   :  { %v117_v25 = vsel %vm85_vm15, %v69_v19, %v101_v23 }
  0x1c   :  { %v192_v26 = vpack.c.bf16 %v117_v25, %v116_v24 }
  0x1e   :  { %200 = vst [vmem:[%s341_s3 + $0x38] sm:$0xff] %v192_v26  }

// kernel: forward.17
= control target key start
LH: loop header
LB: loop body
LE: loop exit
PB: predicated region body
PF: predicated region fallthrough
CT: control target
= control target key end

     0   :  { %s585_s1 = inlined_call_operand.vmem [shape: bf16[128,128], index: 1, kind: input, shape index: {}]   ;;  %s586_s0 = inlined_call_operand.vmem [shape: bf16[128,128], index: 0, kind: input, shape index: {}]   ;;  %s587_s2 = inlined_call_operand.vmem [shape: f32[128,128], index: 2, kind: output, shape index: {0}]   ;;  %s588_s3 = inlined_call_operand.vmem [shape: f32[8,128], index: 3, kind: output, shape index: {1}]   ;;  %s589_s4 = inlined_call_operand.vmem [shape: f32[8,128], index: 4, kind: output, shape index: {2}]  }
   0x1   :  { %v433_v0 = vld [vmem:[%s585_s1 + $0x38] sm:$0xff]  ;;  %v432_v1 = vld [vmem:[%s585_s1 + $0x30] sm:$0xff]  ;;  %v431_v2 = vld [vmem:[%s585_s1 + $0x28] sm:$0xff] }
   0x2   :  { %178 = vmatpush.bf16.msra.mxu0 %v433_v0  ;;  %434 = vmatpush.bf16.msra.mxu1 %v433_v0  ;;  %v430_v3 = vld [vmem:[%s585_s1 + $0x20] sm:$0xff]  ;;  %v429_v4 = vld [vmem:[%s585_s1 + $0x18] sm:$0xff]  ;;  %v428_v5 = vld [vmem:[%s585_s1 + $0x10] sm:$0xff] }
   0x3   :  { %435 = vmatpush.bf16.msra.mxu2 %v433_v0  ;;  %436 = vmatpush.bf16.msra.mxu3 %v433_v0  ;;  %v427_v6 = vld [vmem:[%s585_s1 + $0x8] sm:$0xff]  ;;  %v426_v7 = vld [vmem:[%s585_s1] sm:$0xff]  ;;  %v420_v9 = vld [vmem:[%s586_s0 + $0x10] sm:$0xff] }
   0x4   :  { %v418_v8 = vld [vmem:[%s586_s0] sm:$0xff]  ;;  %v424_v11 = vld [vmem:[%s586_s0 + $0x30] sm:$0xff]  ;;  %v419_v12 = vld [vmem:[%s586_s0 + $0x8] sm:$0xff] }
   0x5   :  { %v422_v10 = vld [vmem:[%s586_s0 + $0x20] sm:$0xff]  ;;  %v421_v13 = vld [vmem:[%s586_s0 + $0x18] sm:$0xff]  ;;  %v423_v14 = vld [vmem:[%s586_s0 + $0x28] sm:$0xff] }
   0x6   :  { %179 = vmatpush.bf16.msra.mxu0 %v432_v1  ;;  %437 = vmatpush.bf16.msra.mxu1 %v432_v1  ;;  %v425_v15 = vld [vmem:[%s586_s0 + $0x38] sm:$0xff] }
   0x7   :  { %438 = vmatpush.bf16.msra.mxu2 %v432_v1  ;;  %439 = vmatpush.bf16.msra.mxu3 %v432_v1 }
   0xa   :  { %180 = vmatpush.bf16.msra.mxu0 %v431_v2  ;;  %440 = vmatpush.bf16.msra.mxu1 %v431_v2 }
   0xb   :  { %441 = vmatpush.bf16.msra.mxu2 %v431_v2  ;;  %442 = vmatpush.bf16.msra.mxu3 %v431_v2 }
   0xe   :  { %181 = vmatpush.bf16.msra.mxu0 %v430_v3  ;;  %443 = vmatpush.bf16.msra.mxu1 %v430_v3 }
   0xf   :  { %444 = vmatpush.bf16.msra.mxu2 %v430_v3  ;;  %445 = vmatpush.bf16.msra.mxu3 %v430_v3 }
  0x12   :  { %182 = vmatpush.bf16.msra.mxu0 %v429_v4  ;;  %446 = vmatpush.bf16.msra.mxu1 %v429_v4 }
  0x13   :  { %447 = vmatpush.bf16.msra.mxu2 %v429_v4  ;;  %448 = vmatpush.bf16.msra.mxu3 %v429_v4 }
  0x16   :  { %183 = vmatpush.bf16.msra.mxu0 %v428_v5  ;;  %449 = vmatpush.bf16.msra.mxu1 %v428_v5 }
  0x17   :  { %450 = vmatpush.bf16.msra.mxu2 %v428_v5  ;;  %451 = vmatpush.bf16.msra.mxu3 %v428_v5 }
  0x1a   :  { %184 = vmatpush.bf16.msra.mxu0 %v427_v6  ;;  %452 = vmatpush.bf16.msra.mxu1 %v427_v6 }
  0x1b   :  { %453 = vmatpush.bf16.msra.mxu2 %v427_v6  ;;  %454 = vmatpush.bf16.msra.mxu3 %v427_v6 }
  0x1e   :  { %185 = vmatpush.bf16.msra.mxu0 %v426_v7  ;;  %455 = vmatpush.bf16.msra.mxu1 %v426_v7 }
  0x1f   :  { %456 = vmatpush.bf16.msra.mxu2 %v426_v7  ;;  %457 = vmatpush.bf16.msra.mxu3 %v426_v7 }
  0x21   :  { %186 = vmatmul.bf16.vlgmr.msra.gmra.mxu0 %v418_v8  ;;  %196 = vmatmul.bf16.vlgmr.msra.gmra.mxu1 %v420_v9 }
  0x22   :  { %206 = vmatmul.bf16.vlgmr.msra.gmra.mxu2 %v422_v10  ;;  %216 = vmatmul.bf16.vlgmr.msra.gmra.mxu3 %v424_v11 }
  0x31   :  { %191 = vmatmul.bf16.gmra.mxu0 %v419_v12  ;;  %201 = vmatmul.bf16.gmra.mxu1 %v421_v13 }
  0x32   :  { %211 = vmatmul.bf16.gmra.mxu2 %v423_v14  ;;  %221 = vmatmul.bf16.gmra.mxu3 %v425_v15 }
  0x9e   :  { %v187_v16 = vpop.f32.mrf.mxu0  ;;  %v197_v17 = vpop.f32.mrf.mxu1 }
  0x9f   :  { %278 = vst [vmem:[%s587_s2] sm:$0xff] %v187_v16  ;;  %v310_v27 = vmul.f32 %v187_v16, %v187_v16  ;;  %v314_v39 = vmul.f32 %v197_v17, %v197_v17 }
  0xa0   :  { %282 = vst [vmem:[%s587_s2 + $0x20] sm:$0xff] %v197_v17 }
  0xa5   :  { %v207_v18 = vpop.f32.mrf.mxu2  ;;  %v217_v19 = vpop.f32.mrf.mxu3 }
  0xa6   :  { %v189_v20 = vpop.f32.mrf.mxu0  ;;  %v199_v21 = vpop.f32.mrf.mxu1  ;;  %286 = vst [vmem:[%s587_s2 + $0x40] sm:$0xff] %v207_v18  ;;  %v318_v53 = vmul.f32 %v207_v18, %v207_v18  ;;  %v322_v1 = vmul.f32 %v217_v19, %v217_v19 }
  0xa7   :  { %279 = vst [vmem:[%s587_s2 + $0x8] sm:$0xff] %v189_v20  ;;  %v311_v26 = vmul.f32 %v189_v20, %v189_v20  ;;  %v294_v28 = vadd.f32 %v189_v20, %v187_v16  ;;  %v315_v42 = vmul.f32 %v199_v21, %v199_v21 }
  0xa8   :  { %283 = vst [vmem:[%s587_s2 + $0x28] sm:$0xff] %v199_v21 }
  0xa9   :  { %290 = vst [vmem:[%s587_s2 + $0x60] sm:$0xff] %v217_v19  ;;  %v326_v30 = vadd.f32 %v311_v26, %v310_v27 }
  0xad   :  { %v209_v22 = vpop.f32.mrf.mxu2  ;;  %v219_v23 = vpop.f32.mrf.mxu3 }
  0xae   :  { %v192_v24 = vpop.f32.mrf.mxu0  ;;  %v202_v25 = vpop.f32.mrf.mxu1  ;;  %287 = vst [vmem:[%s587_s2 + $0x48] sm:$0xff] %v209_v22  ;;  %v319_v56 = vmul.f32 %v209_v22, %v209_v22  ;;  %v323_v4 = vmul.f32 %v219_v23, %v219_v23 }
  0xaf   :  { %280 = vst [vmem:[%s587_s2 + $0x10] sm:$0xff] %v192_v24  ;;  %v312_v29 = vmul.f32 %v192_v24, %v192_v24  ;;  %v295_v31 = vadd.f32 %v294_v28, %v192_v24  ;;  %v316_v45 = vmul.f32 %v202_v25, %v202_v25 }
  0xb0   :  { %284 = vst [vmem:[%s587_s2 + $0x30] sm:$0xff] %v202_v25 }
  0xb1   :  { %291 = vst [vmem:[%s587_s2 + $0x68] sm:$0xff] %v219_v23  ;;  %v327_v36 = vadd.f32 %v326_v30, %v312_v29 }
  0xb5   :  { %v212_v32 = vpop.f32.mrf.mxu2  ;;  %v222_v33 = vpop.f32.mrf.mxu3 }
  0xb6   :  { %v194_v34 = vpop.f32.mrf.mxu0  ;;  %v204_v35 = vpop.f32.mrf.mxu1  ;;  %288 = vst [vmem:[%s587_s2 + $0x50] sm:$0xff] %v212_v32  ;;  %v320_v60 = vmul.f32 %v212_v32, %v212_v32  ;;  %v324_v8 = vmul.f32 %v222_v33, %v222_v33 }
  0xb7   :  { %281 = vst [vmem:[%s587_s2 + $0x18] sm:$0xff] %v194_v34  ;;  %v296_v37 = vadd.f32 %v295_v31, %v194_v34  ;;  %v313_v38 = vmul.f32 %v194_v34, %v194_v34  ;;  %v317_v51 = vmul.f32 %v204_v35, %v204_v35 }
  0xb8   :  { %285 = vst [vmem:[%s587_s2 + $0x38] sm:$0xff] %v204_v35 }
  0xb9   :  { %v297_v40 = vadd.f32 %v296_v37, %v197_v17  ;;  %v328_v41 = vadd.f32 %v327_v36, %v313_v38  ;;  %292 = vst [vmem:[%s587_s2 + $0x70] sm:$0xff] %v222_v33 }
  0xbb   :  { %v329_v43 = vadd.f32 %v328_v41, %v314_v39  ;;  %v298_v44 = vadd.f32 %v297_v40, %v199_v21 }
  0xbd   :  { %v299_v46 = vadd.f32 %v298_v44, %v202_v25  ;;  %v330_v47 = vadd.f32 %v329_v43, %v315_v42  ;;  %v214_v48 = vpop.f32.mrf.mxu2  ;;  %v224_v49 = vpop.f32.mrf.mxu3 }
  0xbe   :  { %289 = vst [vmem:[%s587_s2 + $0x58] sm:$0xff] %v214_v48  ;;  %v321_v0 = vmul.f32 %v214_v48, %v214_v48  ;;  %v325_v12 = vmul.f32 %v224_v49, %v224_v49 }
  0xbf   :  { %v300_v50 = vadd.f32 %v299_v46, %v204_v35  ;;  %v331_v52 = vadd.f32 %v330_v47, %v316_v45  ;;  %293 = vst [vmem:[%s587_s2 + $0x78] sm:$0xff] %v224_v49 }
  0xc1   :  { %v301_v54 = vadd.f32 %v300_v50, %v207_v18  ;;  %v332_v55 = vadd.f32 %v331_v52, %v317_v51 }
  0xc3   :  { %v333_v57 = vadd.f32 %v332_v55, %v318_v53  ;;  %v302_v58 = vadd.f32 %v301_v54, %v209_v22 }
  0xc5   :  { %v303_v59 = vadd.f32 %v302_v58, %v212_v32  ;;  %v334_v61 = vadd.f32 %v333_v57, %v319_v56 }
  0xc7   :  { %v335_v62 = vadd.f32 %v334_v61, %v320_v60  ;;  %v304_v63 = vadd.f32 %v303_v59, %v214_v48 }
  0xc9   :  { %v305_v2 = vadd.f32 %v304_v63, %v217_v19  ;;  %v336_v3 = vadd.f32 %v335_v62, %v321_v0 }
  0xcb   :  { %v337_v5 = vadd.f32 %v336_v3, %v322_v1  ;;  %v306_v6 = vadd.f32 %v305_v2, %v219_v23 }
  0xcd   :  { %v307_v7 = vadd.f32 %v306_v6, %v222_v33  ;;  %v338_v9 = vadd.f32 %v337_v5, %v323_v4 }
  0xcf   :  { %v339_v10 = vadd.f32 %v338_v9, %v324_v8  ;;  %v308_v11 = vadd.f32 %v307_v7, %v224_v49 }
  0xd1   :  { %309 = vst [vmem:[%s588_s3] sm:$0xff] %v308_v11  ;;  %v340_v13 = vadd.f32 %v339_v10, %v325_v12 }
  0xd3   :  { %341 = vst [vmem:[%s589_s4] sm:$0xff] %v340_v13 }

// kernel: forward.19
= control target key start
LH: loop header
LB: loop body
LE: loop exit
PB: predicated region body
PF: predicated region fallthrough
CT: control target
= control target key end

     0   :  { %s299_s1 = inlined_call_operand.vmem [shape: bf16[128,128], index: 1, kind: input, shape index: {}]   ;;  %s300_s0 = inlined_call_operand.vmem [shape: bf16[32,128], index: 0, kind: input, shape index: {}]   ;;  %s301_s2 = inlined_call_operand.vmem [shape: f32[32,128], index: 2, kind: output, shape index: {0}]   ;;  %s302_s3 = inlined_call_operand.vmem [shape: f32[8,128], index: 3, kind: output, shape index: {1}]   ;;  %s303_s4 = inlined_call_operand.vmem [shape: f32[8,128], index: 4, kind: output, shape index: {2}]  }
   0x1   :  { %v217_v0 = vld [vmem:[%s299_s1 + $0x38] sm:$0xff]  ;;  %v216_v1 = vld [vmem:[%s299_s1 + $0x30] sm:$0xff]  ;;  %v215_v2 = vld [vmem:[%s299_s1 + $0x28] sm:$0xff] }
   0x2   :  { %106 = vmatpush.bf16.msra.mxu0 %v217_v0  ;;  %218 = vmatpush.bf16.msra.mxu1 %v217_v0  ;;  %v214_v3 = vld [vmem:[%s299_s1 + $0x20] sm:$0xff]  ;;  %v213_v4 = vld [vmem:[%s299_s1 + $0x18] sm:$0xff]  ;;  %v212_v5 = vld [vmem:[%s299_s1 + $0x10] sm:$0xff] }
   0x3   :  { %v211_v6 = vld [vmem:[%s299_s1 + $0x8] sm:$0xff]  ;;  %v210_v7 = vld [vmem:[%s299_s1] sm:$0xff] }
   0x4   :  { %v208_v8 = vld [vmem:[%s300_s0] sm:$0xff]  ;;  %v209_v9 = vld [vmem:[%s300_s0 + $0x8] sm:$0xff] }
   0x6   :  { %107 = vmatpush.bf16.msra.mxu0 %v216_v1  ;;  %219 = vmatpush.bf16.msra.mxu1 %v216_v1 }
   0xa   :  { %108 = vmatpush.bf16.msra.mxu0 %v215_v2  ;;  %220 = vmatpush.bf16.msra.mxu1 %v215_v2 }
   0xe   :  { %109 = vmatpush.bf16.msra.mxu0 %v214_v3  ;;  %221 = vmatpush.bf16.msra.mxu1 %v214_v3 }
  0x12   :  { %110 = vmatpush.bf16.msra.mxu0 %v213_v4  ;;  %222 = vmatpush.bf16.msra.mxu1 %v213_v4 }
  0x16   :  { %111 = vmatpush.bf16.msra.mxu0 %v212_v5  ;;  %223 = vmatpush.bf16.msra.mxu1 %v212_v5 }
  0x1a   :  { %112 = vmatpush.bf16.msra.mxu0 %v211_v6  ;;  %224 = vmatpush.bf16.msra.mxu1 %v211_v6 }
  0x1e   :  { %113 = vmatpush.bf16.msra.mxu0 %v210_v7  ;;  %225 = vmatpush.bf16.msra.mxu1 %v210_v7 }
  0x21   :  { %114 = vmatmul.bf16.vlgmr.msra.gmra.mxu0 %v208_v8  ;;  %119 = vmatmul.bf16.vlgmr.msra.gmra.mxu1 %v209_v9 }
  0x9e   :  { %v115_v10 = vpop.f32.mrf.mxu0  ;;  %v120_v11 = vpop.f32.mrf.mxu1 }
  0x9f   :  { %140 = vst [vmem:[%s301_s2] sm:$0xff] %v115_v10  ;;  %v148_v14 = vmul.f32 %v115_v10, %v115_v10  ;;  %v150_v17 = vmul.f32 %v120_v11, %v120_v11 }
  0xa0   :  { %142 = vst [vmem:[%s301_s2 + $0x10] sm:$0xff] %v120_v11 }
  0xa6   :  { %v117_v12 = vpop.f32.mrf.mxu0  ;;  %v122_v13 = vpop.f32.mrf.mxu1 }
  0xa7   :  { %141 = vst [vmem:[%s301_s2 + $0x8] sm:$0xff] %v117_v12  ;;  %v144_v15 = vadd.f32 %v117_v12, %v115_v10  ;;  %v149_v16 = vmul.f32 %v117_v12, %v117_v12  ;;  %v151_v21 = vmul.f32 %v122_v13, %v122_v13 }
  0xa8   :  { %143 = vst [vmem:[%s301_s2 + $0x18] sm:$0xff] %v122_v13 }
  0xa9   :  { %v152_v18 = vadd.f32 %v149_v16, %v148_v14  ;;  %v145_v19 = vadd.f32 %v144_v15, %v120_v11 }
  0xab   :  { %v146_v20 = vadd.f32 %v145_v19, %v122_v13  ;;  %v153_v22 = vadd.f32 %v152_v18, %v150_v17 }
  0xad   :  { %147 = vst [vmem:[%s302_s3] sm:$0xff] %v146_v20  ;;  %v154_v23 = vadd.f32 %v153_v22, %v151_v21 }
  0xaf   :  { %155 = vst [vmem:[%s303_s4] sm:$0xff] %v154_v23 }

// kernel: forward.20
= control target key start
LH: loop header
LB: loop body
LE: loop exit
PB: predicated region body
PF: predicated region fallthrough
CT: control target
= control target key end

     0   :  { %s115_s0 = inlined_call_operand.vmem [shape: f32[32,128], index: 0, kind: input, shape index: {}]   ;;  %s116_s1 = inlined_call_operand.vmem [shape: f32[1,128], index: 1, kind: input, shape index: {}]   ;;  %s117_s2 = inlined_call_operand.vmem [shape: f32[1,128], index: 2, kind: input, shape index: {}]   ;;  %s118_s3 = inlined_call_operand.vmem [shape: bf16[32,128], index: 3, kind: output, shape index: {}]  }
   0x1   :  { %v14_v0 = vld [vmem:[%s115_s0] sm:$0xff]  ;;  %v15_v1 = vld [vmem:[%s115_s0 + $0x8] sm:$0xff]  ;;  %v16_v4 = vld [vmem:[%s115_s0 + $0x10] sm:$0xff] }
   0x2   :  { %v69_v2 = vld [vmem:[%s116_s1] ss:$0 sm:$0xff]  ;;  %v17_v5 = vld [vmem:[%s115_s0 + $0x18] sm:$0xff] }
   0x3   :  { %v70_v3 = vld [vmem:[%s117_s2] ss:$0 sm:$0xff]  ;;  %v22_v6 = vmul.f32 %v69_v2, %v14_v0  ;;  %v23_v7 = vmul.f32 %v69_v2, %v15_v1  ;;  %v24_v8 = vmul.f32 %v69_v2, %v16_v4  ;;  %v25_v9 = vmul.f32 %v69_v2, %v17_v5 }
   0x5   :  { %v30_v10 = vadd.f32 %v70_v3, %v22_v6  ;;  %v31_v11 = vadd.f32 %v70_v3, %v23_v7  ;;  %v32_v12 = vadd.f32 %v70_v3, %v24_v8  ;;  %v33_v13 = vadd.f32 %v70_v3, %v25_v9 }
   0x7   :  { %vm34_vm0 = vcmp.ge.f32.partialorder %v30_v10, 0.0  ;;  %vm35_vm1 = vcmp.ge.f32.partialorder %v31_v11, 0.0  ;;  %v38_v14 = vmul.f32 0.2, %v30_v10  ;;  %v39_v15 = vmul.f32 0.2, %v31_v11 }
   0x8   :  { %vm36_vm2 = vcmp.ge.f32.partialorder %v32_v12, 0.0  ;;  %vm37_vm3 = vcmp.ge.f32.partialorder %v33_v13, 0.0  ;;  %v40_v16 = vmul.f32 0.2, %v32_v12  ;;  %v41_v17 = vmul.f32 0.2, %v33_v13 }
   0x9   :  { %v42_v18 = vsel %vm34_vm0, %v30_v10, %v38_v14  ;;  %v43_v19 = vsel %vm35_vm1, %v31_v11, %v39_v15 }
   0xa   :  { %v61_v20 = vpack.c.bf16 %v43_v19, %v42_v18  ;;  %v44_v21 = vsel %vm36_vm2, %v32_v12, %v40_v16  ;;  %v45_v22 = vsel %vm37_vm3, %v33_v13, %v41_v17 }
   0xb   :  { %v66_v23 = vpack.c.bf16 %v45_v22, %v44_v21 }
   0xc   :  { %62 = vst [vmem:[%s118_s3] sm:$0xff] %v61_v20  }
   0xd   :  { %68 = vst [vmem:[%s118_s3 + $0x8] sm:$0xff] %v66_v23  }

// kernel: forward.22
= control target key start
LH: loop header
LB: loop body
LE: loop exit
PB: predicated region body
PF: predicated region fallthrough
CT: control target
= control target key end

     0   :  { %s84_s0 = inlined_call_operand.vmem [shape: f32[16,128], index: 0, kind: input, shape index: {}]   ;;  %s85_s1 = inlined_call_operand.vmem [shape: f32[1,128], index: 1, kind: input, shape index: {}]   ;;  %s86_s2 = inlined_call_operand.vmem [shape: f32[1,128], index: 2, kind: input, shape index: {}]   ;;  %s87_s3 = inlined_call_operand.vmem [shape: bf16[16,128], index: 3, kind: output, shape index: {}]  }
   0x1   :  { %v14_v0 = vld [vmem:[%s84_s0] sm:$0xff]  ;;  %v15_v1 = vld [vmem:[%s84_s0 + $0x8] sm:$0xff] }
   0x2   :  { %v47_v2 = vld [vmem:[%s85_s1] ss:$0 sm:$0xff] }
   0x3   :  { %v48_v3 = vld [vmem:[%s86_s2] ss:$0 sm:$0xff]  ;;  %v20_v4 = vmul.f32 %v47_v2, %v14_v0  ;;  %v21_v5 = vmul.f32 %v47_v2, %v15_v1 }
   0x5   :  { %v26_v6 = vadd.f32 %v48_v3, %v20_v4  ;;  %v27_v7 = vadd.f32 %v48_v3, %v21_v5 }
   0x7   :  { %vm28_vm0 = vcmp.ge.f32.partialorder %v26_v6, 0.0  ;;  %vm29_vm1 = vcmp.ge.f32.partialorder %v27_v7, 0.0  ;;  %v30_v8 = vmul.f32 0.2, %v26_v6  ;;  %v31_v9 = vmul.f32 0.2, %v27_v7 }
   0x9   :  { %v32_v10 = vsel %vm28_vm0, %v26_v6, %v30_v8  ;;  %v33_v11 = vsel %vm29_vm1, %v27_v7, %v31_v9 }
   0xa   :  { %v45_v12 = vpack.c.bf16 %v33_v11, %v32_v10 }
   0xc   :  { %46 = vst [vmem:[%s87_s3] sm:$0xff] %v45_v12  }

// kernel: forward.21
= control target key start
LH: loop header
LB: loop body
LE: loop exit
PB: predicated region body
PF: predicated region fallthrough
CT: control target
= control target key end

     0   :  { %s406_s1 = inlined_call_operand.vmem [shape: bf16[256,128], index: 1, kind: input, shape index: {}]   ;;  %s407_s0 = inlined_call_operand.vmem [shape: bf16[16,256], index: 0, kind: input, shape index: {}]   ;;  %s408_s2 = inlined_call_operand.vmem [shape: f32[16,128], index: 2, kind: output, shape index: {0}]   ;;  %s409_s3 = inlined_call_operand.vmem [shape: f32[8,128], index: 3, kind: output, shape index: {1}]   ;;  %s410_s4 = inlined_call_operand.vmem [shape: f32[8,128], index: 4, kind: output, shape index: {2}]  }
   0x1   :  { %v300_v0 = vld [vmem:[%s406_s1 + $0x38] sm:$0xff]  ;;  %v299_v2 = vld [vmem:[%s406_s1 + $0x30] sm:$0xff]  ;;  %v298_v4 = vld [vmem:[%s406_s1 + $0x28] sm:$0xff] }
   0x2   :  { %v308_v1 = vld [vmem:[%s406_s1 + $0x78] sm:$0xff]  ;;  %162 = vmatpush.bf16.msra.mxu0 %v300_v0  ;;  %v307_v3 = vld [vmem:[%s406_s1 + $0x70] sm:$0xff]  ;;  %v306_v5 = vld [vmem:[%s406_s1 + $0x68] sm:$0xff] }
   0x3   :  { %176 = vmatpush.bf16.msra.mxu1 %v308_v1  ;;  %v297_v6 = vld [vmem:[%s406_s1 + $0x20] sm:$0xff]  ;;  %v296_v8 = vld [vmem:[%s406_s1 + $0x18] sm:$0xff]  ;;  %v295_v10 = vld [vmem:[%s406_s1 + $0x10] sm:$0xff] }
   0x4   :  { %v305_v7 = vld [vmem:[%s406_s1 + $0x60] sm:$0xff]  ;;  %v304_v9 = vld [vmem:[%s406_s1 + $0x58] sm:$0xff]  ;;  %v303_v11 = vld [vmem:[%s406_s1 + $0x50] sm:$0xff] }
   0x5   :  { %v294_v12 = vld [vmem:[%s406_s1 + $0x8] sm:$0xff]  ;;  %v293_v14 = vld [vmem:[%s406_s1] sm:$0xff] }
   0x6   :  { %163 = vmatpush.bf16.msra.mxu0 %v299_v2  ;;  %v302_v13 = vld [vmem:[%s406_s1 + $0x48] sm:$0xff]  ;;  %v301_v15 = vld [vmem:[%s406_s1 + $0x40] sm:$0xff] }
   0x7   :  { %177 = vmatpush.bf16.msra.mxu1 %v307_v3  ;;  %v221_v16 = vld [vmem:[%s407_s0] sm:$0xf]  ;;  %v292_v17 = vld [vmem:[%s407_s0 + $0x4] sm:$0xf0]  ;;  %v291_v18 = vld [vmem:[%s407_s0 + $0x4] sm:$0xf] }
   0x8   :  { %v223_v19 = vld [vmem:[%s407_s0 + $0x8] sm:$0xf0]  ;;  %v222_v20 = vor.u32 %v292_v17, %v221_v16 }
   0x9   :  { %v226_v21 = vor.u32 %v291_v18, %v223_v19 }
   0xa   :  { %164 = vmatpush.bf16.msra.mxu0 %v298_v4 }
   0xb   :  { %178 = vmatpush.bf16.msra.mxu1 %v306_v5 }
   0xe   :  { %165 = vmatpush.bf16.msra.mxu0 %v297_v6 }
   0xf   :  { %179 = vmatpush.bf16.msra.mxu1 %v305_v7 }
  0x12   :  { %166 = vmatpush.bf16.msra.mxu0 %v296_v8 }
  0x13   :  { %180 = vmatpush.bf16.msra.mxu1 %v304_v9 }
  0x16   :  { %167 = vmatpush.bf16.msra.mxu0 %v295_v10 }
  0x17   :  { %181 = vmatpush.bf16.msra.mxu1 %v303_v11 }
  0x1a   :  { %168 = vmatpush.bf16.msra.mxu0 %v294_v12 }
  0x1b   :  { %182 = vmatpush.bf16.msra.mxu1 %v302_v13 }
  0x1e   :  { %169 = vmatpush.bf16.msra.mxu0 %v293_v14 }
  0x1f   :  { %183 = vmatpush.bf16.msra.mxu1 %v301_v15 }
  0x21   :  { %170 = vmatmul.bf16.vlgmr.msra.gmra.mxu0 %v222_v20 }
  0x22   :  { %184 = vmatmul.bf16.vlgmr.msra.gmra.mxu1 %v226_v21 }
  0x9e   :  { %v171_v22 = vpop.f32.mrf.mxu0 }
  0x9f   :  { %v185_v23 = vpop.f32.mrf.mxu1 }
  0xa0   :  { %v186_v24 = vadd.f32 %v185_v23, %v171_v22 }
  0xa2   :  { %199 = vst [vmem:[%s408_s2] sm:$0xff] %v186_v24  ;;  %v203_v28 = vmul.f32 %v186_v24, %v186_v24 }
  0xa6   :  { %v173_v25 = vpop.f32.mrf.mxu0 }
  0xa7   :  { %v187_v26 = vpop.f32.mrf.mxu1 }
  0xa8   :  { %v188_v27 = vadd.f32 %v187_v26, %v173_v25 }
  0xaa   :  { %200 = vst [vmem:[%s408_s2 + $0x8] sm:$0xff] %v188_v27  ;;  %v201_v29 = vadd.f32 %v188_v27, %v186_v24  ;;  %v204_v30 = vmul.f32 %v188_v27, %v188_v27 }
  0xac   :  { %202 = vst [vmem:[%s409_s3] sm:$0xff] %v201_v29  ;;  %v205_v31 = vadd.f32 %v204_v30, %v203_v28 }
  0xae   :  { %206 = vst [vmem:[%s410_s4] sm:$0xff] %v205_v31 }

// kernel: tile.47
= control target key start
LH: loop header
LB: loop body
LE: loop exit
PB: predicated region body
PF: predicated region fallthrough
CT: control target
= control target key end

     0   :  { %s22_s0 = inlined_call_operand.vmem [shape: f32[32], index: 0, kind: input, shape index: {}]   ;;  %s23_s1 = inlined_call_operand.vmem [shape: f32[4,32], index: 1, kind: output, shape index: {}]  }
   0x1   :  { %v4_v0 = vld [vmem:[%s22_s0] ss:$0 sm:$0xff] }
   0x2   :  { %5 = vst [vmem:[%s23_s1] sm:$0xf] %v4_v0 }

// kernel: tile.49
= control target key start
LH: loop header
LB: loop body
LE: loop exit
PB: predicated region body
PF: predicated region fallthrough
CT: control target
= control target key end

     0   :  { %s37_s8 = smov 32   ;;  %s38_s9 = smov 64   ;;  %vm7_vm0 = vcmask 261120   ;;  %vm13_vm1 = vcmask 1048320   ;;  %vm19_vm2 = vcmask 785920   ;;  %vm25_vm3 = vcmask 523520   ;;  %s55_s0 = inlined_call_operand.vmem [shape: f32[4,32], index: 0, kind: input, shape index: {}]   ;;  %s56_s1 = inlined_call_operand.vmem [shape: f32[1,128], index: 1, kind: output, shape index: {}]  }
   0x1   :  { %v4_v0 = vld [vmem:[%s55_s0] sm:$0xf]  ;;  %s36_s0 = smov 96  }
   0x2   :  { %5 = vst [vmem:[#allocation1] sm:$0xf] %v4_v0 }
   0x9   :  { %v10_v1 = vld [vmem:[#allocation1 + $0x3] sm:$0x1]   ;;  %v22_v2 = vld [vmem:[#allocation1 + $0x1] sm:$0x1]   ;;  %v16_v3 = vld [vmem:[#allocation1 + $0x2] sm:$0x1]  }
   0xa   :  { %11 = vrot.lane.b32.xlu0 %v10_v1, %s36_s0  ;;  %23 = vrot.lane.b32.xlu1 %v22_v2, %s37_s8  ;;  %v6_v4 = vld [vmem:[#allocation1] sm:$0x1]  }
   0xb   :  { %8 = vst.msk [vmem:[#allocation0] sm:$0x1] %vm7_vm0, %v6_v4  }
  0x12   :  { %17 = vrot.lane.b32.xlu0 %v16_v3, %s38_s9 }
  0x7c   :  { %v12_v5 = vpop.permute.xlu0 %11   ;;  %v24_v6 = vpop.permute.xlu1 %23  }
  0x7d   :  { %14 = vst.msk [vmem:[#allocation0] sm:$0x1] %vm13_vm1, %v12_v5  }
  0x84   :  { %v18_v7 = vpop.permute.xlu0 %17  }
  0x85   :  { %20 = vst.msk [vmem:[#allocation0] sm:$0x1] %vm19_vm2, %v18_v7  }
  0x86   :  { %26 = vst.msk [vmem:[#allocation0] sm:$0x1] %vm25_vm3, %v24_v6  }
  0x8d   :  { %v29_v8 = vld [vmem:[#allocation0] sm:$0x1] }
  0x8e   :  { %32 = vst [vmem:[%s56_s1] sm:$0x1] %v29_v8 }

// kernel: forward.23
= control target key start
LH: loop header
LB: loop body
LE: loop exit
PB: predicated region body
PF: predicated region fallthrough
CT: control target
= control target key end

     0   :  { %s724_s1 = inlined_call_operand.vmem [shape: bf16[512,128], index: 1, kind: input, shape index: {}]   ;;  %s725_s0 = inlined_call_operand.vmem [shape: bf16[16,512], index: 0, kind: input, shape index: {}]   ;;  %s726_s2 = inlined_call_operand.vmem [shape: f32[16,128], index: 2, kind: output, shape index: {0}]   ;;  %s727_s3 = inlined_call_operand.vmem [shape: f32[8,128], index: 3, kind: output, shape index: {1}]   ;;  %s728_s4 = inlined_call_operand.vmem [shape: f32[8,128], index: 4, kind: output, shape index: {2}]  }
   0x1   :  { %v542_v0 = vld [vmem:[%s724_s1 + $0x38] sm:$0xff]  ;;  %v541_v4 = vld [vmem:[%s724_s1 + $0x30] sm:$0xff]  ;;  %v540_v8 = vld [vmem:[%s724_s1 + $0x28] sm:$0xff] }
   0x2   :  { %v550_v1 = vld [vmem:[%s724_s1 + $0x78] sm:$0xff]  ;;  %302 = vmatpush.bf16.msra.mxu0 %v542_v0  ;;  %v549_v5 = vld [vmem:[%s724_s1 + $0x70] sm:$0xff]  ;;  %v548_v9 = vld [vmem:[%s724_s1 + $0x68] sm:$0xff] }
   0x3   :  { %v558_v2 = vld [vmem:[%s724_s1 + $0xb8] sm:$0xff]  ;;  %316 = vmatpush.bf16.msra.mxu1 %v550_v1  ;;  %v557_v6 = vld [vmem:[%s724_s1 + $0xb0] sm:$0xff]  ;;  %v556_v10 = vld [vmem:[%s724_s1 + $0xa8] sm:$0xff] }
   0x4   :  { %v566_v3 = vld [vmem:[%s724_s1 + $0xf8] sm:$0xff]  ;;  %330 = vmatpush.bf16.msra.mxu2 %v558_v2  ;;  %v565_v7 = vld [vmem:[%s724_s1 + $0xf0] sm:$0xff]  ;;  %v564_v11 = vld [vmem:[%s724_s1 + $0xe8] sm:$0xff] }
   0x5   :  { %344 = vmatpush.bf16.msra.mxu3 %v566_v3  ;;  %v539_v12 = vld [vmem:[%s724_s1 + $0x20] sm:$0xff]  ;;  %v538_v16 = vld [vmem:[%s724_s1 + $0x18] sm:$0xff]  ;;  %v537_v20 = vld [vmem:[%s724_s1 + $0x10] sm:$0xff] }
   0x6   :  { %303 = vmatpush.bf16.msra.mxu0 %v541_v4  ;;  %v547_v13 = vld [vmem:[%s724_s1 + $0x60] sm:$0xff]  ;;  %v546_v17 = vld [vmem:[%s724_s1 + $0x58] sm:$0xff]  ;;  %v545_v21 = vld [vmem:[%s724_s1 + $0x50] sm:$0xff] }
   0x7   :  { %317 = vmatpush.bf16.msra.mxu1 %v549_v5  ;;  %v555_v14 = vld [vmem:[%s724_s1 + $0xa0] sm:$0xff]  ;;  %v554_v18 = vld [vmem:[%s724_s1 + $0x98] sm:$0xff]  ;;  %v553_v22 = vld [vmem:[%s724_s1 + $0x90] sm:$0xff] }
   0x8   :  { %331 = vmatpush.bf16.msra.mxu2 %v557_v6  ;;  %v563_v15 = vld [vmem:[%s724_s1 + $0xe0] sm:$0xff]  ;;  %v562_v19 = vld [vmem:[%s724_s1 + $0xd8] sm:$0xff]  ;;  %v561_v23 = vld [vmem:[%s724_s1 + $0xd0] sm:$0xff] }
   0x9   :  { %345 = vmatpush.bf16.msra.mxu3 %v565_v7  ;;  %v536_v24 = vld [vmem:[%s724_s1 + $0x8] sm:$0xff]  ;;  %v535_v28 = vld [vmem:[%s724_s1] sm:$0xff]  ;;  %v533_v33 = vld [vmem:[%s725_s0 + $0xc] sm:$0xf0] }
   0xa   :  { %304 = vmatpush.bf16.msra.mxu0 %v540_v8  ;;  %v544_v25 = vld [vmem:[%s724_s1 + $0x48] sm:$0xff]  ;;  %v543_v29 = vld [vmem:[%s724_s1 + $0x40] sm:$0xff]  ;;  %v391_v35 = vld [vmem:[%s725_s0 + $0x10] sm:$0xf0] }
   0xb   :  { %318 = vmatpush.bf16.msra.mxu1 %v548_v9  ;;  %v552_v26 = vld [vmem:[%s724_s1 + $0x88] sm:$0xff]  ;;  %v551_v30 = vld [vmem:[%s724_s1 + $0x80] sm:$0xff]  ;;  %v534_v37 = vld [vmem:[%s725_s0 + $0x14] sm:$0xf0] }
   0xc   :  { %332 = vmatpush.bf16.msra.mxu2 %v556_v10  ;;  %v560_v27 = vld [vmem:[%s724_s1 + $0xc8] sm:$0xff]  ;;  %v559_v31 = vld [vmem:[%s724_s1 + $0xc0] sm:$0xff]  ;;  %v399_v39 = vld [vmem:[%s725_s0 + $0x18] sm:$0xf0] }
   0xd   :  { %346 = vmatpush.bf16.msra.mxu3 %v564_v11  ;;  %v389_v32 = vld [vmem:[%s725_s0] sm:$0xf]  ;;  %v531_v34 = vld [vmem:[%s725_s0 + $0x4] sm:$0xf]  ;;  %v397_v36 = vld [vmem:[%s725_s0 + $0x8] sm:$0xf] }
   0xe   :  { %305 = vmatpush.bf16.msra.mxu0 %v539_v12  ;;  %v532_v38 = vld [vmem:[%s725_s0 + $0xc] sm:$0xf]  ;;  %v390_v40 = vor.u32 %v533_v33, %v389_v32  ;;  %v394_v41 = vor.u32 %v531_v34, %v391_v35  ;;  %v398_v42 = vor.u32 %v534_v37, %v397_v36 }
   0xf   :  { %319 = vmatpush.bf16.msra.mxu1 %v547_v13  ;;  %v402_v43 = vor.u32 %v532_v38, %v399_v39 }
  0x10   :  { %333 = vmatpush.bf16.msra.mxu2 %v555_v14 }
  0x11   :  { %347 = vmatpush.bf16.msra.mxu3 %v563_v15 }
  0x12   :  { %306 = vmatpush.bf16.msra.mxu0 %v538_v16 }
  0x13   :  { %320 = vmatpush.bf16.msra.mxu1 %v546_v17 }
  0x14   :  { %334 = vmatpush.bf16.msra.mxu2 %v554_v18 }
  0x15   :  { %348 = vmatpush.bf16.msra.mxu3 %v562_v19 }
  0x16   :  { %307 = vmatpush.bf16.msra.mxu0 %v537_v20 }
  0x17   :  { %321 = vmatpush.bf16.msra.mxu1 %v545_v21 }
  0x18   :  { %335 = vmatpush.bf16.msra.mxu2 %v553_v22 }
  0x19   :  { %349 = vmatpush.bf16.msra.mxu3 %v561_v23 }
  0x1a   :  { %308 = vmatpush.bf16.msra.mxu0 %v536_v24 }
  0x1b   :  { %322 = vmatpush.bf16.msra.mxu1 %v544_v25 }
  0x1c   :  { %336 = vmatpush.bf16.msra.mxu2 %v552_v26 }
  0x1d   :  { %350 = vmatpush.bf16.msra.mxu3 %v560_v27 }
  0x1e   :  { %309 = vmatpush.bf16.msra.mxu0 %v535_v28 }
  0x1f   :  { %323 = vmatpush.bf16.msra.mxu1 %v543_v29 }
  0x20   :  { %337 = vmatpush.bf16.msra.mxu2 %v551_v30 }
  0x21   :  { %351 = vmatpush.bf16.msra.mxu3 %v559_v31  ;;  %310 = vmatmul.bf16.vlgmr.msra.gmra.mxu0 %v390_v40 }
  0x22   :  { %324 = vmatmul.bf16.vlgmr.msra.gmra.mxu1 %v394_v41 }
  0x23   :  { %338 = vmatmul.bf16.vlgmr.msra.gmra.mxu2 %v398_v42 }
  0x24   :  { %352 = vmatmul.bf16.vlgmr.msra.gmra.mxu3 %v402_v43 }
  0x9e   :  { %v311_v44 = vpop.f32.mrf.mxu0 }
  0x9f   :  { %v325_v45 = vpop.f32.mrf.mxu1 }
  0xa0   :  { %v326_v46 = vadd.f32 %v325_v45, %v311_v44 }
  0xa6   :  { %v339_v47 = vpop.f32.mrf.mxu2  ;;  %v313_v51 = vpop.f32.mrf.mxu0 }
  0xa7   :  { %v353_v48 = vpop.f32.mrf.mxu3  ;;  %v340_v49 = vadd.f32 %v339_v47, %v326_v46  ;;  %v327_v52 = vpop.f32.mrf.mxu1 }
  0xa8   :  { %v328_v53 = vadd.f32 %v327_v52, %v313_v51 }
  0xa9   :  { %v354_v50 = vadd.f32 %v353_v48, %v340_v49 }
  0xab   :  { %367 = vst [vmem:[%s726_s2] sm:$0xff] %v354_v50  ;;  %v371_v58 = vmul.f32 %v354_v50, %v354_v50 }
  0xae   :  { %v341_v54 = vpop.f32.mrf.mxu2 }
  0xaf   :  { %v342_v55 = vadd.f32 %v341_v54, %v328_v53  ;;  %v355_v56 = vpop.f32.mrf.mxu3 }
  0xb1   :  { %v356_v57 = vadd.f32 %v355_v56, %v342_v55 }
  0xb3   :  { %368 = vst [vmem:[%s726_s2 + $0x8] sm:$0xff] %v356_v57  ;;  %v369_v59 = vadd.f32 %v356_v57, %v354_v50  ;;  %v372_v60 = vmul.f32 %v356_v57, %v356_v57 }
  0xb5   :  { %370 = vst [vmem:[%s727_s3] sm:$0xff] %v369_v59  ;;  %v373_v61 = vadd.f32 %v372_v60, %v371_v58 }
  0xb7   :  { %374 = vst [vmem:[%s728_s4] sm:$0xff] %v373_v61 }

// kernel: forward.25
= control target key start
LH: loop header
LB: loop body
LE: loop exit
PB: predicated region body
PF: predicated region fallthrough
CT: control target
= control target key end

     0   :  { %s1061_s15 = smov 0   ;;  %s1063_s16 = smov 0   ;;  %s1174_s0 = inlined_call_operand.vmem [shape: bf16[16,1152], index: 0, kind: input, shape index: {}]   ;;  %s1175_s1 = inlined_call_operand.vmem [shape: bf16[1152,128], index: 1, kind: input, shape index: {}]   ;;  %s1176_s2 = inlined_call_operand.vmem [shape: f32[16,128], index: 2, kind: output, shape index: {0}]   ;;  %s1177_s3 = inlined_call_operand.vmem [shape: f32[8,128], index: 3, kind: output, shape index: {1}]   ;;  %s1178_s4 = inlined_call_operand.vmem [shape: f32[8,128], index: 4, kind: output, shape index: {2}]  }
   0x1   :  { %s1065_s17 = smov 0   ;;  %s1067_s18 = smov 0  }
   0x2   :  { %s1069_s19 = smov 0  }
   0x3 LB: > { %s27_s20 = sadd.s32 1, %s1029_s18  ;;  %p50_p1 = scmp.ne.s32.totalorder %s1021_s16, %s1017_s15  ;;  %s1033_s19 = sphi %s1069_s19, %s15_s19   ;;  %s1029_s18 = sphi %s1067_s18, %s1182_s18   ;;  %s1025_s17 = sphi %s1065_s17, %s1181_s17   ;;  %s1021_s16 = sphi %s1063_s16, %s1180_s16   ;;  %s1017_s15 = sphi %s1061_s15, %s1179_s15  }
   0x4   : > { %p28_p0 = scmp.ge.s32.totalorder %s27_s20, 3  ;;  %p51_p2 = scmp.eq.s32.totalorder %s1033_s19, 0 }
   0x5   : > { %s43_s22 = sadd.s32 1, %s1021_s16  ;;  %p800_p5 = scmp.ge.s32.totalorder %s1033_s19, 3 }
   0x6   : > { %s1184_s20 = smov (%p28_p0, %s27_s20), 0  ;;  %p52_p3 = por %p51_p2, %p50_p1 }
   0x7   : > { %s39_s21 = ssub.s32 %s1029_s18, %s1184_s20  ;;  %188 = sbr.rel (%p800_p5) target bundleno = 21 (0x15), region = 16 }
   0x8   : > { %p41_p4 = scmp.eq.s32.totalorder %s39_s21, 0 }
   0xa   : > { %s1096_s23 = scalar_select %p41_p4, %s1021_s16, %s43_s22  }
   0xc   : > { %191 = sbr.rel (!%p52_p3) target bundleno = 21 (0x15), region = 20  ;;  %s193_s24 = sand.u32 (%p52_p3), 1, %s1021_s16  }
   0xd   : > { %s924_s25 = smul.u32 (%p52_p3), 12, %s1029_s18 }
   0xe   : > { %s952_s26 = smul.u32 (%p52_p3), 24, %s193_s24 }
   0xf   : > { %s201_s29 = scalar_lea.vmem (%p52_p3), %s1174_s0, %s924_s25 }
  0x10   : > { %v216_v0 = vld [vmem:[%s201_s29] sm:$0xff] (%p52_p3)  ;;  %v802_v2 = vld [vmem:[%s201_s29 + $0x8] sm:$0xf] (%p52_p3)  ;;  %s195_s30 = scalar_lea.vmem (%p52_p3), [#allocation3], %s952_s26  ;;  %v804_v3 = vld [vmem:[%s201_s29 + $0x2c] sm:$0xf] (%p52_p3) }
  0x11   : > { %v218_v1 = vld [vmem:[%s201_s29 + $0x24] sm:$0xff]  ;;  %217 = vst [vmem:[%s195_s30] sm:$0xff] %v216_v0 }
  0x12   : > { %219 = vst [vmem:[%s195_s30 + $0xc] sm:$0xff] %v218_v1 }
  0x13   : > { %803 = vst [vmem:[%s195_s30 + $0x8] sm:$0xf] %v802_v2 }
  0x14   : > { %805 = vst [vmem:[%s195_s30 + $0x14] sm:$0xf] %v804_v3 }
  0x15 PF: > { %p806_p6 = scmp.ge.s32.totalorder %s1033_s19, 1  ;;  %p248_p7 = scmp.lt.s32.totalorder %s1033_s19, 4 }
  0x17   : > { %p249_p8 = pnand %p806_p6, %p248_p7 }
  0x18   : > { %s255_s5 = sand.u32 (!%p249_p8), 1, %s1017_s15   ;;  %s307_s6 = smul.u32 (!%p249_p8), 48, %s1025_s17 }
  0x19   : > { %252 = sbr.rel (%p249_p8) target bundleno = 229 (0xe5), region = 50  ;;  %p808_p10 = scmp.ne.s32.totalorder (!%p249_p8), %s1025_s17, 0 }
  0x1a   : > { %s953_s7 = smul.u32 (!%p249_p8), 24, %s255_s5  ;;  %p308_p9 = scmp.lt.s32.totalorder (!%p249_p8), %s307_s6, 143 }
  0x1c   : > { %s1113_s12 = scalar_lea.vmem (!%p249_p8), [#allocation3], %s953_s7 }
  0x1e   : > { %s1186_s6 = smov (!%p308_p9, %s307_s6), 143  ;;  %342 = sbr.rel (%p808_p10) target bundleno = 38 (0x26), region = 58 }
  0x1f   : > { %s807_s8 = sshll.u32 %s1186_s6, 2 }
  0x20   : > { %s1111_s11 = scalar_lea.vmem %s1175_s1, %s807_s8 }
  0x23   : > { %v1035_v4 = vmov 0.0  }
  0x24   : > { %343 = vst [vmem:[#allocation2] sm:$0xff] %v1035_v4 }
  0x25   : > { %344 = vst [vmem:[#allocation2 + $0x8] sm:$0xff] %v1035_v4 }
  0x26 PF: > { %v935_v5 = vld [vmem:[%s1111_s11 + $0x38] sm:$0xff]  ;;  %v934_v8 = vld [vmem:[%s1111_s11 + $0x30] sm:$0xff]  ;;  %v933_v11 = vld [vmem:[%s1111_s11 + $0x28] sm:$0xff]  ;;  %p917_p11 = scmp.ne.s32.totalorder %s1025_s17, 2 }
  0x27   : > { %v943_v6 = vld [vmem:[%s1111_s11 + $0x78] sm:$0xff]  ;;  %559 = vmatpush.bf16.msra.mxu0 %v935_v5  ;;  %v942_v9 = vld [vmem:[%s1111_s11 + $0x70] sm:$0xff]  ;;  %v941_v12 = vld [vmem:[%s1111_s11 + $0x68] sm:$0xff] }
  0x28   : > { %v951_v7 = vld [vmem:[%s1111_s11 + $0xb8] sm:$0xff]  ;;  %573 = vmatpush.bf16.msra.mxu1 %v943_v6  ;;  %v950_v10 = vld [vmem:[%s1111_s11 + $0xb0] sm:$0xff]  ;;  %v949_v13 = vld [vmem:[%s1111_s11 + $0xa8] sm:$0xff] }
  0x29   : > { %587 = vmatpush.bf16.msra.mxu2 %v951_v7  ;;  %v932_v14 = vld [vmem:[%s1111_s11 + $0x20] sm:$0xff]  ;;  %v931_v17 = vld [vmem:[%s1111_s11 + $0x18] sm:$0xff]  ;;  %v930_v20 = vld [vmem:[%s1111_s11 + $0x10] sm:$0xff] }
  0x2a   : > { %v940_v15 = vld [vmem:[%s1111_s11 + $0x60] sm:$0xff]  ;;  %v939_v18 = vld [vmem:[%s1111_s11 + $0x58] sm:$0xff]  ;;  %v938_v21 = vld [vmem:[%s1111_s11 + $0x50] sm:$0xff] }
  0x2b   : > { %560 = vmatpush.bf16.msra.mxu0 %v934_v8  ;;  %v948_v16 = vld [vmem:[%s1111_s11 + $0xa0] sm:$0xff]  ;;  %v947_v19 = vld [vmem:[%s1111_s11 + $0x98] sm:$0xff]  ;;  %v946_v22 = vld [vmem:[%s1111_s11 + $0x90] sm:$0xff] }
  0x2c   : > { %574 = vmatpush.bf16.msra.mxu1 %v942_v9  ;;  %v929_v23 = vld [vmem:[%s1111_s11 + $0x8] sm:$0xff]  ;;  %v928_v26 = vld [vmem:[%s1111_s11] sm:$0xff]  ;;  %v926_v29 = vld [vmem:[%s1113_s12 + $0x8] sm:$0xf0] }
  0x2d   : > { %588 = vmatpush.bf16.msra.mxu2 %v950_v10  ;;  %v937_v24 = vld [vmem:[%s1111_s11 + $0x48] sm:$0xff]  ;;  %v936_v27 = vld [vmem:[%s1111_s11 + $0x40] sm:$0xff]  ;;  %v819_v33 = vld [vmem:[%s1113_s12 + $0x8] sm:$0xf] }
  0x2e   : > { %v945_v25 = vld [vmem:[%s1111_s11 + $0x88] sm:$0xff]  ;;  %v813_v31 = vld [vmem:[%s1113_s12 + $0xc] sm:$0xf0]  ;;  %v927_v34 = vld [vmem:[%s1113_s12 + $0x10] sm:$0xf0] }
  0x2f   : > { %561 = vmatpush.bf16.msra.mxu0 %v933_v11  ;;  %v811_v28 = vld [vmem:[%s1113_s12] sm:$0xf]  ;;  %v925_v30 = vld [vmem:[%s1113_s12 + $0x4] sm:$0xf]  ;;  %v944_v32 = vld [vmem:[%s1111_s11 + $0x80] sm:$0xff]  ;;  %v820_v37 = vor.u32 %v927_v34, %v819_v33 }
  0x30   : > { %575 = vmatpush.bf16.msra.mxu1 %v941_v12  ;;  %v812_v35 = vor.u32 %v926_v29, %v811_v28  ;;  %v816_v36 = vor.u32 %v925_v30, %v813_v31  ;;  %v345_v41 = vld [vmem:[#allocation2] sm:$0xff]  ;;  %v346_v48 = vld [vmem:[#allocation2 + $0x8] sm:$0xff] }
  0x31   : > { %589 = vmatpush.bf16.msra.mxu2 %v949_v13 }
  0x33   : > { %562 = vmatpush.bf16.msra.mxu0 %v932_v14 }
  0x34   : > { %576 = vmatpush.bf16.msra.mxu1 %v940_v15 }
  0x35   : > { %590 = vmatpush.bf16.msra.mxu2 %v948_v16 }
  0x37   : > { %563 = vmatpush.bf16.msra.mxu0 %v931_v17 }
  0x38   : > { %577 = vmatpush.bf16.msra.mxu1 %v939_v18 }
  0x39   : > { %591 = vmatpush.bf16.msra.mxu2 %v947_v19 }
  0x3b   : > { %564 = vmatpush.bf16.msra.mxu0 %v930_v20 }
  0x3c   : > { %578 = vmatpush.bf16.msra.mxu1 %v938_v21 }
  0x3d   : > { %592 = vmatpush.bf16.msra.mxu2 %v946_v22 }
  0x3f   : > { %565 = vmatpush.bf16.msra.mxu0 %v929_v23 }
  0x40   : > { %579 = vmatpush.bf16.msra.mxu1 %v937_v24 }
  0x41   : > { %593 = vmatpush.bf16.msra.mxu2 %v945_v25 }
  0x43   : > { %566 = vmatpush.bf16.msra.mxu0 %v928_v26 }
  0x44   : > { %580 = vmatpush.bf16.msra.mxu1 %v936_v27 }
  0x45   : > { %594 = vmatpush.bf16.msra.mxu2 %v944_v32 }
  0x46   : > { %567 = vmatmul.bf16.vlgmr.msra.gmra.mxu0 %v812_v35 }
  0x47   : > { %581 = vmatmul.bf16.vlgmr.msra.gmra.mxu1 %v816_v36 }
  0x48   : > { %595 = vmatmul.bf16.vlgmr.msra.gmra.mxu2 %v820_v37 }
  0xc3   : > { %v568_v38 = vpop.f32.mrf.mxu0 }
  0xc4   : > { %v582_v39 = vpop.f32.mrf.mxu1 }
  0xc5   : > { %v583_v40 = vadd.f32 %v582_v39, %v568_v38 }
  0xcb   : > { %v596_v42 = vpop.f32.mrf.mxu2  ;;  %v570_v45 = vpop.f32.mrf.mxu0 }
  0xcc   : > { %v597_v43 = vadd.f32 %v596_v42, %v583_v40  ;;  %v584_v46 = vpop.f32.mrf.mxu1 }
  0xcd   : > { %v585_v47 = vadd.f32 %v584_v46, %v570_v45 }
  0xce   : > { %v601_v44 = vadd.f32 %v597_v43, %v345_v41 }
  0xd0   : > { %603 = vst [vmem:[#allocation2] sm:$0xff] %v601_v44 }
  0xd3   : > { %v598_v49 = vpop.f32.mrf.mxu2 }
  0xd4   : > { %v599_v50 = vadd.f32 %v598_v49, %v585_v47  ;;  %608 = sbr.rel (%p917_p11) target bundleno = 229 (0xe5), region = 62 }
  0xd6   : > { %v602_v51 = vadd.f32 %v599_v50, %v346_v48 }
  0xd8   : > { %604 = vst [vmem:[#allocation2 + $0x8] sm:$0xff] %v602_v51 }
  0xd9   : > { %v609_v52 = vld [vmem:[#allocation2] sm:$0xff] }
  0xda   : > { %611 = vst [vmem:[%s1176_s2] sm:$0xff] %v609_v52  ;;  %v615_v55 = vmul.f32 %v609_v52, %v609_v52 }
  0xdf   : > { %v610_v53 = vld [vmem:[#allocation2 + $0x8] sm:$0xff] }
  0xe0   : > { %v613_v54 = vadd.f32 %v610_v53, %v609_v52  ;;  %v616_v56 = vmul.f32 %v610_v53, %v610_v53  ;;  %612 = vst [vmem:[%s1176_s2 + $0x8] sm:$0xff] %v610_v53 }
  0xe2   : > { %614 = vst [vmem:[%s1177_s3] sm:$0xff] %v613_v54  ;;  %v617_v57 = vadd.f32 %v616_v56, %v615_v55 }
  0xe4   : > { %618 = vst [vmem:[%s1178_s4] sm:$0xff] %v617_v57 }
  0xe5 PF: > { %s15_s19 = sadd.s32 1, %s1033_s19   ;;  %s1179_s15 = smov %s1021_s16 }
  0xe6   : > { %p12_p12 = scmp.ge.s32.totalorder %s15_s19, 5   ;;  %s1180_s16 = smov %s1096_s23 }
  0xe7   : > { %s1181_s17 = smov %s1029_s18  ;;  %s1182_s18 = smov %s1184_s20 }
  0xe8   :  { %14 = sbr.rel (!%p12_p12) target bundleno = 3 (0x3), region = 130 }

// kernel: forward.26
= control target key start
LH: loop header
LB: loop body
LE: loop exit
PB: predicated region body
PF: predicated region fallthrough
CT: control target
= control target key end

     0   :  { %s80_s0 = inlined_call_operand.vmem [shape: f32[16,128], index: 0, kind: input, shape index: {}]   ;;  %s81_s1 = inlined_call_operand.vmem [shape: f32[1,128], index: 1, kind: input, shape index: {}]   ;;  %s82_s2 = inlined_call_operand.vmem [shape: f32[1,128], index: 2, kind: input, shape index: {}]   ;;  %s83_s3 = inlined_call_operand.vmem [shape: bf16[16,128], index: 3, kind: output, shape index: {}]  }
   0x1   :  { %v14_v0 = vld [vmem:[%s80_s0] sm:$0xff]  ;;  %v15_v1 = vld [vmem:[%s80_s0 + $0x8] sm:$0xff] }
   0x2   :  { %v43_v2 = vld [vmem:[%s81_s1] ss:$0 sm:$0xff] }
   0x3   :  { %v44_v3 = vld [vmem:[%s82_s2] ss:$0 sm:$0xff]  ;;  %v20_v4 = vmul.f32 %v43_v2, %v14_v0  ;;  %v21_v5 = vmul.f32 %v43_v2, %v15_v1 }
   0x5   :  { %v26_v6 = vadd.f32 %v44_v3, %v20_v4  ;;  %v27_v7 = vadd.f32 %v44_v3, %v21_v5 }
   0x7   :  { %v28_v8 = vmax.f32 %v26_v6, 0.0  ;;  %v29_v9 = vmax.f32 %v27_v7, 0.0 }
   0x9   :  { %v41_v10 = vpack.c.bf16 %v29_v9, %v28_v8 }
   0xb   :  { %42 = vst [vmem:[%s83_s3] sm:$0xff] %v41_v10  }

// kernel: tile.57
= control target key start
LH: loop header
LB: loop body
LE: loop exit
PB: predicated region body
PF: predicated region fallthrough
CT: control target
= control target key end

     0   :  { %s22_s0 = inlined_call_operand.vmem [shape: f32[16], index: 0, kind: input, shape index: {}]   ;;  %s23_s1 = inlined_call_operand.vmem [shape: f32[4,16], index: 1, kind: output, shape index: {}]  }
   0x1   :  { %v4_v0 = vld [vmem:[%s22_s0] ss:$0 sm:$0xff] }
   0x2   :  { %5 = vst [vmem:[%s23_s1] sm:$0xf] %v4_v0 }

// kernel: tile.59
= control target key start
LH: loop header
LB: loop body
LE: loop exit
PB: predicated region body
PF: predicated region fallthrough
CT: control target
= control target key end

     0   :  { %s37_s8 = smov 16   ;;  %s38_s9 = smov 32   ;;  %vm7_vm0 = vcmask 130048   ;;  %vm13_vm1 = vcmask 523648   ;;  %vm19_vm2 = vcmask 392448   ;;  %vm25_vm3 = vcmask 261248   ;;  %s55_s0 = inlined_call_operand.vmem [shape: f32[4,16], index: 0, kind: input, shape index: {}]   ;;  %s56_s1 = inlined_call_operand.vmem [shape: f32[1,64], index: 1, kind: output, shape index: {}]  }
   0x1   :  { %v4_v0 = vld [vmem:[%s55_s0] sm:$0xf]  ;;  %s36_s0 = smov 48  }
   0x2   :  { %5 = vst [vmem:[#allocation1] sm:$0xf] %v4_v0 }
   0x9   :  { %v10_v1 = vld [vmem:[#allocation1 + $0x3] sm:$0x1]   ;;  %v22_v2 = vld [vmem:[#allocation1 + $0x1] sm:$0x1]   ;;  %v16_v3 = vld [vmem:[#allocation1 + $0x2] sm:$0x1]  }
   0xa   :  { %11 = vrot.lane.b32.xlu0 %v10_v1, %s36_s0  ;;  %23 = vrot.lane.b32.xlu1 %v22_v2, %s37_s8  ;;  %v6_v4 = vld [vmem:[#allocation1] sm:$0x1]  }
   0xb   :  { %8 = vst.msk [vmem:[#allocation0] sm:$0x1] %vm7_vm0, %v6_v4  }
  0x12   :  { %17 = vrot.lane.b32.xlu0 %v16_v3, %s38_s9 }
  0x7c   :  { %v12_v5 = vpop.permute.xlu0 %11   ;;  %v24_v6 = vpop.permute.xlu1 %23  }
  0x7d   :  { %14 = vst.msk [vmem:[#allocation0] sm:$0x1] %vm13_vm1, %v12_v5  }
  0x84   :  { %v18_v7 = vpop.permute.xlu0 %17  }
  0x85   :  { %20 = vst.msk [vmem:[#allocation0] sm:$0x1] %vm19_vm2, %v18_v7  }
  0x86   :  { %26 = vst.msk [vmem:[#allocation0] sm:$0x1] %vm25_vm3, %v24_v6  }
  0x8d   :  { %v29_v8 = vld [vmem:[#allocation0] sm:$0x1] }
  0x8e   :  { %32 = vst [vmem:[%s56_s1] sm:$0x1] %v29_v8 }

// kernel: forward.27
= control target key start
LH: loop header
LB: loop body
LE: loop exit
PB: predicated region body
PF: predicated region fallthrough
CT: control target
= control target key end

     0   :  { %s804_s15 = smov 0   ;;  %s806_s16 = smov 0   ;;  %s883_s0 = inlined_call_operand.vmem [shape: bf16[16,640], index: 0, kind: input, shape index: {}]   ;;  %s884_s1 = inlined_call_operand.vmem [shape: bf16[640,128], index: 1, kind: input, shape index: {}]   ;;  %s885_s2 = inlined_call_operand.vmem [shape: f32[16,128], index: 2, kind: output, shape index: {0}]   ;;  %s886_s3 = inlined_call_operand.vmem [shape: f32[8,128], index: 3, kind: output, shape index: {1}]   ;;  %s887_s4 = inlined_call_operand.vmem [shape: f32[8,128], index: 4, kind: output, shape index: {2}]  }
   0x1   :  { %s808_s17 = smov 0   ;;  %s810_s18 = smov 0  }
   0x2   :  { %s812_s19 = smov 0  }
   0x3 LB: > { %s27_s20 = sadd.s32 1, %s772_s18  ;;  %p50_p1 = scmp.ne.s32.totalorder %s764_s16, %s760_s15  ;;  %s776_s19 = sphi %s812_s19, %s15_s19   ;;  %s772_s18 = sphi %s810_s18, %s891_s18   ;;  %s768_s17 = sphi %s808_s17, %s890_s17   ;;  %s764_s16 = sphi %s806_s16, %s889_s16   ;;  %s760_s15 = sphi %s804_s15, %s888_s15  }
   0x4   : > { %p28_p0 = scmp.ge.s32.totalorder %s27_s20, 5  ;;  %p51_p2 = scmp.eq.s32.totalorder %s776_s19, 0 }
   0x5   : > { %s43_s22 = sadd.s32 1, %s764_s16  ;;  %p637_p5 = scmp.ge.s32.totalorder %s776_s19, 5 }
   0x6   : > { %s893_s20 = smov (%p28_p0, %s27_s20), 0  ;;  %p52_p3 = por %p51_p2, %p50_p1 }
   0x7   : > { %s39_s21 = ssub.s32 %s772_s18, %s893_s20  ;;  %188 = sbr.rel (%p637_p5) target bundleno = 18 (0x12), region = 16 }
   0x8   : > { %p41_p4 = scmp.eq.s32.totalorder %s39_s21, 0 }
   0xa   : > { %s839_s23 = scalar_select %p41_p4, %s764_s16, %s43_s22  }
   0xc   : > { %191 = sbr.rel (!%p52_p3) target bundleno = 18 (0x12), region = 20  ;;  %s193_s24 = sand.u32 (%p52_p3), 1, %s764_s16  }
   0xd   : > { %s639_s25 = sshll.u32 (%p52_p3), %s772_s18, 2  ;;  %s638_s26 = sshll.u32 (%p52_p3), %s193_s24, 3 }
   0xe   : > { %s200_s29 = scalar_lea.vmem (%p52_p3), %s883_s0, %s639_s25  ;;  %s195_s30 = scalar_lea.vmem (%p52_p3), [#allocation3], %s638_s26 }
   0xf   : > { %v217_v0 = vld [vmem:[%s200_s29] sm:$0xf] (%p52_p3)  ;;  %v219_v1 = vld [vmem:[%s200_s29 + $0x14] sm:$0xf] (%p52_p3) }
  0x10   : > { %218 = vst [vmem:[%s195_s30] sm:$0xf] (%p52_p3), %v217_v0 }
  0x11   : > { %220 = vst [vmem:[%s195_s30 + $0x4] sm:$0xf] %v219_v1 }
  0x12 PF: > { %p640_p6 = scmp.ge.s32.totalorder %s776_s19, 1  ;;  %p259_p7 = scmp.lt.s32.totalorder %s776_s19, 6 }
  0x14   : > { %p260_p8 = pnand %p640_p6, %p259_p7 }
  0x15   : > { %s266_s5 = sand.u32 (!%p260_p8), 1, %s760_s15   ;;  %s642_s6 = sshll.u32 (!%p260_p8), %s768_s17, 4 }
  0x16   : > { %263 = sbr.rel (%p260_p8) target bundleno = 216 (0xd8), region = 65  ;;  %s641_s7 = sshll.u32 (!%p260_p8), %s266_s5, 3 }
  0x17   : > { %p318_p9 = scmp.lt.s32.totalorder (!%p260_p8), %s642_s6, 79  ;;  %s268_s12 = scalar_lea.vmem (!%p260_p8), [#allocation3], %s641_s7 }
  0x18   : > { %p644_p10 = scmp.ne.s32.totalorder (!%p260_p8), %s768_s17, 0 }
  0x1b   : > { %s895_s6 = smov (!%p318_p9, %s642_s6), 79  ;;  %352 = sbr.rel (%p644_p10) target bundleno = 35 (0x23), region = 73 }
  0x1c   : > { %s643_s8 = sshll.u32 %s895_s6, 2 }
  0x1d   : > { %s324_s11 = scalar_lea.vmem %s884_s1, %s643_s8 }
  0x20   : > { %v778_v2 = vmov 0.0  }
  0x21   : > { %353 = vst [vmem:[#allocation2] sm:$0xff] %v778_v2 }
  0x22   : > { %354 = vst [vmem:[#allocation2 + $0x8] sm:$0xff] %v778_v2 }
  0x23 PF: > { %v696_v3 = vld [vmem:[%s324_s11 + $0x38] sm:$0xff]  ;;  %v695_v4 = vld [vmem:[%s324_s11 + $0x30] sm:$0xff]  ;;  %v694_v5 = vld [vmem:[%s324_s11 + $0x28] sm:$0xff]  ;;  %p681_p11 = scmp.ne.s32.totalorder %s768_s17, 4 }
  0x24   : > { %429 = vmatpush.bf16.msra.mxu0 %v696_v3  ;;  %v693_v6 = vld [vmem:[%s324_s11 + $0x20] sm:$0xff]  ;;  %v692_v7 = vld [vmem:[%s324_s11 + $0x18] sm:$0xff]  ;;  %v691_v8 = vld [vmem:[%s324_s11 + $0x10] sm:$0xff] }
  0x25   : > { %v690_v9 = vld [vmem:[%s324_s11 + $0x8] sm:$0xff]  ;;  %v689_v10 = vld [vmem:[%s324_s11] sm:$0xff]  ;;  %v688_v11 = vld [vmem:[%s268_s12] sm:$0xff] }
  0x28   : > { %430 = vmatpush.bf16.msra.mxu0 %v695_v4  ;;  %v355_v12 = vld [vmem:[#allocation2] sm:$0xff] }
  0x29   : > { %v356_v15 = vld [vmem:[#allocation2 + $0x8] sm:$0xff] }
  0x2c   : > { %431 = vmatpush.bf16.msra.mxu0 %v694_v5 }
  0x30   : > { %432 = vmatpush.bf16.msra.mxu0 %v693_v6 }
  0x34   : > { %433 = vmatpush.bf16.msra.mxu0 %v692_v7 }
  0x38   : > { %434 = vmatpush.bf16.msra.mxu0 %v691_v8 }
  0x3c   : > { %435 = vmatpush.bf16.msra.mxu0 %v690_v9 }
  0x40   : > { %436 = vmatpush.bf16.msra.mxu0 %v689_v10 }
  0x43   : > { %437 = vmatmul.bf16.vlgmr.msra.gmra.mxu0 %v688_v11 }
  0xc0   : > { %v438_v13 = vpop.f32.mrf.mxu0 }
  0xc1   : > { %v443_v14 = vadd.f32 %v438_v13, %v355_v12 }
  0xc3   : > { %445 = vst [vmem:[#allocation2] sm:$0xff] %v443_v14 }
  0xc7   : > { %450 = sbr.rel (%p681_p11) target bundleno = 216 (0xd8), region = 77 }
  0xc8   : > { %v440_v16 = vpop.f32.mrf.mxu0 }
  0xc9   : > { %v444_v17 = vadd.f32 %v440_v16, %v356_v15 }
  0xcb   : > { %446 = vst [vmem:[#allocation2 + $0x8] sm:$0xff] %v444_v17 }
  0xcc   : > { %v451_v18 = vld [vmem:[#allocation2] sm:$0xff] }
  0xcd   : > { %453 = vst [vmem:[%s885_s2] sm:$0xff] %v451_v18  ;;  %v457_v21 = vmul.f32 %v451_v18, %v451_v18 }
  0xd2   : > { %v452_v19 = vld [vmem:[#allocation2 + $0x8] sm:$0xff] }
  0xd3   : > { %v455_v20 = vadd.f32 %v452_v19, %v451_v18  ;;  %v458_v22 = vmul.f32 %v452_v19, %v452_v19  ;;  %454 = vst [vmem:[%s885_s2 + $0x8] sm:$0xff] %v452_v19 }
  0xd5   : > { %456 = vst [vmem:[%s886_s3] sm:$0xff] %v455_v20  ;;  %v459_v23 = vadd.f32 %v458_v22, %v457_v21 }
  0xd7   : > { %460 = vst [vmem:[%s887_s4] sm:$0xff] %v459_v23 }
  0xd8 PF: > { %s15_s19 = sadd.s32 1, %s776_s19   ;;  %s888_s15 = smov %s764_s16 }
  0xd9   : > { %p12_p12 = scmp.ge.s32.totalorder %s15_s19, 7   ;;  %s889_s16 = smov %s839_s23 }
  0xda   : > { %s890_s17 = smov %s772_s18  ;;  %s891_s18 = smov %s893_s20 }
  0xdb   :  { %14 = sbr.rel (!%p12_p12) target bundleno = 3 (0x3), region = 139 }

// kernel: tile.67
= control target key start
LH: loop header
LB: loop body
LE: loop exit
PB: predicated region body
PF: predicated region fallthrough
CT: control target
= control target key end

     0   :  { %s22_s0 = inlined_call_operand.vmem [shape: f32[8], index: 0, kind: input, shape index: {}]   ;;  %s23_s1 = inlined_call_operand.vmem [shape: f32[4,8], index: 1, kind: output, shape index: {}]  }
   0x1   :  { %v4_v0 = vld [vmem:[%s22_s0] ss:$0 sm:$0xff] }
   0x2   :  { %5 = vst [vmem:[%s23_s1] sm:$0xf] %v4_v0 }

// kernel: tile.69
= control target key start
LH: loop header
LB: loop body
LE: loop exit
PB: predicated region body
PF: predicated region fallthrough
CT: control target
= control target key end

     0   :  { %s37_s8 = smov 8   ;;  %s38_s9 = smov 16   ;;  %vm7_vm0 = vcmask 64512   ;;  %vm13_vm1 = vcmask 261312   ;;  %vm19_vm2 = vcmask 195712   ;;  %vm25_vm3 = vcmask 130112   ;;  %s55_s0 = inlined_call_operand.vmem [shape: f32[4,8], index: 0, kind: input, shape index: {}]   ;;  %s56_s1 = inlined_call_operand.vmem [shape: f32[1,32], index: 1, kind: output, shape index: {}]  }
   0x1   :  { %v4_v0 = vld [vmem:[%s55_s0] sm:$0xf]  ;;  %s36_s0 = smov 24  }
   0x2   :  { %5 = vst [vmem:[#allocation1] sm:$0xf] %v4_v0 }
   0x9   :  { %v10_v1 = vld [vmem:[#allocation1 + $0x3] sm:$0x1]   ;;  %v22_v2 = vld [vmem:[#allocation1 + $0x1] sm:$0x1]   ;;  %v16_v3 = vld [vmem:[#allocation1 + $0x2] sm:$0x1]  }
   0xa   :  { %11 = vrot.lane.b32.xlu0 %v10_v1, %s36_s0  ;;  %23 = vrot.lane.b32.xlu1 %v22_v2, %s37_s8  ;;  %v6_v4 = vld [vmem:[#allocation1] sm:$0x1]  }
   0xb   :  { %8 = vst.msk [vmem:[#allocation0] sm:$0x1] %vm7_vm0, %v6_v4  }
  0x12   :  { %17 = vrot.lane.b32.xlu0 %v16_v3, %s38_s9 }
  0x7c   :  { %v12_v5 = vpop.permute.xlu0 %11   ;;  %v24_v6 = vpop.permute.xlu1 %23  }
  0x7d   :  { %14 = vst.msk [vmem:[#allocation0] sm:$0x1] %vm13_vm1, %v12_v5  }
  0x84   :  { %v18_v7 = vpop.permute.xlu0 %17  }
  0x85   :  { %20 = vst.msk [vmem:[#allocation0] sm:$0x1] %vm19_vm2, %v18_v7  }
  0x86   :  { %26 = vst.msk [vmem:[#allocation0] sm:$0x1] %vm25_vm3, %v24_v6  }
  0x8d   :  { %v29_v8 = vld [vmem:[#allocation0] sm:$0x1] }
  0x8e   :  { %32 = vst [vmem:[%s56_s1] sm:$0x1] %v29_v8 }

// kernel: forward.29
= control target key start
LH: loop header
LB: loop body
LE: loop exit
PB: predicated region body
PF: predicated region fallthrough
CT: control target
= control target key end

     0   :  { %s667_s1 = inlined_call_operand.vmem [shape: bf16[384,128], index: 1, kind: input, shape index: {}]   ;;  %s668_s0 = inlined_call_operand.vmem [shape: bf16[32,384], index: 0, kind: input, shape index: {}]   ;;  %s669_s2 = inlined_call_operand.vmem [shape: f32[32,128], index: 2, kind: output, shape index: {0}]   ;;  %s670_s3 = inlined_call_operand.vmem [shape: f32[8,128], index: 3, kind: output, shape index: {1}]   ;;  %s671_s4 = inlined_call_operand.vmem [shape: f32[8,128], index: 4, kind: output, shape index: {2}]  }
   0x1   :  { %v491_v0 = vld [vmem:[%s667_s1 + $0x38] sm:$0xff]  ;;  %v490_v3 = vld [vmem:[%s667_s1 + $0x30] sm:$0xff]  ;;  %v489_v6 = vld [vmem:[%s667_s1 + $0x28] sm:$0xff] }
   0x2   :  { %v499_v1 = vld [vmem:[%s667_s1 + $0x78] sm:$0xff]  ;;  %258 = vmatpush.bf16.msra.mxu0 %v491_v0  ;;  %v498_v4 = vld [vmem:[%s667_s1 + $0x70] sm:$0xff]  ;;  %508 = vmatpush.bf16.msra.mxu3 %v491_v0  ;;  %v497_v7 = vld [vmem:[%s667_s1 + $0x68] sm:$0xff] }
   0x3   :  { %v507_v2 = vld [vmem:[%s667_s1 + $0xb8] sm:$0xff]  ;;  %277 = vmatpush.bf16.msra.mxu1 %v499_v1  ;;  %v506_v5 = vld [vmem:[%s667_s1 + $0xb0] sm:$0xff]  ;;  %v505_v8 = vld [vmem:[%s667_s1 + $0xa8] sm:$0xff] }
   0x4   :  { %296 = vmatpush.bf16.msra.mxu2 %v507_v2  ;;  %v488_v9 = vld [vmem:[%s667_s1 + $0x20] sm:$0xff]  ;;  %v487_v12 = vld [vmem:[%s667_s1 + $0x18] sm:$0xff]  ;;  %v486_v15 = vld [vmem:[%s667_s1 + $0x10] sm:$0xff] }
   0x5   :  { %v496_v10 = vld [vmem:[%s667_s1 + $0x60] sm:$0xff]  ;;  %v495_v13 = vld [vmem:[%s667_s1 + $0x58] sm:$0xff]  ;;  %v494_v16 = vld [vmem:[%s667_s1 + $0x50] sm:$0xff] }
   0x6   :  { %259 = vmatpush.bf16.msra.mxu0 %v490_v3  ;;  %509 = vmatpush.bf16.msra.mxu3 %v490_v3  ;;  %v504_v11 = vld [vmem:[%s667_s1 + $0xa0] sm:$0xff]  ;;  %v503_v14 = vld [vmem:[%s667_s1 + $0x98] sm:$0xff]  ;;  %v502_v17 = vld [vmem:[%s667_s1 + $0x90] sm:$0xff] }
   0x7   :  { %278 = vmatpush.bf16.msra.mxu1 %v498_v4  ;;  %v485_v18 = vld [vmem:[%s667_s1 + $0x8] sm:$0xff]  ;;  %v484_v21 = vld [vmem:[%s667_s1] sm:$0xff]  ;;  %v362_v27 = vld [vmem:[%s668_s0 + $0xc] sm:$0xf0] }
   0x8   :  { %297 = vmatpush.bf16.msra.mxu2 %v506_v5  ;;  %v493_v19 = vld [vmem:[%s667_s1 + $0x48] sm:$0xff]  ;;  %v492_v22 = vld [vmem:[%s667_s1 + $0x40] sm:$0xff]  ;;  %v480_v29 = vld [vmem:[%s668_s0 + $0x10] sm:$0xf0] }
   0x9   :  { %v501_v20 = vld [vmem:[%s667_s1 + $0x88] sm:$0xff]  ;;  %v500_v23 = vld [vmem:[%s667_s1 + $0x80] sm:$0xff]  ;;  %v372_v30 = vld [vmem:[%s668_s0 + $0x18] sm:$0xf] }
   0xa   :  { %260 = vmatpush.bf16.msra.mxu0 %v489_v6  ;;  %510 = vmatpush.bf16.msra.mxu3 %v489_v6  ;;  %v360_v24 = vld [vmem:[%s668_s0] sm:$0xf]  ;;  %v479_v25 = vld [vmem:[%s668_s0 + $0x8] sm:$0xf0]  ;;  %v478_v26 = vld [vmem:[%s668_s0 + $0x4] sm:$0xf] }
   0xb   :  { %279 = vmatpush.bf16.msra.mxu1 %v497_v7  ;;  %v368_v28 = vld [vmem:[%s668_s0 + $0x8] sm:$0xf]  ;;  %v482_v31 = vld [vmem:[%s668_s0 + $0x20] sm:$0xf0]  ;;  %v361_v32 = vor.u32 %v479_v25, %v360_v24  ;;  %v365_v33 = vor.u32 %v478_v26, %v362_v27  ;;  %v481_v36 = vld [vmem:[%s668_s0 + $0x1c] sm:$0xf] }
   0xc   :  { %298 = vmatpush.bf16.msra.mxu2 %v505_v8  ;;  %v369_v34 = vor.u32 %v480_v29, %v368_v28  ;;  %v373_v35 = vor.u32 %v482_v31, %v372_v30  ;;  %v374_v37 = vld [vmem:[%s668_s0 + $0x24] sm:$0xf0]  ;;  %v380_v38 = vld [vmem:[%s668_s0 + $0x20] sm:$0xf]  ;;  %v483_v39 = vld [vmem:[%s668_s0 + $0x28] sm:$0xf0] }
   0xd   :  { %v377_v40 = vor.u32 %v481_v36, %v374_v37  ;;  %v381_v41 = vor.u32 %v483_v39, %v380_v38 }
   0xe   :  { %261 = vmatpush.bf16.msra.mxu0 %v488_v9  ;;  %511 = vmatpush.bf16.msra.mxu3 %v488_v9 }
   0xf   :  { %280 = vmatpush.bf16.msra.mxu1 %v496_v10 }
  0x10   :  { %299 = vmatpush.bf16.msra.mxu2 %v504_v11 }
  0x12   :  { %262 = vmatpush.bf16.msra.mxu0 %v487_v12  ;;  %512 = vmatpush.bf16.msra.mxu3 %v487_v12 }
  0x13   :  { %281 = vmatpush.bf16.msra.mxu1 %v495_v13 }
  0x14   :  { %300 = vmatpush.bf16.msra.mxu2 %v503_v14 }
  0x16   :  { %263 = vmatpush.bf16.msra.mxu0 %v486_v15  ;;  %513 = vmatpush.bf16.msra.mxu3 %v486_v15 }
  0x17   :  { %282 = vmatpush.bf16.msra.mxu1 %v494_v16 }
  0x18   :  { %301 = vmatpush.bf16.msra.mxu2 %v502_v17 }
  0x1a   :  { %264 = vmatpush.bf16.msra.mxu0 %v485_v18  ;;  %514 = vmatpush.bf16.msra.mxu3 %v485_v18 }
  0x1b   :  { %283 = vmatpush.bf16.msra.mxu1 %v493_v19 }
  0x1c   :  { %302 = vmatpush.bf16.msra.mxu2 %v501_v20 }
  0x1e   :  { %265 = vmatpush.bf16.msra.mxu0 %v484_v21  ;;  %515 = vmatpush.bf16.msra.mxu3 %v484_v21 }
  0x1f   :  { %284 = vmatpush.bf16.msra.mxu1 %v492_v22 }
  0x20   :  { %303 = vmatpush.bf16.msra.mxu2 %v500_v23 }
  0x21   :  { %266 = vmatmul.bf16.vlgmr.msra.gmra.mxu0 %v361_v32  ;;  %271 = vmatmul.bf16.vlgmr.msra.gmra.mxu3 %v373_v35 }
  0x22   :  { %285 = vmatmul.bf16.vlgmr.msra.gmra.mxu1 %v365_v33 }
  0x23   :  { %304 = vmatmul.bf16.vlgmr.msra.gmra.mxu2 %v369_v34 }
  0x32   :  { %290 = vmatmul.bf16.gmra.mxu1 %v377_v40 }
  0x33   :  { %309 = vmatmul.bf16.gmra.mxu2 %v381_v41 }
  0x9e   :  { %v267_v43 = vpop.f32.mrf.mxu0 }
  0x9f   :  { %v286_v42 = vpop.f32.mrf.mxu1 }
  0xa0   :  { %v287_v44 = vadd.f32 %v286_v42, %v267_v43 }
  0xa4   :  { %v272_v53 = vpop.f32.mrf.mxu3 }
  0xa6   :  { %v305_v45 = vpop.f32.mrf.mxu2  ;;  %v269_v48 = vpop.f32.mrf.mxu0 }
  0xa7   :  { %v306_v46 = vadd.f32 %v305_v45, %v287_v44  ;;  %v288_v47 = vpop.f32.mrf.mxu1 }
  0xa8   :  { %v289_v49 = vadd.f32 %v288_v47, %v269_v48 }
  0xa9   :  { %330 = vst [vmem:[%s669_s2] sm:$0xff] %v306_v46  ;;  %v338_v60 = vmul.f32 %v306_v46, %v306_v46 }
  0xac   :  { %v274_v59 = vpop.f32.mrf.mxu3 }
  0xae   :  { %v307_v50 = vpop.f32.mrf.mxu2 }
  0xaf   :  { %v308_v51 = vadd.f32 %v307_v50, %v289_v49  ;;  %v291_v52 = vpop.f32.mrf.mxu1 }
  0xb0   :  { %v292_v54 = vadd.f32 %v291_v52, %v272_v53 }
  0xb1   :  { %331 = vst [vmem:[%s669_s2 + $0x8] sm:$0xff] %v308_v51  ;;  %v339_v58 = vmul.f32 %v308_v51, %v308_v51  ;;  %v334_v61 = vadd.f32 %v308_v51, %v306_v46 }
  0xb3   :  { %v342_v1 = vadd.f32 %v339_v58, %v338_v60 }
  0xb6   :  { %v310_v55 = vpop.f32.mrf.mxu2 }
  0xb7   :  { %v311_v56 = vadd.f32 %v310_v55, %v292_v54  ;;  %v293_v57 = vpop.f32.mrf.mxu1 }
  0xb8   :  { %v294_v63 = vadd.f32 %v293_v57, %v274_v59 }
  0xb9   :  { %332 = vst [vmem:[%s669_s2 + $0x10] sm:$0xff] %v311_v56  ;;  %v340_v62 = vmul.f32 %v311_v56, %v311_v56  ;;  %v335_v2 = vadd.f32 %v334_v61, %v311_v56 }
  0xbb   :  { %v343_v4 = vadd.f32 %v342_v1, %v340_v62 }
  0xbe   :  { %v312_v0 = vpop.f32.mrf.mxu2 }
  0xbf   :  { %v313_v3 = vadd.f32 %v312_v0, %v294_v63 }
  0xc1   :  { %333 = vst [vmem:[%s669_s2 + $0x18] sm:$0xff] %v313_v3  ;;  %v336_v5 = vadd.f32 %v335_v2, %v313_v3  ;;  %v341_v6 = vmul.f32 %v313_v3, %v313_v3 }
  0xc3   :  { %337 = vst [vmem:[%s670_s3] sm:$0xff] %v336_v5  ;;  %v344_v7 = vadd.f32 %v343_v4, %v341_v6 }
  0xc5   :  { %345 = vst [vmem:[%s671_s4] sm:$0xff] %v344_v7 }

// kernel: forward.30
= control target key start
LH: loop header
LB: loop body
LE: loop exit
PB: predicated region body
PF: predicated region fallthrough
CT: control target
= control target key end

     0   :  { %s107_s0 = inlined_call_operand.vmem [shape: f32[32,128], index: 0, kind: input, shape index: {}]   ;;  %s108_s1 = inlined_call_operand.vmem [shape: f32[1,128], index: 1, kind: input, shape index: {}]   ;;  %s109_s2 = inlined_call_operand.vmem [shape: f32[1,128], index: 2, kind: input, shape index: {}]   ;;  %s110_s3 = inlined_call_operand.vmem [shape: bf16[32,128], index: 3, kind: output, shape index: {}]  }
   0x1   :  { %v14_v0 = vld [vmem:[%s107_s0] sm:$0xff]  ;;  %v15_v1 = vld [vmem:[%s107_s0 + $0x8] sm:$0xff]  ;;  %v16_v4 = vld [vmem:[%s107_s0 + $0x10] sm:$0xff] }
   0x2   :  { %v61_v2 = vld [vmem:[%s108_s1] ss:$0 sm:$0xff]  ;;  %v17_v5 = vld [vmem:[%s107_s0 + $0x18] sm:$0xff] }
   0x3   :  { %v62_v3 = vld [vmem:[%s109_s2] ss:$0 sm:$0xff]  ;;  %v22_v6 = vmul.f32 %v61_v2, %v14_v0  ;;  %v23_v7 = vmul.f32 %v61_v2, %v15_v1  ;;  %v24_v8 = vmul.f32 %v61_v2, %v16_v4  ;;  %v25_v9 = vmul.f32 %v61_v2, %v17_v5 }
   0x5   :  { %v30_v10 = vadd.f32 %v62_v3, %v22_v6  ;;  %v31_v11 = vadd.f32 %v62_v3, %v23_v7  ;;  %v32_v12 = vadd.f32 %v62_v3, %v24_v8  ;;  %v33_v13 = vadd.f32 %v62_v3, %v25_v9 }
   0x7   :  { %v34_v14 = vmax.f32 %v30_v10, 0.0  ;;  %v35_v15 = vmax.f32 %v31_v11, 0.0  ;;  %v36_v16 = vmax.f32 %v32_v12, 0.0  ;;  %v37_v17 = vmax.f32 %v33_v13, 0.0 }
   0x9   :  { %v53_v18 = vpack.c.bf16 %v35_v15, %v34_v14  ;;  %v58_v19 = vpack.c.bf16 %v37_v17, %v36_v16 }
   0xb   :  { %54 = vst [vmem:[%s110_s3] sm:$0xff] %v53_v18  }
   0xc   :  { %60 = vst [vmem:[%s110_s3 + $0x8] sm:$0xff] %v58_v19  }

// kernel: tile.77
= control target key start
LH: loop header
LB: loop body
LE: loop exit
PB: predicated region body
PF: predicated region fallthrough
CT: control target
= control target key end

     0   :  { %s22_s0 = inlined_call_operand.vmem [shape: f32[4], index: 0, kind: input, shape index: {}]   ;;  %s23_s1 = inlined_call_operand.vmem [shape: f32[4,4], index: 1, kind: output, shape index: {}]  }
   0x1   :  { %v4_v0 = vld [vmem:[%s22_s0] ss:$0 sm:$0xff] }
   0x2   :  { %5 = vst [vmem:[%s23_s1] sm:$0xf] %v4_v0 }

// kernel: tile.79
= control target key start
LH: loop header
LB: loop body
LE: loop exit
PB: predicated region body
PF: predicated region fallthrough
CT: control target
= control target key end

     0   :  { %s37_s8 = smov 4   ;;  %s38_s9 = smov 8   ;;  %vm7_vm0 = vcmask 31744   ;;  %vm13_vm1 = vcmask 130144   ;;  %vm19_vm2 = vcmask 97344   ;;  %vm25_vm3 = vcmask 64544   ;;  %s55_s0 = inlined_call_operand.vmem [shape: f32[4,4], index: 0, kind: input, shape index: {}]   ;;  %s56_s1 = inlined_call_operand.vmem [shape: f32[1,16], index: 1, kind: output, shape index: {}]  }
   0x1   :  { %v4_v0 = vld [vmem:[%s55_s0] sm:$0xf]  ;;  %s36_s0 = smov 12  }
   0x2   :  { %5 = vst [vmem:[#allocation1] sm:$0xf] %v4_v0 }
   0x9   :  { %v10_v1 = vld [vmem:[#allocation1 + $0x3] sm:$0x1]   ;;  %v22_v2 = vld [vmem:[#allocation1 + $0x1] sm:$0x1]   ;;  %v16_v3 = vld [vmem:[#allocation1 + $0x2] sm:$0x1]  }
   0xa   :  { %11 = vrot.lane.b32.xlu0 %v10_v1, %s36_s0  ;;  %23 = vrot.lane.b32.xlu1 %v22_v2, %s37_s8  ;;  %v6_v4 = vld [vmem:[#allocation1] sm:$0x1]  }
   0xb   :  { %8 = vst.msk [vmem:[#allocation0] sm:$0x1] %vm7_vm0, %v6_v4  }
  0x12   :  { %17 = vrot.lane.b32.xlu0 %v16_v3, %s38_s9 }
  0x7c   :  { %v12_v5 = vpop.permute.xlu0 %11   ;;  %v24_v6 = vpop.permute.xlu1 %23  }
  0x7d   :  { %14 = vst.msk [vmem:[#allocation0] sm:$0x1] %vm13_vm1, %v12_v5  }
  0x84   :  { %v18_v7 = vpop.permute.xlu0 %17  }
  0x85   :  { %20 = vst.msk [vmem:[#allocation0] sm:$0x1] %vm19_vm2, %v18_v7  }
  0x86   :  { %26 = vst.msk [vmem:[#allocation0] sm:$0x1] %vm25_vm3, %v24_v6  }
  0x8d   :  { %v29_v8 = vld [vmem:[#allocation0] sm:$0x1] }
  0x8e   :  { %32 = vst [vmem:[%s56_s1] sm:$0x1] %v29_v8 }

// kernel: forward.32
= control target key start
LH: loop header
LB: loop body
LE: loop exit
PB: predicated region body
PF: predicated region fallthrough
CT: control target
= control target key end

     0   :  { %s287_s0 = inlined_call_operand.vmem [shape: f32[128,128], index: 0, kind: input, shape index: {}]   ;;  %s288_s1 = inlined_call_operand.vmem [shape: f32[1,128], index: 1, kind: input, shape index: {}]   ;;  %s289_s2 = inlined_call_operand.vmem [shape: f32[1,128], index: 2, kind: input, shape index: {}]   ;;  %s290_s3 = inlined_call_operand.vmem [shape: bf16[128,128], index: 3, kind: output, shape index: {}]  }
   0x1   :  { %v14_v0 = vld [vmem:[%s287_s0] sm:$0xff]  ;;  %v15_v1 = vld [vmem:[%s287_s0 + $0x8] sm:$0xff]  ;;  %v16_v4 = vld [vmem:[%s287_s0 + $0x10] sm:$0xff] }
   0x2   :  { %v169_v2 = vld [vmem:[%s288_s1] ss:$0 sm:$0xff]  ;;  %v17_v5 = vld [vmem:[%s287_s0 + $0x18] sm:$0xff]  ;;  %v19_v11 = vld [vmem:[%s287_s0 + $0x28] sm:$0xff] }
   0x3   :  { %v203_v3 = vld [vmem:[%s289_s2] ss:$0 sm:$0xff]  ;;  %v34_v7 = vmul.f32 %v169_v2, %v14_v0  ;;  %v35_v8 = vmul.f32 %v169_v2, %v15_v1  ;;  %v36_v9 = vmul.f32 %v169_v2, %v16_v4  ;;  %v37_v10 = vmul.f32 %v169_v2, %v17_v5  ;;  %v20_v12 = vld [vmem:[%s287_s0 + $0x30] sm:$0xff]  ;;  %v21_v13 = vld [vmem:[%s287_s0 + $0x38] sm:$0xff] }
   0x4   :  { %v18_v6 = vld [vmem:[%s287_s0 + $0x20] sm:$0xff]  ;;  %v39_v15 = vmul.f32 %v169_v2, %v19_v11  ;;  %v40_v16 = vmul.f32 %v169_v2, %v20_v12  ;;  %v41_v17 = vmul.f32 %v169_v2, %v21_v13  ;;  %v23_v27 = vld [vmem:[%s287_s0 + $0x48] sm:$0xff]  ;;  %v24_v32 = vld [vmem:[%s287_s0 + $0x50] sm:$0xff] }
   0x5   :  { %v38_v14 = vmul.f32 %v169_v2, %v18_v6  ;;  %v54_v18 = vadd.f32 %v203_v3, %v34_v7  ;;  %v55_v19 = vadd.f32 %v203_v3, %v35_v8  ;;  %v56_v20 = vadd.f32 %v203_v3, %v36_v9  ;;  %v22_v26 = vld [vmem:[%s287_s0 + $0x40] sm:$0xff]  ;;  %v25_v33 = vld [vmem:[%s287_s0 + $0x58] sm:$0xff]  ;;  %v27_v39 = vld [vmem:[%s287_s0 + $0x68] sm:$0xff] }
   0x6   :  { %v57_v21 = vadd.f32 %v203_v3, %v37_v10  ;;  %v59_v23 = vadd.f32 %v203_v3, %v39_v15  ;;  %v60_v24 = vadd.f32 %v203_v3, %v40_v16  ;;  %v61_v25 = vadd.f32 %v203_v3, %v41_v17  ;;  %v26_v38 = vld [vmem:[%s287_s0 + $0x60] sm:$0xff]  ;;  %v28_v44 = vld [vmem:[%s287_s0 + $0x70] sm:$0xff]  ;;  %v29_v45 = vld [vmem:[%s287_s0 + $0x78] sm:$0xff] }
   0x7   :  { %v58_v22 = vadd.f32 %v203_v3, %v38_v14  ;;  %v70_v28 = vmax.f32 %v54_v18, 0.0  ;;  %v71_v29 = vmax.f32 %v55_v19, 0.0  ;;  %v72_v30 = vmax.f32 %v56_v20, 0.0 }
   0x8   :  { %v73_v31 = vmax.f32 %v57_v21, 0.0  ;;  %v75_v35 = vmax.f32 %v59_v23, 0.0  ;;  %v76_v36 = vmax.f32 %v60_v24, 0.0  ;;  %v77_v37 = vmax.f32 %v61_v25, 0.0 }
   0x9   :  { %v74_v34 = vmax.f32 %v58_v22, 0.0  ;;  %v125_v40 = vpack.c.bf16 %v71_v29, %v70_v28  ;;  %v42_v42 = vmul.f32 %v169_v2, %v22_v26  ;;  %v43_v43 = vmul.f32 %v169_v2, %v23_v27 }
   0xa   :  { %v130_v41 = vpack.c.bf16 %v73_v31, %v72_v30  ;;  %v140_v47 = vpack.c.bf16 %v77_v37, %v76_v36  ;;  %v44_v48 = vmul.f32 %v169_v2, %v24_v32  ;;  %v45_v49 = vmul.f32 %v169_v2, %v25_v33 }
   0xb   :  { %v135_v46 = vpack.c.bf16 %v75_v35, %v74_v34  ;;  %126 = vst [vmem:[%s290_s3] sm:$0xff] %v125_v40   ;;  %v62_v50 = vadd.f32 %v203_v3, %v42_v42  ;;  %v63_v51 = vadd.f32 %v203_v3, %v43_v43  ;;  %v46_v52 = vmul.f32 %v169_v2, %v26_v38 }
   0xc   :  { %v47_v53 = vmul.f32 %v169_v2, %v27_v39  ;;  %162 = vst [vmem:[%s290_s3 + $0x8] sm:$0xff] %v130_v41   ;;  %v64_v54 = vadd.f32 %v203_v3, %v44_v48  ;;  %v65_v55 = vadd.f32 %v203_v3, %v45_v49  ;;  %v48_v56 = vmul.f32 %v169_v2, %v28_v44 }
   0xd   :  { %v49_v57 = vmul.f32 %v169_v2, %v29_v45  ;;  %163 = vst [vmem:[%s290_s3 + $0x10] sm:$0xff] %v135_v46   ;;  %v78_v58 = vmax.f32 %v62_v50, 0.0  ;;  %v79_v59 = vmax.f32 %v63_v51, 0.0  ;;  %v66_v60 = vadd.f32 %v203_v3, %v46_v52 }
   0xe   :  { %v67_v61 = vadd.f32 %v203_v3, %v47_v53  ;;  %164 = vst [vmem:[%s290_s3 + $0x18] sm:$0xff] %v140_v47   ;;  %v80_v62 = vmax.f32 %v64_v54, 0.0  ;;  %v81_v63 = vmax.f32 %v65_v55, 0.0  ;;  %v68_v0 = vadd.f32 %v203_v3, %v48_v56 }
   0xf   :  { %v69_v1 = vadd.f32 %v203_v3, %v49_v57  ;;  %v145_v2 = vpack.c.bf16 %v79_v59, %v78_v58  ;;  %v82_v4 = vmax.f32 %v66_v60, 0.0 }
  0x10   :  { %v83_v5 = vmax.f32 %v67_v61, 0.0  ;;  %v150_v6 = vpack.c.bf16 %v81_v63, %v80_v62  ;;  %v84_v7 = vmax.f32 %v68_v0, 0.0 }
  0x11   :  { %v85_v8 = vmax.f32 %v69_v1, 0.0  ;;  %165 = vst [vmem:[%s290_s3 + $0x20] sm:$0xff] %v145_v2  }
  0x12   :  { %v155_v9 = vpack.c.bf16 %v83_v5, %v82_v4  ;;  %166 = vst [vmem:[%s290_s3 + $0x28] sm:$0xff] %v150_v6  }
  0x13   :  { %v160_v10 = vpack.c.bf16 %v85_v8, %v84_v7 }
  0x14   :  { %167 = vst [vmem:[%s290_s3 + $0x30] sm:$0xff] %v155_v9  }
  0x15   :  { %168 = vst [vmem:[%s290_s3 + $0x38] sm:$0xff] %v160_v10  }

// kernel: forward.31
= control target key start
LH: loop header
LB: loop body
LE: loop exit
PB: predicated region body
PF: predicated region fallthrough
CT: control target
= control target key end

     0   :  { %s922_s1 = inlined_call_operand.vmem [shape: bf16[256,128], index: 1, kind: input, shape index: {}]   ;;  %s923_s0 = inlined_call_operand.vmem [shape: bf16[128,256], index: 0, kind: input, shape index: {}]   ;;  %s924_s2 = inlined_call_operand.vmem [shape: f32[128,128], index: 2, kind: output, shape index: {0}]   ;;  %s925_s3 = inlined_call_operand.vmem [shape: f32[8,128], index: 3, kind: output, shape index: {1}]   ;;  %s926_s4 = inlined_call_operand.vmem [shape: f32[8,128], index: 4, kind: output, shape index: {2}]  }
   0x1   :  { %v650_v0 = vld [vmem:[%s922_s1 + $0x38] sm:$0xff]  ;;  %v649_v2 = vld [vmem:[%s922_s1 + $0x30] sm:$0xff]  ;;  %v648_v4 = vld [vmem:[%s922_s1 + $0x28] sm:$0xff] }
   0x2   :  { %v658_v1 = vld [vmem:[%s922_s1 + $0x78] sm:$0xff]  ;;  %274 = vmatpush.bf16.msra.mxu0 %v650_v0  ;;  %v657_v3 = vld [vmem:[%s922_s1 + $0x70] sm:$0xff]  ;;  %659 = vmatpush.bf16.msra.mxu2 %v650_v0  ;;  %v656_v5 = vld [vmem:[%s922_s1 + $0x68] sm:$0xff] }
   0x3   :  { %323 = vmatpush.bf16.msra.mxu1 %v658_v1  ;;  %667 = vmatpush.bf16.msra.mxu3 %v658_v1  ;;  %v647_v6 = vld [vmem:[%s922_s1 + $0x20] sm:$0xff]  ;;  %v646_v8 = vld [vmem:[%s922_s1 + $0x18] sm:$0xff]  ;;  %v645_v10 = vld [vmem:[%s922_s1 + $0x10] sm:$0xff] }
   0x4   :  { %v655_v7 = vld [vmem:[%s922_s1 + $0x60] sm:$0xff]  ;;  %v654_v9 = vld [vmem:[%s922_s1 + $0x58] sm:$0xff]  ;;  %v653_v11 = vld [vmem:[%s922_s1 + $0x50] sm:$0xff] }
   0x5   :  { %v644_v12 = vld [vmem:[%s922_s1 + $0x8] sm:$0xff]  ;;  %v643_v14 = vld [vmem:[%s922_s1] sm:$0xff]  ;;  %v509_v28 = vld [vmem:[%s923_s0 + $0x10] sm:$0xf] }
   0x6   :  { %275 = vmatpush.bf16.msra.mxu0 %v649_v2  ;;  %660 = vmatpush.bf16.msra.mxu2 %v649_v2  ;;  %v652_v13 = vld [vmem:[%s922_s1 + $0x48] sm:$0xff]  ;;  %v651_v15 = vld [vmem:[%s922_s1 + $0x40] sm:$0xff]  ;;  %v630_v29 = vld [vmem:[%s923_s0 + $0x14] sm:$0xf0] }
   0x7   :  { %324 = vmatpush.bf16.msra.mxu1 %v657_v3  ;;  %668 = vmatpush.bf16.msra.mxu3 %v657_v3  ;;  %v501_v16 = vld [vmem:[%s923_s0] sm:$0xf]  ;;  %v628_v17 = vld [vmem:[%s923_s0 + $0x4] sm:$0xf0]  ;;  %v627_v18 = vld [vmem:[%s923_s0 + $0x4] sm:$0xf]  ;;  %v510_v36 = vor.u32 %v630_v29, %v509_v28 }
   0x8   :  { %v503_v19 = vld [vmem:[%s923_s0 + $0x8] sm:$0xf0]  ;;  %v533_v20 = vld [vmem:[%s923_s0 + $0x40] sm:$0xf]  ;;  %v636_v21 = vld [vmem:[%s923_s0 + $0x44] sm:$0xf0]  ;;  %v502_v24 = vor.u32 %v628_v17, %v501_v16 }
   0x9   :  { %v635_v22 = vld [vmem:[%s923_s0 + $0x44] sm:$0xf]  ;;  %v535_v23 = vld [vmem:[%s923_s0 + $0x48] sm:$0xf0]  ;;  %v506_v25 = vor.u32 %v627_v18, %v503_v19  ;;  %v534_v26 = vor.u32 %v636_v21, %v533_v20  ;;  %v629_v30 = vld [vmem:[%s923_s0 + $0x14] sm:$0xf] }
   0xa   :  { %276 = vmatpush.bf16.msra.mxu0 %v648_v4  ;;  %661 = vmatpush.bf16.msra.mxu2 %v648_v4  ;;  %v538_v27 = vor.u32 %v635_v22, %v535_v23  ;;  %v511_v31 = vld [vmem:[%s923_s0 + $0x18] sm:$0xf0]  ;;  %v541_v32 = vld [vmem:[%s923_s0 + $0x50] sm:$0xf]  ;;  %v638_v33 = vld [vmem:[%s923_s0 + $0x54] sm:$0xf0] }
   0xb   :  { %325 = vmatpush.bf16.msra.mxu1 %v656_v5  ;;  %669 = vmatpush.bf16.msra.mxu3 %v656_v5  ;;  %v637_v34 = vld [vmem:[%s923_s0 + $0x54] sm:$0xf]  ;;  %v543_v35 = vld [vmem:[%s923_s0 + $0x58] sm:$0xf0]  ;;  %v514_v37 = vor.u32 %v629_v30, %v511_v31  ;;  %v542_v38 = vor.u32 %v638_v33, %v541_v32  ;;  %v517_v40 = vld [vmem:[%s923_s0 + $0x20] sm:$0xf] }
   0xc   :  { %v546_v39 = vor.u32 %v637_v34, %v543_v35  ;;  %v632_v41 = vld [vmem:[%s923_s0 + $0x24] sm:$0xf0]  ;;  %v631_v42 = vld [vmem:[%s923_s0 + $0x24] sm:$0xf]  ;;  %v519_v43 = vld [vmem:[%s923_s0 + $0x28] sm:$0xf0] }
   0xd   :  { %v549_v44 = vld [vmem:[%s923_s0 + $0x60] sm:$0xf]  ;;  %v640_v45 = vld [vmem:[%s923_s0 + $0x64] sm:$0xf0]  ;;  %v639_v46 = vld [vmem:[%s923_s0 + $0x64] sm:$0xf]  ;;  %v518_v48 = vor.u32 %v632_v41, %v517_v40  ;;  %v522_v49 = vor.u32 %v631_v42, %v519_v43 }
   0xe   :  { %277 = vmatpush.bf16.msra.mxu0 %v647_v6  ;;  %662 = vmatpush.bf16.msra.mxu2 %v647_v6  ;;  %v551_v47 = vld [vmem:[%s923_s0 + $0x68] sm:$0xf0]  ;;  %v550_v50 = vor.u32 %v640_v45, %v549_v44  ;;  %v525_v52 = vld [vmem:[%s923_s0 + $0x30] sm:$0xf]  ;;  %v634_v53 = vld [vmem:[%s923_s0 + $0x34] sm:$0xf0] }
   0xf   :  { %326 = vmatpush.bf16.msra.mxu1 %v655_v7  ;;  %670 = vmatpush.bf16.msra.mxu3 %v655_v7  ;;  %v554_v51 = vor.u32 %v639_v46, %v551_v47  ;;  %v633_v54 = vld [vmem:[%s923_s0 + $0x34] sm:$0xf]  ;;  %v527_v55 = vld [vmem:[%s923_s0 + $0x38] sm:$0xf0]  ;;  %v557_v56 = vld [vmem:[%s923_s0 + $0x70] sm:$0xf]  ;;  %v526_v60 = vor.u32 %v634_v53, %v525_v52 }
  0x10   :  { %v642_v57 = vld [vmem:[%s923_s0 + $0x74] sm:$0xf0]  ;;  %v641_v58 = vld [vmem:[%s923_s0 + $0x74] sm:$0xf]  ;;  %v559_v59 = vld [vmem:[%s923_s0 + $0x78] sm:$0xf0]  ;;  %v530_v61 = vor.u32 %v633_v54, %v527_v55 }
  0x11   :  { %v558_v62 = vor.u32 %v642_v57, %v557_v56  ;;  %v562_v63 = vor.u32 %v641_v58, %v559_v59 }
  0x12   :  { %278 = vmatpush.bf16.msra.mxu0 %v646_v8  ;;  %663 = vmatpush.bf16.msra.mxu2 %v646_v8 }
  0x13   :  { %327 = vmatpush.bf16.msra.mxu1 %v654_v9  ;;  %671 = vmatpush.bf16.msra.mxu3 %v654_v9 }
  0x16   :  { %279 = vmatpush.bf16.msra.mxu0 %v645_v10  ;;  %664 = vmatpush.bf16.msra.mxu2 %v645_v10 }
  0x17   :  { %328 = vmatpush.bf16.msra.mxu1 %v653_v11  ;;  %672 = vmatpush.bf16.msra.mxu3 %v653_v11 }
  0x1a   :  { %280 = vmatpush.bf16.msra.mxu0 %v644_v12  ;;  %665 = vmatpush.bf16.msra.mxu2 %v644_v12 }
  0x1b   :  { %329 = vmatpush.bf16.msra.mxu1 %v652_v13  ;;  %673 = vmatpush.bf16.msra.mxu3 %v652_v13 }
  0x1e   :  { %281 = vmatpush.bf16.msra.mxu0 %v643_v14  ;;  %666 = vmatpush.bf16.msra.mxu2 %v643_v14 }
  0x1f   :  { %330 = vmatpush.bf16.msra.mxu1 %v651_v15  ;;  %674 = vmatpush.bf16.msra.mxu3 %v651_v15 }
  0x21   :  { %282 = vmatmul.bf16.vlgmr.msra.gmra.mxu0 %v502_v24  ;;  %302 = vmatmul.bf16.vlgmr.msra.gmra.mxu2 %v534_v26 }
  0x22   :  { %331 = vmatmul.bf16.vlgmr.msra.gmra.mxu1 %v506_v25  ;;  %351 = vmatmul.bf16.vlgmr.msra.gmra.mxu3 %v538_v27 }
  0x31   :  { %287 = vmatmul.bf16.gmra.mxu0 %v510_v36  ;;  %307 = vmatmul.bf16.gmra.mxu2 %v542_v38 }
  0x32   :  { %336 = vmatmul.bf16.gmra.mxu1 %v514_v37  ;;  %356 = vmatmul.bf16.gmra.mxu3 %v546_v39 }
  0x41   :  { %292 = vmatmul.bf16.gmra.mxu0 %v518_v48  ;;  %312 = vmatmul.bf16.gmra.mxu2 %v550_v50 }
  0x42   :  { %341 = vmatmul.bf16.gmra.mxu1 %v522_v49  ;;  %361 = vmatmul.bf16.gmra.mxu3 %v554_v51 }
  0x51   :  { %297 = vmatmul.bf16.gmra.mxu0 %v526_v60  ;;  %317 = vmatmul.bf16.gmra.mxu2 %v558_v62 }
  0x52   :  { %346 = vmatmul.bf16.gmra.mxu1 %v530_v61  ;;  %366 = vmatmul.bf16.gmra.mxu3 %v562_v63 }
  0x9e   :  { %v283_v0 = vpop.f32.mrf.mxu0 }
  0x9f   :  { %v332_v1 = vpop.f32.mrf.mxu1 }
  0xa0   :  { %v333_v2 = vadd.f32 %v332_v1, %v283_v0 }
  0xa2   :  { %423 = vst [vmem:[%s924_s2] sm:$0xff] %v333_v2  ;;  %v455_v34 = vmul.f32 %v333_v2, %v333_v2 }
  0xa4   :  { %v303_v3 = vpop.f32.mrf.mxu2 }
  0xa5   :  { %v352_v4 = vpop.f32.mrf.mxu3 }
  0xa6   :  { %v285_v5 = vpop.f32.mrf.mxu0  ;;  %v847_v7 = vadd.f32 %v352_v4, %v303_v3 }
  0xa7   :  { %v334_v6 = vpop.f32.mrf.mxu1 }
  0xa8   :  { %v335_v8 = vadd.f32 %v334_v6, %v285_v5  ;;  %431 = vst [vmem:[%s924_s2 + $0x40] sm:$0xff] %v847_v7 }
  0xaa   :  { %424 = vst [vmem:[%s924_s2 + $0x8] sm:$0xff] %v335_v8  ;;  %v456_v33 = vmul.f32 %v335_v8, %v335_v8  ;;  %v439_v35 = vadd.f32 %v335_v8, %v333_v2  ;;  %v463_v2 = vmul.f32 %v847_v7, %v847_v7 }
  0xac   :  { %v305_v9 = vpop.f32.mrf.mxu2  ;;  %v471_v42 = vadd.f32 %v456_v33, %v455_v34 }
  0xad   :  { %v354_v10 = vpop.f32.mrf.mxu3 }
  0xae   :  { %v288_v11 = vpop.f32.mrf.mxu0  ;;  %v856_v13 = vadd.f32 %v354_v10, %v305_v9 }
  0xaf   :  { %v337_v12 = vpop.f32.mrf.mxu1 }
  0xb0   :  { %v338_v14 = vadd.f32 %v337_v12, %v288_v11  ;;  %432 = vst [vmem:[%s924_s2 + $0x48] sm:$0xff] %v856_v13  ;;  %v464_v5 = vmul.f32 %v856_v13, %v856_v13 }
  0xb2   :  { %425 = vst [vmem:[%s924_s2 + $0x10] sm:$0xff] %v338_v14  ;;  %v457_v36 = vmul.f32 %v338_v14, %v338_v14  ;;  %v440_v43 = vadd.f32 %v439_v35, %v338_v14 }
  0xb4   :  { %v308_v15 = vpop.f32.mrf.mxu2  ;;  %v472_v46 = vadd.f32 %v471_v42, %v457_v36 }
  0xb5   :  { %v357_v16 = vpop.f32.mrf.mxu3 }
  0xb6   :  { %v290_v17 = vpop.f32.mrf.mxu0  ;;  %v865_v19 = vadd.f32 %v357_v16, %v308_v15 }
  0xb7   :  { %v339_v18 = vpop.f32.mrf.mxu1 }
  0xb8   :  { %v340_v20 = vadd.f32 %v339_v18, %v290_v17  ;;  %433 = vst [vmem:[%s924_s2 + $0x50] sm:$0xff] %v865_v19  ;;  %v465_v12 = vmul.f32 %v865_v19, %v865_v19 }
  0xba   :  { %426 = vst [vmem:[%s924_s2 + $0x18] sm:$0xff] %v340_v20  ;;  %v458_v44 = vmul.f32 %v340_v20, %v340_v20  ;;  %v441_v47 = vadd.f32 %v440_v43, %v340_v20 }
  0xbc   :  { %v310_v21 = vpop.f32.mrf.mxu2  ;;  %v473_v49 = vadd.f32 %v472_v46, %v458_v44 }
  0xbd   :  { %v359_v22 = vpop.f32.mrf.mxu3 }
  0xbe   :  { %v293_v23 = vpop.f32.mrf.mxu0  ;;  %v874_v25 = vadd.f32 %v359_v22, %v310_v21 }
  0xbf   :  { %v342_v24 = vpop.f32.mrf.mxu1 }
  0xc0   :  { %v343_v26 = vadd.f32 %v342_v24, %v293_v23  ;;  %434 = vst [vmem:[%s924_s2 + $0x58] sm:$0xff] %v874_v25 }
  0xc2   :  { %427 = vst [vmem:[%s924_s2 + $0x20] sm:$0xff] %v343_v26  ;;  %v459_v48 = vmul.f32 %v343_v26, %v343_v26  ;;  %v442_v50 = vadd.f32 %v441_v47, %v343_v26 }
  0xc4   :  { %v313_v27 = vpop.f32.mrf.mxu2  ;;  %v474_v52 = vadd.f32 %v473_v49, %v459_v48 }
  0xc5   :  { %v362_v28 = vpop.f32.mrf.mxu3 }
  0xc6   :  { %v295_v29 = vpop.f32.mrf.mxu0  ;;  %v363_v31 = vadd.f32 %v362_v28, %v313_v27 }
  0xc7   :  { %v344_v30 = vpop.f32.mrf.mxu1 }
  0xc8   :  { %v345_v32 = vadd.f32 %v344_v30, %v295_v29  ;;  %435 = vst [vmem:[%s924_s2 + $0x60] sm:$0xff] %v363_v31  ;;  %v467_v17 = vmul.f32 %v363_v31, %v363_v31 }
  0xca   :  { %428 = vst [vmem:[%s924_s2 + $0x28] sm:$0xff] %v345_v32  ;;  %v460_v51 = vmul.f32 %v345_v32, %v345_v32  ;;  %v443_v53 = vadd.f32 %v442_v50, %v345_v32 }
  0xcc   :  { %v315_v37 = vpop.f32.mrf.mxu2  ;;  %v475_v60 = vadd.f32 %v474_v52, %v460_v51 }
  0xcd   :  { %v364_v38 = vpop.f32.mrf.mxu3 }
  0xce   :  { %v298_v39 = vpop.f32.mrf.mxu0  ;;  %v365_v41 = vadd.f32 %v364_v38, %v315_v37 }
  0xcf   :  { %v347_v40 = vpop.f32.mrf.mxu1 }
  0xd0   :  { %v348_v45 = vadd.f32 %v347_v40, %v298_v39  ;;  %436 = vst [vmem:[%s924_s2 + $0x68] sm:$0xff] %v365_v41  ;;  %v468_v21 = vmul.f32 %v365_v41, %v365_v41 }
  0xd2   :  { %429 = vst [vmem:[%s924_s2 + $0x30] sm:$0xff] %v348_v45  ;;  %v461_v54 = vmul.f32 %v348_v45, %v348_v45  ;;  %v444_v61 = vadd.f32 %v443_v53, %v348_v45 }
  0xd4   :  { %v318_v55 = vpop.f32.mrf.mxu2  ;;  %v476_v63 = vadd.f32 %v475_v60, %v461_v54 }
  0xd5   :  { %v367_v56 = vpop.f32.mrf.mxu3 }
  0xd6   :  { %v300_v57 = vpop.f32.mrf.mxu0  ;;  %v368_v59 = vadd.f32 %v367_v56, %v318_v55 }
  0xd7   :  { %v349_v58 = vpop.f32.mrf.mxu1 }
  0xd8   :  { %v350_v62 = vadd.f32 %v349_v58, %v300_v57  ;;  %437 = vst [vmem:[%s924_s2 + $0x70] sm:$0xff] %v368_v59  ;;  %v469_v26 = vmul.f32 %v368_v59, %v368_v59 }
  0xda   :  { %430 = vst [vmem:[%s924_s2 + $0x38] sm:$0xff] %v350_v62  ;;  %v445_v0 = vadd.f32 %v444_v61, %v350_v62  ;;  %v462_v1 = vmul.f32 %v350_v62, %v350_v62 }
  0xdc   :  { %v446_v3 = vadd.f32 %v445_v0, %v847_v7  ;;  %v477_v4 = vadd.f32 %v476_v63, %v462_v1  ;;  %v320_v9 = vpop.f32.mrf.mxu2  ;;  %v466_v7 = vmul.f32 %v874_v25, %v874_v25 }
  0xdd   :  { %v369_v10 = vpop.f32.mrf.mxu3 }
  0xde   :  { %v447_v6 = vadd.f32 %v446_v3, %v856_v13  ;;  %v478_v8 = vadd.f32 %v477_v4, %v463_v2  ;;  %v370_v11 = vadd.f32 %v369_v10, %v320_v9 }
  0xe0   :  { %v448_v14 = vadd.f32 %v447_v6, %v865_v19  ;;  %v479_v15 = vadd.f32 %v478_v8, %v464_v5  ;;  %438 = vst [vmem:[%s924_s2 + $0x78] sm:$0xff] %v370_v11  ;;  %v470_v29 = vmul.f32 %v370_v11, %v370_v11 }
  0xe2   :  { %v480_v16 = vadd.f32 %v479_v15, %v465_v12  ;;  %v449_v13 = vadd.f32 %v448_v14, %v874_v25 }
  0xe4   :  { %v450_v18 = vadd.f32 %v449_v13, %v363_v31  ;;  %v481_v20 = vadd.f32 %v480_v16, %v466_v7 }
  0xe6   :  { %v451_v22 = vadd.f32 %v450_v18, %v365_v41  ;;  %v482_v23 = vadd.f32 %v481_v20, %v467_v17 }
  0xe8   :  { %v452_v24 = vadd.f32 %v451_v22, %v368_v59  ;;  %v483_v19 = vadd.f32 %v482_v23, %v468_v21 }
  0xea   :  { %v484_v27 = vadd.f32 %v483_v19, %v469_v26  ;;  %v453_v28 = vadd.f32 %v452_v24, %v370_v11 }
  0xec   :  { %454 = vst [vmem:[%s925_s3] sm:$0xff] %v453_v28  ;;  %v485_v30 = vadd.f32 %v484_v27, %v470_v29 }
  0xee   :  { %486 = vst [vmem:[%s926_s4] sm:$0xff] %v485_v30 }

// kernel: forward.33
= control target key start
LH: loop header
LB: loop body
LE: loop exit
PB: predicated region body
PF: predicated region fallthrough
CT: control target
= control target key end

     0   :  { %s1638_s1 = inlined_call_operand.vmem [shape: bf16[128,128], index: 1, kind: input, shape index: {}]   ;;  %s1639_s0 = inlined_call_operand.vmem [shape: bf16[512,128], index: 0, kind: input, shape index: {}]   ;;  %s1640_s2 = inlined_call_operand.vmem [shape: f32[512,128], index: 2, kind: output, shape index: {}]  }
   0x1   :  { %v1158_v0 = vld [vmem:[%s1638_s1 + $0x38] sm:$0xff]  ;;  %v1157_v1 = vld [vmem:[%s1638_s1 + $0x30] sm:$0xff]  ;;  %v1156_v2 = vld [vmem:[%s1638_s1 + $0x28] sm:$0xff] }
   0x2   :  { %463 = vmatpush.bf16.msra.mxu0 %v1158_v0  ;;  %1159 = vmatpush.bf16.msra.mxu1 %v1158_v0  ;;  %v1155_v3 = vld [vmem:[%s1638_s1 + $0x20] sm:$0xff]  ;;  %v1154_v4 = vld [vmem:[%s1638_s1 + $0x18] sm:$0xff]  ;;  %v1153_v5 = vld [vmem:[%s1638_s1 + $0x10] sm:$0xff] }
   0x3   :  { %1160 = vmatpush.bf16.msra.mxu2 %v1158_v0  ;;  %1161 = vmatpush.bf16.msra.mxu3 %v1158_v0  ;;  %v1152_v6 = vld [vmem:[%s1638_s1 + $0x8] sm:$0xff]  ;;  %v1151_v7 = vld [vmem:[%s1638_s1] sm:$0xff]  ;;  %v1121_v16 = vld [vmem:[%s1639_s0 + $0x10] sm:$0xff] }
   0x4   :  { %v1119_v8 = vld [vmem:[%s1639_s0] sm:$0xff]  ;;  %v1120_v12 = vld [vmem:[%s1639_s0 + $0x8] sm:$0xff]  ;;  %v1129_v17 = vld [vmem:[%s1639_s0 + $0x50] sm:$0xff] }
   0x5   :  { %v1127_v9 = vld [vmem:[%s1639_s0 + $0x40] sm:$0xff]  ;;  %v1128_v13 = vld [vmem:[%s1639_s0 + $0x48] sm:$0xff]  ;;  %v1137_v18 = vld [vmem:[%s1639_s0 + $0x90] sm:$0xff] }
   0x6   :  { %464 = vmatpush.bf16.msra.mxu0 %v1157_v1  ;;  %1162 = vmatpush.bf16.msra.mxu1 %v1157_v1  ;;  %v1135_v10 = vld [vmem:[%s1639_s0 + $0x80] sm:$0xff]  ;;  %v1136_v14 = vld [vmem:[%s1639_s0 + $0x88] sm:$0xff]  ;;  %v1145_v19 = vld [vmem:[%s1639_s0 + $0xd0] sm:$0xff] }
   0x7   :  { %1163 = vmatpush.bf16.msra.mxu2 %v1157_v1  ;;  %1164 = vmatpush.bf16.msra.mxu3 %v1157_v1  ;;  %v1143_v11 = vld [vmem:[%s1639_s0 + $0xc0] sm:$0xff]  ;;  %v1144_v15 = vld [vmem:[%s1639_s0 + $0xc8] sm:$0xff]  ;;  %v1122_v20 = vld [vmem:[%s1639_s0 + $0x18] sm:$0xff] }
   0x8   :  { %v1130_v21 = vld [vmem:[%s1639_s0 + $0x58] sm:$0xff]  ;;  %v1123_v24 = vld [vmem:[%s1639_s0 + $0x20] sm:$0xff]  ;;  %v1124_v28 = vld [vmem:[%s1639_s0 + $0x28] sm:$0xff] }
   0x9   :  { %v1138_v22 = vld [vmem:[%s1639_s0 + $0x98] sm:$0xff]  ;;  %v1131_v25 = vld [vmem:[%s1639_s0 + $0x60] sm:$0xff]  ;;  %v1132_v29 = vld [vmem:[%s1639_s0 + $0x68] sm:$0xff] }
   0xa   :  { %465 = vmatpush.bf16.msra.mxu0 %v1156_v2  ;;  %1165 = vmatpush.bf16.msra.mxu1 %v1156_v2  ;;  %v1146_v23 = vld [vmem:[%s1639_s0 + $0xd8] sm:$0xff]  ;;  %v1139_v26 = vld [vmem:[%s1639_s0 + $0xa0] sm:$0xff]  ;;  %v1140_v30 = vld [vmem:[%s1639_s0 + $0xa8] sm:$0xff] }
   0xb   :  { %1166 = vmatpush.bf16.msra.mxu2 %v1156_v2  ;;  %1167 = vmatpush.bf16.msra.mxu3 %v1156_v2  ;;  %v1147_v27 = vld [vmem:[%s1639_s0 + $0xe0] sm:$0xff]  ;;  %v1148_v31 = vld [vmem:[%s1639_s0 + $0xe8] sm:$0xff]  ;;  %v1125_v32 = vld [vmem:[%s1639_s0 + $0x30] sm:$0xff] }
   0xc   :  { %v1133_v33 = vld [vmem:[%s1639_s0 + $0x70] sm:$0xff]  ;;  %v1126_v36 = vld [vmem:[%s1639_s0 + $0x38] sm:$0xff] }
   0xd   :  { %v1141_v34 = vld [vmem:[%s1639_s0 + $0xb0] sm:$0xff]  ;;  %v1134_v37 = vld [vmem:[%s1639_s0 + $0x78] sm:$0xff] }
   0xe   :  { %466 = vmatpush.bf16.msra.mxu0 %v1155_v3  ;;  %1168 = vmatpush.bf16.msra.mxu1 %v1155_v3  ;;  %v1149_v35 = vld [vmem:[%s1639_s0 + $0xf0] sm:$0xff]  ;;  %v1142_v38 = vld [vmem:[%s1639_s0 + $0xb8] sm:$0xff] }
   0xf   :  { %1169 = vmatpush.bf16.msra.mxu2 %v1155_v3  ;;  %1170 = vmatpush.bf16.msra.mxu3 %v1155_v3  ;;  %v1150_v39 = vld [vmem:[%s1639_s0 + $0xf8] sm:$0xff] }
  0x12   :  { %467 = vmatpush.bf16.msra.mxu0 %v1154_v4  ;;  %1171 = vmatpush.bf16.msra.mxu1 %v1154_v4 }
  0x13   :  { %1172 = vmatpush.bf16.msra.mxu2 %v1154_v4  ;;  %1173 = vmatpush.bf16.msra.mxu3 %v1154_v4 }
  0x16   :  { %468 = vmatpush.bf16.msra.mxu0 %v1153_v5  ;;  %1174 = vmatpush.bf16.msra.mxu1 %v1153_v5 }
  0x17   :  { %1175 = vmatpush.bf16.msra.mxu2 %v1153_v5  ;;  %1176 = vmatpush.bf16.msra.mxu3 %v1153_v5 }
  0x1a   :  { %469 = vmatpush.bf16.msra.mxu0 %v1152_v6  ;;  %1177 = vmatpush.bf16.msra.mxu1 %v1152_v6 }
  0x1b   :  { %1178 = vmatpush.bf16.msra.mxu2 %v1152_v6  ;;  %1179 = vmatpush.bf16.msra.mxu3 %v1152_v6 }
  0x1e   :  { %470 = vmatpush.bf16.msra.mxu0 %v1151_v7  ;;  %1180 = vmatpush.bf16.msra.mxu1 %v1151_v7 }
  0x1f   :  { %1181 = vmatpush.bf16.msra.mxu2 %v1151_v7  ;;  %1182 = vmatpush.bf16.msra.mxu3 %v1151_v7 }
  0x21   :  { %471 = vmatmul.bf16.vlgmr.msra.gmra.mxu0 %v1119_v8  ;;  %511 = vmatmul.bf16.vlgmr.msra.gmra.mxu1 %v1127_v9 }
  0x22   :  { %551 = vmatmul.bf16.vlgmr.msra.gmra.mxu2 %v1135_v10  ;;  %591 = vmatmul.bf16.vlgmr.msra.gmra.mxu3 %v1143_v11 }
  0x31   :  { %476 = vmatmul.bf16.gmra.mxu0 %v1120_v12  ;;  %516 = vmatmul.bf16.gmra.mxu1 %v1128_v13 }
  0x32   :  { %556 = vmatmul.bf16.gmra.mxu2 %v1136_v14  ;;  %596 = vmatmul.bf16.gmra.mxu3 %v1144_v15 }
  0x41   :  { %481 = vmatmul.bf16.gmra.mxu0 %v1121_v16  ;;  %521 = vmatmul.bf16.gmra.mxu1 %v1129_v17 }
  0x42   :  { %561 = vmatmul.bf16.gmra.mxu2 %v1137_v18  ;;  %601 = vmatmul.bf16.gmra.mxu3 %v1145_v19 }
  0x51   :  { %486 = vmatmul.bf16.gmra.mxu0 %v1122_v20  ;;  %526 = vmatmul.bf16.gmra.mxu1 %v1130_v21 }
  0x52   :  { %566 = vmatmul.bf16.gmra.mxu2 %v1138_v22  ;;  %606 = vmatmul.bf16.gmra.mxu3 %v1146_v23 }
  0x61   :  { %491 = vmatmul.bf16.gmra.mxu0 %v1123_v24  ;;  %531 = vmatmul.bf16.gmra.mxu1 %v1131_v25 }
  0x62   :  { %571 = vmatmul.bf16.gmra.mxu2 %v1139_v26  ;;  %611 = vmatmul.bf16.gmra.mxu3 %v1147_v27 }
  0x71   :  { %496 = vmatmul.bf16.gmra.mxu0 %v1124_v28  ;;  %536 = vmatmul.bf16.gmra.mxu1 %v1132_v29 }
  0x72   :  { %576 = vmatmul.bf16.gmra.mxu2 %v1140_v30  ;;  %616 = vmatmul.bf16.gmra.mxu3 %v1148_v31 }
  0x81   :  { %501 = vmatmul.bf16.gmra.mxu0 %v1125_v32  ;;  %541 = vmatmul.bf16.gmra.mxu1 %v1133_v33 }
  0x82   :  { %581 = vmatmul.bf16.gmra.mxu2 %v1141_v34  ;;  %621 = vmatmul.bf16.gmra.mxu3 %v1149_v35 }
  0x91   :  { %506 = vmatmul.bf16.gmra.mxu0 %v1126_v36  ;;  %546 = vmatmul.bf16.gmra.mxu1 %v1134_v37 }
  0x92   :  { %586 = vmatmul.bf16.gmra.mxu2 %v1142_v38  ;;  %626 = vmatmul.bf16.gmra.mxu3 %v1150_v39 }
  0x9e   :  { %v472_v40 = vpop.f32.mrf.mxu0  ;;  %v512_v41 = vpop.f32.mrf.mxu1 }
  0x9f   :  { %1183 = vtanh.f32 %v472_v40 }
  0xa0   :  { %1185 = vtanh.f32 %v512_v41 }
  0xa5   :  { %v1184_v42 = vpop.eup %1183  ;;  %v552_v43 = vpop.f32.mrf.mxu2 }
  0xa6   :  { %v592_v44 = vpop.f32.mrf.mxu3  ;;  %v1186_v45 = vpop.eup %1185  ;;  %891 = vst [vmem:[%s1640_s2] sm:$0xff] %v1184_v42  ;;  %1187 = vtanh.f32 %v552_v43 }
  0xa7   :  { %v474_v46 = vpop.f32.mrf.mxu0  ;;  %v514_v47 = vpop.f32.mrf.mxu1  ;;  %907 = vst [vmem:[%s1640_s2 + $0x80] sm:$0xff] %v1186_v45  ;;  %1189 = vtanh.f32 %v592_v44 }
  0xa8   :  { %1191 = vtanh.f32 %v474_v46 }
  0xa9   :  { %1193 = vtanh.f32 %v514_v47 }
  0xac   :  { %v1188_v48 = vpop.eup %1187 }
  0xad   :  { %v1190_v49 = vpop.eup %1189  ;;  %923 = vst [vmem:[%s1640_s2 + $0x100] sm:$0xff] %v1188_v48  ;;  %v554_v50 = vpop.f32.mrf.mxu2 }
  0xae   :  { %v594_v51 = vpop.f32.mrf.mxu3  ;;  %v1192_v52 = vpop.eup %1191  ;;  %939 = vst [vmem:[%s1640_s2 + $0x180] sm:$0xff] %v1190_v49  ;;  %1195 = vtanh.f32 %v554_v50 }
  0xaf   :  { %v477_v53 = vpop.f32.mrf.mxu0  ;;  %v517_v54 = vpop.f32.mrf.mxu1  ;;  %892 = vst [vmem:[%s1640_s2 + $0x8] sm:$0xff] %v1192_v52  ;;  %1197 = vtanh.f32 %v594_v51 }
  0xb0   :  { %v1194_v55 = vpop.eup %1193  ;;  %1199 = vtanh.f32 %v477_v53 }
  0xb1   :  { %908 = vst [vmem:[%s1640_s2 + $0x88] sm:$0xff] %v1194_v55  ;;  %1201 = vtanh.f32 %v517_v54 }
  0xb4   :  { %v1196_v56 = vpop.eup %1195 }
  0xb5   :  { %v1198_v57 = vpop.eup %1197  ;;  %924 = vst [vmem:[%s1640_s2 + $0x108] sm:$0xff] %v1196_v56  ;;  %v557_v58 = vpop.f32.mrf.mxu2 }
  0xb6   :  { %v597_v59 = vpop.f32.mrf.mxu3  ;;  %v1200_v60 = vpop.eup %1199  ;;  %940 = vst [vmem:[%s1640_s2 + $0x188] sm:$0xff] %v1198_v57  ;;  %1203 = vtanh.f32 %v557_v58 }
  0xb7   :  { %v479_v61 = vpop.f32.mrf.mxu0  ;;  %v519_v62 = vpop.f32.mrf.mxu1  ;;  %893 = vst [vmem:[%s1640_s2 + $0x10] sm:$0xff] %v1200_v60  ;;  %1205 = vtanh.f32 %v597_v59 }
  0xb8   :  { %v1202_v63 = vpop.eup %1201  ;;  %1207 = vtanh.f32 %v479_v61 }
  0xb9   :  { %909 = vst [vmem:[%s1640_s2 + $0x90] sm:$0xff] %v1202_v63  ;;  %1209 = vtanh.f32 %v519_v62 }
  0xbc   :  { %v1204_v0 = vpop.eup %1203 }
  0xbd   :  { %v1206_v1 = vpop.eup %1205  ;;  %925 = vst [vmem:[%s1640_s2 + $0x110] sm:$0xff] %v1204_v0  ;;  %v559_v2 = vpop.f32.mrf.mxu2 }
  0xbe   :  { %v599_v3 = vpop.f32.mrf.mxu3  ;;  %v1208_v4 = vpop.eup %1207  ;;  %941 = vst [vmem:[%s1640_s2 + $0x190] sm:$0xff] %v1206_v1  ;;  %1211 = vtanh.f32 %v559_v2 }
  0xbf   :  { %v482_v5 = vpop.f32.mrf.mxu0  ;;  %v522_v6 = vpop.f32.mrf.mxu1  ;;  %894 = vst [vmem:[%s1640_s2 + $0x18] sm:$0xff] %v1208_v4  ;;  %1213 = vtanh.f32 %v599_v3 }
  0xc0   :  { %v1210_v7 = vpop.eup %1209  ;;  %1215 = vtanh.f32 %v482_v5 }
  0xc1   :  { %910 = vst [vmem:[%s1640_s2 + $0x98] sm:$0xff] %v1210_v7  ;;  %1217 = vtanh.f32 %v522_v6 }
  0xc4   :  { %v1212_v8 = vpop.eup %1211 }
  0xc5   :  { %v1214_v9 = vpop.eup %1213  ;;  %926 = vst [vmem:[%s1640_s2 + $0x118] sm:$0xff] %v1212_v8  ;;  %v562_v10 = vpop.f32.mrf.mxu2 }
  0xc6   :  { %v602_v11 = vpop.f32.mrf.mxu3  ;;  %v1216_v12 = vpop.eup %1215  ;;  %942 = vst [vmem:[%s1640_s2 + $0x198] sm:$0xff] %v1214_v9  ;;  %1219 = vtanh.f32 %v562_v10 }
  0xc7   :  { %v484_v13 = vpop.f32.mrf.mxu0  ;;  %v524_v14 = vpop.f32.mrf.mxu1  ;;  %895 = vst [vmem:[%s1640_s2 + $0x20] sm:$0xff] %v1216_v12  ;;  %1221 = vtanh.f32 %v602_v11 }
  0xc8   :  { %v1218_v15 = vpop.eup %1217  ;;  %1223 = vtanh.f32 %v484_v13 }
  0xc9   :  { %911 = vst [vmem:[%s1640_s2 + $0xa0] sm:$0xff] %v1218_v15  ;;  %1225 = vtanh.f32 %v524_v14 }
  0xcc   :  { %v1220_v16 = vpop.eup %1219 }
  0xcd   :  { %v1222_v17 = vpop.eup %1221  ;;  %927 = vst [vmem:[%s1640_s2 + $0x120] sm:$0xff] %v1220_v16  ;;  %v564_v18 = vpop.f32.mrf.mxu2 }
  0xce   :  { %v604_v19 = vpop.f32.mrf.mxu3  ;;  %v1224_v20 = vpop.eup %1223  ;;  %943 = vst [vmem:[%s1640_s2 + $0x1a0] sm:$0xff] %v1222_v17  ;;  %1227 = vtanh.f32 %v564_v18 }
  0xcf   :  { %v487_v21 = vpop.f32.mrf.mxu0  ;;  %v527_v22 = vpop.f32.mrf.mxu1  ;;  %896 = vst [vmem:[%s1640_s2 + $0x28] sm:$0xff] %v1224_v20  ;;  %1229 = vtanh.f32 %v604_v19 }
  0xd0   :  { %v1226_v23 = vpop.eup %1225  ;;  %1231 = vtanh.f32 %v487_v21 }
  0xd1   :  { %912 = vst [vmem:[%s1640_s2 + $0xa8] sm:$0xff] %v1226_v23  ;;  %1233 = vtanh.f32 %v527_v22 }
  0xd4   :  { %v1228_v24 = vpop.eup %1227 }
  0xd5   :  { %v1230_v25 = vpop.eup %1229  ;;  %928 = vst [vmem:[%s1640_s2 + $0x128] sm:$0xff] %v1228_v24  ;;  %v567_v26 = vpop.f32.mrf.mxu2 }
  0xd6   :  { %v607_v27 = vpop.f32.mrf.mxu3  ;;  %v1232_v28 = vpop.eup %1231  ;;  %944 = vst [vmem:[%s1640_s2 + $0x1a8] sm:$0xff] %v1230_v25  ;;  %1235 = vtanh.f32 %v567_v26 }
  0xd7   :  { %v489_v29 = vpop.f32.mrf.mxu0  ;;  %v529_v30 = vpop.f32.mrf.mxu1  ;;  %897 = vst [vmem:[%s1640_s2 + $0x30] sm:$0xff] %v1232_v28  ;;  %1237 = vtanh.f32 %v607_v27 }
  0xd8   :  { %v1234_v31 = vpop.eup %1233  ;;  %1239 = vtanh.f32 %v489_v29 }
  0xd9   :  { %913 = vst [vmem:[%s1640_s2 + $0xb0] sm:$0xff] %v1234_v31  ;;  %1241 = vtanh.f32 %v529_v30 }
  0xdc   :  { %v1236_v32 = vpop.eup %1235 }
  0xdd   :  { %v1238_v33 = vpop.eup %1237  ;;  %929 = vst [vmem:[%s1640_s2 + $0x130] sm:$0xff] %v1236_v32  ;;  %v569_v34 = vpop.f32.mrf.mxu2 }
  0xde   :  { %v609_v35 = vpop.f32.mrf.mxu3  ;;  %v1240_v36 = vpop.eup %1239  ;;  %945 = vst [vmem:[%s1640_s2 + $0x1b0] sm:$0xff] %v1238_v33  ;;  %1243 = vtanh.f32 %v569_v34 }
  0xdf   :  { %v492_v37 = vpop.f32.mrf.mxu0  ;;  %v532_v38 = vpop.f32.mrf.mxu1  ;;  %898 = vst [vmem:[%s1640_s2 + $0x38] sm:$0xff] %v1240_v36  ;;  %1245 = vtanh.f32 %v609_v35 }
  0xe0   :  { %v1242_v39 = vpop.eup %1241  ;;  %1247 = vtanh.f32 %v492_v37 }
  0xe1   :  { %914 = vst [vmem:[%s1640_s2 + $0xb8] sm:$0xff] %v1242_v39  ;;  %1249 = vtanh.f32 %v532_v38 }
  0xe4   :  { %v1244_v40 = vpop.eup %1243 }
  0xe5   :  { %v1246_v41 = vpop.eup %1245  ;;  %930 = vst [vmem:[%s1640_s2 + $0x138] sm:$0xff] %v1244_v40  ;;  %v572_v42 = vpop.f32.mrf.mxu2 }
  0xe6   :  { %v612_v43 = vpop.f32.mrf.mxu3  ;;  %v1248_v44 = vpop.eup %1247  ;;  %946 = vst [vmem:[%s1640_s2 + $0x1b8] sm:$0xff] %v1246_v41  ;;  %1251 = vtanh.f32 %v572_v42 }
  0xe7   :  { %v494_v45 = vpop.f32.mrf.mxu0  ;;  %v534_v46 = vpop.f32.mrf.mxu1  ;;  %899 = vst [vmem:[%s1640_s2 + $0x40] sm:$0xff] %v1248_v44  ;;  %1253 = vtanh.f32 %v612_v43 }
  0xe8   :  { %v1250_v47 = vpop.eup %1249  ;;  %1255 = vtanh.f32 %v494_v45 }
  0xe9   :  { %915 = vst [vmem:[%s1640_s2 + $0xc0] sm:$0xff] %v1250_v47  ;;  %1257 = vtanh.f32 %v534_v46 }
  0xec   :  { %v1252_v48 = vpop.eup %1251 }
  0xed   :  { %v1254_v49 = vpop.eup %1253  ;;  %931 = vst [vmem:[%s1640_s2 + $0x140] sm:$0xff] %v1252_v48  ;;  %v574_v50 = vpop.f32.mrf.mxu2 }
  0xee   :  { %v614_v51 = vpop.f32.mrf.mxu3  ;;  %v1256_v52 = vpop.eup %1255  ;;  %947 = vst [vmem:[%s1640_s2 + $0x1c0] sm:$0xff] %v1254_v49  ;;  %1259 = vtanh.f32 %v574_v50 }
  0xef   :  { %v497_v53 = vpop.f32.mrf.mxu0  ;;  %v537_v54 = vpop.f32.mrf.mxu1  ;;  %900 = vst [vmem:[%s1640_s2 + $0x48] sm:$0xff] %v1256_v52  ;;  %1261 = vtanh.f32 %v614_v51 }
  0xf0   :  { %v1258_v55 = vpop.eup %1257  ;;  %1263 = vtanh.f32 %v497_v53 }
  0xf1   :  { %916 = vst [vmem:[%s1640_s2 + $0xc8] sm:$0xff] %v1258_v55  ;;  %1265 = vtanh.f32 %v537_v54 }
  0xf4   :  { %v1260_v56 = vpop.eup %1259 }
  0xf5   :  { %v1262_v57 = vpop.eup %1261  ;;  %932 = vst [vmem:[%s1640_s2 + $0x148] sm:$0xff] %v1260_v56  ;;  %v577_v58 = vpop.f32.mrf.mxu2 }
  0xf6   :  { %v617_v59 = vpop.f32.mrf.mxu3  ;;  %v1264_v60 = vpop.eup %1263  ;;  %948 = vst [vmem:[%s1640_s2 + $0x1c8] sm:$0xff] %v1262_v57  ;;  %1267 = vtanh.f32 %v577_v58 }
  0xf7   :  { %v499_v61 = vpop.f32.mrf.mxu0  ;;  %v539_v62 = vpop.f32.mrf.mxu1  ;;  %901 = vst [vmem:[%s1640_s2 + $0x50] sm:$0xff] %v1264_v60  ;;  %1269 = vtanh.f32 %v617_v59 }
  0xf8   :  { %v1266_v63 = vpop.eup %1265  ;;  %1271 = vtanh.f32 %v499_v61 }
  0xf9   :  { %917 = vst [vmem:[%s1640_s2 + $0xd0] sm:$0xff] %v1266_v63  ;;  %1273 = vtanh.f32 %v539_v62 }
  0xfc   :  { %v1268_v0 = vpop.eup %1267 }
  0xfd   :  { %v1270_v1 = vpop.eup %1269  ;;  %933 = vst [vmem:[%s1640_s2 + $0x150] sm:$0xff] %v1268_v0  ;;  %v579_v2 = vpop.f32.mrf.mxu2 }
  0xfe   :  { %v619_v3 = vpop.f32.mrf.mxu3  ;;  %v1272_v4 = vpop.eup %1271  ;;  %949 = vst [vmem:[%s1640_s2 + $0x1d0] sm:$0xff] %v1270_v1  ;;  %1275 = vtanh.f32 %v579_v2 }
  0xff   :  { %v502_v5 = vpop.f32.mrf.mxu0  ;;  %v542_v6 = vpop.f32.mrf.mxu1  ;;  %902 = vst [vmem:[%s1640_s2 + $0x58] sm:$0xff] %v1272_v4  ;;  %1277 = vtanh.f32 %v619_v3 }
 0x100   :  { %v1274_v7 = vpop.eup %1273  ;;  %1279 = vtanh.f32 %v502_v5 }
 0x101   :  { %918 = vst [vmem:[%s1640_s2 + $0xd8] sm:$0xff] %v1274_v7  ;;  %1281 = vtanh.f32 %v542_v6 }
 0x104   :  { %v1276_v8 = vpop.eup %1275 }
 0x105   :  { %v1278_v9 = vpop.eup %1277  ;;  %934 = vst [vmem:[%s1640_s2 + $0x158] sm:$0xff] %v1276_v8  ;;  %v582_v10 = vpop.f32.mrf.mxu2 }
 0x106   :  { %v622_v11 = vpop.f32.mrf.mxu3  ;;  %v1280_v12 = vpop.eup %1279  ;;  %950 = vst [vmem:[%s1640_s2 + $0x1d8] sm:$0xff] %v1278_v9  ;;  %1283 = vtanh.f32 %v582_v10 }
 0x107   :  { %v504_v13 = vpop.f32.mrf.mxu0  ;;  %v544_v14 = vpop.f32.mrf.mxu1  ;;  %903 = vst [vmem:[%s1640_s2 + $0x60] sm:$0xff] %v1280_v12  ;;  %1285 = vtanh.f32 %v622_v11 }
 0x108   :  { %v1282_v15 = vpop.eup %1281  ;;  %1287 = vtanh.f32 %v504_v13 }
 0x109   :  { %919 = vst [vmem:[%s1640_s2 + $0xe0] sm:$0xff] %v1282_v15  ;;  %1289 = vtanh.f32 %v544_v14 }
 0x10c   :  { %v1284_v16 = vpop.eup %1283 }
 0x10d   :  { %v1286_v17 = vpop.eup %1285  ;;  %935 = vst [vmem:[%s1640_s2 + $0x160] sm:$0xff] %v1284_v16  ;;  %v584_v18 = vpop.f32.mrf.mxu2 }
 0x10e   :  { %v624_v19 = vpop.f32.mrf.mxu3  ;;  %v1288_v20 = vpop.eup %1287  ;;  %951 = vst [vmem:[%s1640_s2 + $0x1e0] sm:$0xff] %v1286_v17  ;;  %1291 = vtanh.f32 %v584_v18 }
 0x10f   :  { %v507_v21 = vpop.f32.mrf.mxu0  ;;  %v547_v22 = vpop.f32.mrf.mxu1  ;;  %904 = vst [vmem:[%s1640_s2 + $0x68] sm:$0xff] %v1288_v20  ;;  %1293 = vtanh.f32 %v624_v19 }
 0x110   :  { %v1290_v23 = vpop.eup %1289  ;;  %1295 = vtanh.f32 %v507_v21 }
 0x111   :  { %920 = vst [vmem:[%s1640_s2 + $0xe8] sm:$0xff] %v1290_v23  ;;  %1297 = vtanh.f32 %v547_v22 }
 0x114   :  { %v1292_v24 = vpop.eup %1291 }
 0x115   :  { %v1294_v25 = vpop.eup %1293  ;;  %936 = vst [vmem:[%s1640_s2 + $0x168] sm:$0xff] %v1292_v24  ;;  %v587_v26 = vpop.f32.mrf.mxu2 }
 0x116   :  { %v627_v27 = vpop.f32.mrf.mxu3  ;;  %v1296_v28 = vpop.eup %1295  ;;  %952 = vst [vmem:[%s1640_s2 + $0x1e8] sm:$0xff] %v1294_v25  ;;  %1299 = vtanh.f32 %v587_v26 }
 0x117   :  { %v509_v29 = vpop.f32.mrf.mxu0  ;;  %v549_v30 = vpop.f32.mrf.mxu1  ;;  %905 = vst [vmem:[%s1640_s2 + $0x70] sm:$0xff] %v1296_v28  ;;  %1301 = vtanh.f32 %v627_v27 }
 0x118   :  { %v1298_v31 = vpop.eup %1297  ;;  %1303 = vtanh.f32 %v509_v29 }
 0x119   :  { %921 = vst [vmem:[%s1640_s2 + $0xf0] sm:$0xff] %v1298_v31  ;;  %1305 = vtanh.f32 %v549_v30 }
 0x11c   :  { %v1300_v32 = vpop.eup %1299 }
 0x11d   :  { %v1302_v33 = vpop.eup %1301  ;;  %937 = vst [vmem:[%s1640_s2 + $0x170] sm:$0xff] %v1300_v32  ;;  %v589_v34 = vpop.f32.mrf.mxu2 }
 0x11e   :  { %v629_v35 = vpop.f32.mrf.mxu3  ;;  %v1304_v36 = vpop.eup %1303  ;;  %953 = vst [vmem:[%s1640_s2 + $0x1f0] sm:$0xff] %v1302_v33  ;;  %1307 = vtanh.f32 %v589_v34 }
 0x11f   :  { %v1306_v37 = vpop.eup %1305  ;;  %906 = vst [vmem:[%s1640_s2 + $0x78] sm:$0xff] %v1304_v36  ;;  %1309 = vtanh.f32 %v629_v35 }
 0x120   :  { %922 = vst [vmem:[%s1640_s2 + $0xf8] sm:$0xff] %v1306_v37 }
 0x124   :  { %v1308_v38 = vpop.eup %1307 }
 0x125   :  { %v1310_v39 = vpop.eup %1309  ;;  %938 = vst [vmem:[%s1640_s2 + $0x178] sm:$0xff] %v1308_v38 }
 0x126   :  { %954 = vst [vmem:[%s1640_s2 + $0x1f8] sm:$0xff] %v1310_v39 }

</bundles_post_ra>
